<compile_context>
chip_gen: v5e
topology: v5e:2x2
jax: 0.10.0
libtpu: 0.0.40
codegen_flags: <defaults>
</compile_context>

<pallas_src>
import functools
import jax
import jax.numpy as jnp
from jax import lax
from jax.experimental import pallas as pl
from jax.experimental.pallas import tpu as pltpu

EPS = 1e-5
NBP = 8   # padded "image column" count for the per-image stat/broadcast matrices (>= nb, = f32 sublane tile)


# ----------------------------------------- kernel -----------------------------------------

def residual_block_kernel(
    x_ref, add_ref, mask_ref, bsum_ref, bcast_ref,
    g1_ref, be1_ref, m1_ref, m1t_ref, w1_ref,
    g2_ref, be2_ref, m2_ref, m2t_ref, w2_ref, b2_ref,
    wres_ref, bres_ref,
    out_ref,
    *, W, S, nb, cpg1, cpg2, has_res,
):
    nbS = nb * S
    f32 = jnp.float32

    # ---- widen the nb-sample block onto the lane axis: (nb, C, S) -> (C, nb*S) ----
    # S is a multiple of 128, so this lane-axis concat is tile-aligned (vreg placement only).
    x = jnp.concatenate([x_ref[n] for n in range(nb)], axis=1).astype(f32)     # (Cp1, nbS)

    def gn_silu(a, gamma, beta, m, mt, cpg):
        # PyTorch GroupNorm (biased variance, eps=1e-5), fp32 stats, affine folded into scale/shift.
        # Cross-lane reductions and per-image broadcasts go through the (near-idle) MXU:
        #   [a; a*a] @ B       -> per-(channel, image) sums          (K = nb*S, N = NBP)
        #   [scale; shift] @ Bt -> per-lane scale / shift            (K = NBP,  N = nb*S)
        C = a.shape[0]
        inv_n = 1.0 / (cpg * S)
        stats = jnp.dot(jnp.concatenate([a, a * a], axis=0), bsum_ref[...],
                        preferred_element_type=f32)                            # (2C, NBP)
        s, ss = stats[:C] * inv_n, stats[C:] * inv_n
        if cpg == 1:                       # one channel per group
            mean = s
            inv = lax.rsqrt(ss - s * s + EPS)
        else:                              # aggregate over the channels of each group (batched over images)
            gm = jnp.dot(m, s, preferred_element_type=f32)                     # (G, NBP)
            gss = jnp.dot(m, ss, preferred_element_type=f32)
            gi = lax.rsqrt(gss - gm * gm + EPS)
            mean = jnp.dot(mt, gm, preferred_element_type=f32)                 # (C, NBP)
            inv = jnp.dot(mt, gi, preferred_element_type=f32)
        scale = inv * gamma                                                    # (C, NBP)
        shift = beta - mean * scale
        full = jnp.dot(jnp.concatenate([scale, shift], axis=0), bcast_ref[...],
                       preferred_element_type=f32)                             # (2C, nbS)
        h = a * full[:C] + full[C:]
        return h * jax.nn.sigmoid(h)       # SiLU

    def conv3x3(a, w_ref):
        # 9 shifted taps (XLU rolls) * precomputed boundary masks, stacked along the
        # sublane-tile aligned channel axis -> ONE bf16 MXU matmul with K = 9 * C_in_pad.
        parts = []
        t = 0
        for dy in (-1, 0, 1):
            for dx in (-1, 0, 1):
                if dy == 0 and dx == 0:
                    parts.append(a)
                else:
                    k = dy * W + dx
                    parts.append(pltpu.roll(a, (-k) % nbS, axis=1) * mask_ref[t])
                t += 1
        stack = jnp.concatenate(parts, axis=0).astype(jnp.bfloat16)            # (9*C_in_pad, nbS)
        return jnp.dot(w_ref[...], stack, preferred_element_type=f32)          # (Cp2, nbS)

    # block1: GN -> SiLU -> Conv3x3, then + (conv1 bias + time/cond emb) expanded per image
    h = gn_silu(x, g1_ref[...], be1_ref[...], m1_ref[...], m1t_ref[...], cpg1)
    h = conv3x3(h, w1_ref) + jnp.dot(add_ref[0], bcast_ref[...], preferred_element_type=f32)

    # block2: GN -> SiLU -> Conv3x3 (+ per-channel bias)
    h = gn_silu(h, g2_ref[...], be2_ref[...], m2_ref[...], m2t_ref[...], cpg2)
    h = conv3x3(h, w2_ref) + b2_ref[...]

    # residual path: 1x1 conv (kept fp32 -- precision-sensitive skip), or identity
    if has_res:
        res = jnp.dot(wres_ref[...], x, preferred_element_type=f32) + bres_ref[...]
    else:
        res = x

    y = (h + res).astype(out_ref.dtype)
    for n in range(nb):                    # lane-aligned split back to (nb, Cp2, S)
        out_ref[n] = y[:, n * S:(n + 1) * S]


# ----------------------------------------- wrapper -----------------------------------------

def _round_up(v, m):
    return ((v + m - 1) // m) * m


def residual_block_forward(x, time_emb, cond_emb, p, *, batch_block=2):
    N, C_in, H, W = x.shape
    S = H * W
    # TODO(synk): generic H*W needs lane padding of S to a multiple of 128 (masks/B make this easy);
    # the test sizes already satisfy it, and item 11 of the review only bites for odd spatial sizes.
    assert S % 128 == 0, "H*W must be a multiple of 128 for a lane-dense layout"

    C_out = p["conv1_w"].shape[0]
    G1, G2 = min(8, C_in), min(8, C_out)
    assert C_in % G1 == 0 and C_out % G2 == 0
    cpg1, cpg2 = C_in // G1, C_out // G2
    Cp1, Cp2 = _round_up(C_in, 8), _round_up(C_out, 8)     # sublane-tile aligned channel dims

    nb = min(batch_block, N)
    assert N % nb == 0 and 1 <= nb <= NBP, "batch must be divisible by batch_block (<= 8)"
    nbS = nb * S
    f32, bf16 = jnp.float32, jnp.bfloat16

    # --- activations: NCHW -> (N, Cp1, S), bf16 at the HBM boundary (halves read traffic) ---
    x_flat = jnp.pad(x.reshape(N, C_in, S).astype(f32),
                     ((0, 0), (0, Cp1 - C_in), (0, 0))).astype(bf16)

    # --- time/cond Linear layers hoisted out of the kernel; fold in conv1 bias as well ---
    add = time_emb.astype(f32) @ p["time_w"].T.astype(f32) + p["time_b"] + p["conv1_b"]
    if cond_emb is not None and p.get("cond_w", None) is not None:
        add = add + cond_emb.astype(f32) @ p["cond_w"].T.astype(f32) + p["cond_b"]
    # per grid step: (Cp2, NBP) block, column n = sample b*nb+n, zero-padded channels/columns
    add_blocks = jnp.zeros((N // nb, Cp2, NBP), f32)
    add_blocks = add_blocks.at[:, :C_out, :nb].set(
        add.reshape(N // nb, nb, C_out).transpose(0, 2, 1).astype(f32))

    # --- per-image lane-sum / lane-broadcast matrices (columns padded nb -> NBP) ---
    img_id = jnp.arange(nbS) // S
    bsum = (img_id[:, None] == jnp.arange(NBP)[None, :]).astype(f32)           # (nbS, NBP)
    bcast = bsum.T                                                             # (NBP, nbS)

    # --- 9 precomputed boundary masks, one row per tap, tiled over the nb images ---
    pos = jnp.arange(S)
    xs, ys = pos % W, pos // W
    rows = []
    for dy in (-1, 0, 1):
        for dx in (-1, 0, 1):
            ok = (xs + dx >= 0) & (xs + dx < W) & (ys + dy >= 0) & (ys + dy < H)
            rows.append(ok)
    tap_masks = jnp.tile(jnp.stack(rows, 0).astype(f32), (1, nb))              # (9, nbS)

    # --- group membership matrices (zero columns for padded channels) ---
    def gmat(G, C, Cp):
        cpg = C // G
        cols = jnp.where(jnp.arange(Cp) < C, jnp.arange(Cp) // cpg, -1)
        return (cols[None, :] == jnp.arange(G)[:, None]).astype(f32)           # (G, Cp)
    M1, M2 = gmat(G1, C_in, Cp1), gmat(G2, C_out, Cp2)

    # --- fused conv weights: (C_out, C_in, 3, 3) -> (Cp2, 9*Cp_in) bf16, K = (tap, channel) ---
    def conv_w(w, Cin, Cpin):
        Cout = w.shape[0]
        wt = jnp.transpose(w.astype(f32), (0, 2, 3, 1))                        # (Cout, 3, 3, Cin)
        wt = jnp.pad(wt, ((0, Cp2 - Cout), (0, 0), (0, 0), (0, Cpin - Cin)))
        return wt.reshape(Cp2, 9 * Cpin).astype(bf16)
    w1 = conv_w(p["conv1_w"], C_in, Cp1)
    w2 = conv_w(p["conv2_w"], C_out, Cp2)

    def col(v, Cp):
        v = jnp.asarray(v, f32).reshape(-1)
        return jnp.pad(v, (0, Cp - v.shape[0])).reshape(Cp, 1)

    has_res = p.get("res_w", None) is not None
    if has_res:
        wres = jnp.pad(p["res_w"].reshape(C_out, C_in).astype(f32),
                       ((0, Cp2 - C_out), (0, Cp1 - C_in)))                    # fp32 skip path
        bres = col(p["res_b"], Cp2)
    else:
        assert C_in == C_out, "identity residual requires in_channels == out_channels"
        wres = jnp.zeros((1, 1), f32)    # dummies, never read (kernel specialized at trace time)
        bres = jnp.zeros((1, 1), f32)

    inputs = [
        x_flat, add_blocks, tap_masks, bsum, bcast,
        col(p["gn1_g"], Cp1), col(p["gn1_b"], Cp1), M1, M1.T, w1,
        col(p["gn2_g"], Cp2), col(p["gn2_b"], Cp2), M2, M2.T, w2, col(p["conv2_b"], Cp2),
        wres, bres,
    ]

    kernel = functools.partial(
        residual_block_kernel, W=W, S=S, nb=nb, cpg1=cpg1, cpg2=cpg2, has_res=has_res)

    # --- VMEM budget derived from the actual tile arithmetic (no hard-coded 48 MiB) ---
    bytes_of = lambda a: int(a.size) * a.dtype.itemsize
    const_bytes = sum(bytes_of(a) for a in inputs[2:])
    io_bytes = nb * S * 2 * (Cp1 + Cp2) + Cp2 * NBP * 4           # one buffer of each pipelined block
    interm_bytes = nbS * (4 * (3 * Cp1 + 5 * Cp2) + 6 * 9 * (Cp1 + Cp2))   # fp32 acts + fp32/bf16 tap stacks
    vmem_limit = int(min(64 << 20,                                 # stay under v7x's 64 MiB physical
                         max(8 << 20, 2 * io_bytes + 2 * const_bytes + 2 * interm_bytes)))

    def build(single_buffer_consts):
        def const_spec(a):
            zeros = (0,) * a.ndim
            if single_buffer_consts:
                # constant across the grid -> no point double-buffering it
                return pl.BlockSpec(a.shape, lambda b, z=zeros: z, pipeline_mode=pl.Buffered(1))
            return pl.BlockSpec(a.shape, lambda b, z=zeros: z)

        in_specs = [
            pl.BlockSpec((nb, Cp1, S), lambda b: (b, 0, 0)),
            pl.BlockSpec((1, Cp2, NBP), lambda b: (b, 0, 0)),
        ] + [const_spec(a) for a in inputs[2:]]

        return pl.pallas_call(
            kernel,
            out_shape=jax.ShapeDtypeStruct((N, Cp2, S), bf16),
            grid=(N // nb,),                                       # >= 2 steps, 'parallel' for megacore
            in_specs=in_specs,
            out_specs=pl.BlockSpec((nb, Cp2, S), lambda b: (b, 0, 0)),
            compiler_params=pltpu.CompilerParams(
                dimension_semantics=("parallel",),
                vmem_limit_bytes=vmem_limit),
        )(*inputs)

    try:
        out = jax.block_until_ready(build(True))
    except Exception:
        # this jax build rejects pipeline_mode=pl.Buffered(1) -> fall back to default buffering
        out = jax.block_until_ready(build(False))

    out = out[:, :C_out, :].reshape(N, C_out, H, W)
    return out.astype(jnp.float32)


# ----------------------------------- pure-JAX reference -----------------------------------

def reference(x, time_emb, cond_emb, p):
    def gn(x, G, gamma, beta):
        N, C, H, W = x.shape
        xg = x.reshape(N, G, -1)
        mean = xg.mean(axis=2, keepdims=True)
        var = ((xg - mean) ** 2).mean(axis=2, keepdims=True)
        xn = ((xg - mean) / jnp.sqrt(var + EPS)).reshape(N, C, H, W)
        return xn * gamma[None, :, None, None] + beta[None, :, None, None]

    def conv(x, w, b, pad):
        out = lax.conv_general_dilated(x, w, (1, 1), [(pad, pad), (pad, pad)],
                                       dimension_numbers=("NCHW", "OIHW", "NCHW"),
                                       precision=lax.Precision.HIGHEST)
        return out + b[None, :, None, None]

    silu = lambda a: a * jax.nn.sigmoid(a)
    C_in, C_out = x.shape[1], p["conv1_w"].shape[0]
    h = conv(silu(gn(x, min(8, C_in), p["gn1_g"], p["gn1_b"])), p["conv1_w"], p["conv1_b"], 1)
    t = time_emb @ p["time_w"].T + p["time_b"]
    h = h + t[:, :, None, None]
    if cond_emb is not None and p.get("cond_w", None) is not None:
        c = cond_emb @ p["cond_w"].T + p["cond_b"]
        h = h + c[:, :, None, None]
    h = conv(silu(gn(h, min(8, C_out), p["gn2_g"], p["gn2_b"])), p["conv2_w"], p["conv2_b"], 1)
    if p.get("res_w", None) is not None:
        res = conv(x, p["res_w"], p["res_b"], 0)
    else:
        res = x
    return h + res


# --------------------------------------------- main ---------------------------------------------

if __name__ == "__main__":
    # C_out = 16 so the second GroupNorm exercises the grouped (channels-per-group > 1) path,
    # and C_in != C_out exercises the 1x1-conv residual path (and the channel-padding path Cp1=8).
    N, C_in, C_out, H, W = 4, 4, 16, 16, 16
    T, D = 32, 16

    key = jax.random.PRNGKey(0)
    ks = jax.random.split(key, 16)
    nrm = lambda k, shape, s=0.1: (s * jax.random.normal(k, shape)).astype(jnp.float32)

    params = {
        "time_w": nrm(ks[0], (C_out, T)),
        "time_b": nrm(ks[1], (C_out,)),
        "cond_w": nrm(ks[2], (C_out, D)),
        "cond_b": nrm(ks[3], (C_out,)),
        "gn1_g": 1.0 + nrm(ks[4], (C_in,)),
        "gn1_b": nrm(ks[5], (C_in,)),
        "conv1_w": nrm(ks[6], (C_out, C_in, 3, 3)),
        "conv1_b": nrm(ks[7], (C_out,)),
        "gn2_g": 1.0 + nrm(ks[8], (C_out,)),
        "gn2_b": nrm(ks[9], (C_out,)),
        "conv2_w": nrm(ks[10], (C_out, C_out, 3, 3)),
        "conv2_b": nrm(ks[11], (C_out,)),
        "res_w": nrm(ks[12], (C_out, C_in, 1, 1)),
        "res_b": nrm(ks[13], (C_out,)),
    }

    x = jax.random.normal(ks[14], (N, C_in, H, W), jnp.float32)
    k_t, k_c = jax.random.split(ks[15])
    time_emb = jax.random.normal(k_t, (N, T), jnp.float32)
    cond_emb = jax.random.normal(k_c, (N, D), jnp.float32)

    out = residual_block_forward(x, time_emb, cond_emb, params, batch_block=2)
    out = jax.block_until_ready(out)

    ref = jax.block_until_ready(reference(x, time_emb, cond_emb, params))
    assert out.shape == (N, C_out, H, W), out.shape
    # bf16 HBM boundary (input + output) and bf16 MXU conv operands vs an all-fp32 gold reference
    # -> relaxed tolerance; GroupNorm stats, residual path and all accumulation remain fp32.
    max_err = float(jnp.max(jnp.abs(out - ref)))
    assert jnp.allclose(out, ref, atol=5e-2, rtol=5e-2), max_err

    print("KERNEL_OK")
</pallas_src>

<mosaic_0001>
module attributes {stable_mosaic.version = 11 : i64} {
  func.func @residual_block_kernel(%arg0: i32, %arg1: memref<2x8x256xbf16, #tpu.memory_space<vmem>>, %arg2: memref<1x16x8xf32, #tpu.memory_space<vmem>>, %arg3: memref<9x512xf32, #tpu.memory_space<vmem>>, %arg4: memref<512x8xf32, #tpu.memory_space<vmem>>, %arg5: memref<8x512xf32, #tpu.memory_space<vmem>>, %arg6: memref<8x1xf32, #tpu.memory_space<vmem>>, %arg7: memref<8x1xf32, #tpu.memory_space<vmem>>, %arg8: memref<4x8xf32, #tpu.memory_space<vmem>>, %arg9: memref<8x4xf32, #tpu.memory_space<vmem>>, %arg10: memref<16x72xbf16, #tpu.memory_space<vmem>>, %arg11: memref<16x1xf32, #tpu.memory_space<vmem>>, %arg12: memref<16x1xf32, #tpu.memory_space<vmem>>, %arg13: memref<8x16xf32, #tpu.memory_space<vmem>>, %arg14: memref<16x8xf32, #tpu.memory_space<vmem>>, %arg15: memref<16x144xbf16, #tpu.memory_space<vmem>>, %arg16: memref<16x1xf32, #tpu.memory_space<vmem>>, %arg17: memref<16x8xf32, #tpu.memory_space<vmem>>, %arg18: memref<16x1xf32, #tpu.memory_space<vmem>>, %arg19: memref<2x16x256xbf16, #tpu.memory_space<vmem>>) attributes {dimension_semantics = [#tpu.dimension_semantics<parallel>], iteration_bounds = array<i64: 2>, scalar_prefetch = 0 : i64, scratch_operands = 0 : i64, tpu.core_type = #tpu.core_type<tc>, window_params = [{transform_indices = @transform_0, window_bounds = array<i64: 2, 8, 256>}, {transform_indices = @transform_1, window_bounds = array<i64: 1, 16, 8>}, {pipeline_mode = #tpu.pipeline_mode<synchronous>, transform_indices = @transform_2, window_bounds = array<i64: 9, 512>}, {pipeline_mode = #tpu.pipeline_mode<synchronous>, transform_indices = @transform_3, window_bounds = array<i64: 512, 8>}, {pipeline_mode = #tpu.pipeline_mode<synchronous>, transform_indices = @transform_4, window_bounds = array<i64: 8, 512>}, {pipeline_mode = #tpu.pipeline_mode<synchronous>, transform_indices = @transform_5, window_bounds = array<i64: 8, 1>}, {pipeline_mode = #tpu.pipeline_mode<synchronous>, transform_indices = @transform_6, window_bounds = array<i64: 8, 1>}, {pipeline_mode = #tpu.pipeline_mode<synchronous>, transform_indices = @transform_7, window_bounds = array<i64: 4, 8>}, {pipeline_mode = #tpu.pipeline_mode<synchronous>, transform_indices = @transform_8, window_bounds = array<i64: 8, 4>}, {pipeline_mode = #tpu.pipeline_mode<synchronous>, transform_indices = @transform_9, window_bounds = array<i64: 16, 72>}, {pipeline_mode = #tpu.pipeline_mode<synchronous>, transform_indices = @transform_10, window_bounds = array<i64: 16, 1>}, {pipeline_mode = #tpu.pipeline_mode<synchronous>, transform_indices = @transform_11, window_bounds = array<i64: 16, 1>}, {pipeline_mode = #tpu.pipeline_mode<synchronous>, transform_indices = @transform_12, window_bounds = array<i64: 8, 16>}, {pipeline_mode = #tpu.pipeline_mode<synchronous>, transform_indices = @transform_13, window_bounds = array<i64: 16, 8>}, {pipeline_mode = #tpu.pipeline_mode<synchronous>, transform_indices = @transform_14, window_bounds = array<i64: 16, 144>}, {pipeline_mode = #tpu.pipeline_mode<synchronous>, transform_indices = @transform_15, window_bounds = array<i64: 16, 1>}, {pipeline_mode = #tpu.pipeline_mode<synchronous>, transform_indices = @transform_16, window_bounds = array<i64: 16, 8>}, {pipeline_mode = #tpu.pipeline_mode<synchronous>, transform_indices = @transform_17, window_bounds = array<i64: 16, 1>}, {transform_indices = @transform_18, window_bounds = array<i64: 2, 16, 256>}]} {
    %c0 = arith.constant 0 : index
    %c0_0 = arith.constant 0 : index
    %c0_1 = arith.constant 0 : index
    %0 = vector.load %arg1[%c0, %c0_0, %c0_1] : memref<2x8x256xbf16, #tpu.memory_space<vmem>>, vector<1x8x256xbf16>
    %1 = vector.shape_cast %0 : vector<1x8x256xbf16> to vector<8x256xbf16>
    %c1 = arith.constant 1 : index
    %c0_2 = arith.constant 0 : index
    %c0_3 = arith.constant 0 : index
    %2 = vector.load %arg1[%c1, %c0_2, %c0_3] : memref<2x8x256xbf16, #tpu.memory_space<vmem>>, vector<1x8x256xbf16>
    %3 = vector.shape_cast %2 : vector<1x8x256xbf16> to vector<8x256xbf16>
    %4 = tpu.concatenate %1, %3 in 1 : vector<8x256xbf16>, vector<8x256xbf16> -> vector<8x512xbf16>
    %5 = arith.extf %4 : vector<8x512xbf16> to vector<8x512xf32>
    %c0_4 = arith.constant 0 : index
    %c0_5 = arith.constant 0 : index
    %6 = vector.load %arg6[%c0_4, %c0_5] : memref<8x1xf32, #tpu.memory_space<vmem>>, vector<8x1xf32>
    %c0_6 = arith.constant 0 : index
    %c0_7 = arith.constant 0 : index
    %7 = vector.load %arg7[%c0_6, %c0_7] : memref<8x1xf32, #tpu.memory_space<vmem>>, vector<8x1xf32>
    %8 = arith.mulf %5, %5 : vector<8x512xf32>
    %9 = tpu.concatenate %5, %8 in 0 : vector<8x512xf32>, vector<8x512xf32> -> vector<16x512xf32>
    %c0_8 = arith.constant 0 : index
    %c0_9 = arith.constant 0 : index
    %10 = vector.load %arg4[%c0_8, %c0_9] : memref<512x8xf32, #tpu.memory_space<vmem>>, vector<512x8xf32>
    %cst = arith.constant dense<0.000000e+00> : vector<16x8xf32>
    %11 = tpu.matmul %9, %10, %cst {dimension_numbers = #tpu.dot_dimension_numbers<[1], [0], [0], [1], [0, 0, 1, 1], [], []>} : vector<16x512xf32>, vector<512x8xf32>, vector<16x8xf32> -> vector<16x8xf32>
    %12 = vector.extract_strided_slice %11 {offsets = [0, 0], sizes = [8, 8], strides = [1, 1]} : vector<16x8xf32> to vector<8x8xf32>
    %cst_10 = arith.constant 3.906250e-03 : f32
    %13 = vector.broadcast %cst_10 : f32 to vector<8x8xf32>
    %14 = arith.mulf %12, %13 : vector<8x8xf32>
    %15 = vector.extract_strided_slice %11 {offsets = [8, 0], sizes = [8, 8], strides = [1, 1]} : vector<16x8xf32> to vector<8x8xf32>
    %cst_11 = arith.constant 3.906250e-03 : f32
    %16 = vector.broadcast %cst_11 : f32 to vector<8x8xf32>
    %17 = arith.mulf %15, %16 : vector<8x8xf32>
    %18 = arith.mulf %14, %14 : vector<8x8xf32>
    %19 = arith.subf %17, %18 : vector<8x8xf32>
    %cst_12 = arith.constant 9.99999974E-6 : f32
    %20 = vector.broadcast %cst_12 : f32 to vector<8x8xf32>
    %21 = arith.addf %19, %20 : vector<8x8xf32>
    %22 = math.rsqrt %21 : vector<8x8xf32>
    %23 = vector.broadcast %6 : vector<8x1xf32> to vector<8x8xf32>
    %24 = arith.mulf %22, %23 : vector<8x8xf32>
    %25 = arith.mulf %14, %24 : vector<8x8xf32>
    %26 = vector.broadcast %7 : vector<8x1xf32> to vector<8x8xf32>
    %27 = arith.subf %26, %25 : vector<8x8xf32>
    %28 = tpu.concatenate %24, %27 in 0 : vector<8x8xf32>, vector<8x8xf32> -> vector<16x8xf32>
    %c0_13 = arith.constant 0 : index
    %c0_14 = arith.constant 0 : index
    %29 = vector.load %arg5[%c0_13, %c0_14] : memref<8x512xf32, #tpu.memory_space<vmem>>, vector<8x512xf32>
    %cst_15 = arith.constant dense<0.000000e+00> : vector<16x512xf32>
    %30 = tpu.matmul %28, %29, %cst_15 {dimension_numbers = #tpu.dot_dimension_numbers<[1], [0], [0], [1], [0, 0, 1, 1], [], []>} : vector<16x8xf32>, vector<8x512xf32>, vector<16x512xf32> -> vector<16x512xf32>
    %31 = vector.extract_strided_slice %30 {offsets = [0, 0], sizes = [8, 512], strides = [1, 1]} : vector<16x512xf32> to vector<8x512xf32>
    %32 = arith.mulf %5, %31 : vector<8x512xf32>
    %33 = vector.extract_strided_slice %30 {offsets = [8, 0], sizes = [8, 512], strides = [1, 1]} : vector<16x512xf32> to vector<8x512xf32>
    %34 = arith.addf %32, %33 : vector<8x512xf32>
    %35 = arith.negf %34 : vector<8x512xf32>
    %36 = math.exp %35 : vector<8x512xf32>
    %cst_16 = arith.constant 1.000000e+00 : f32
    %37 = vector.broadcast %cst_16 : f32 to vector<8x512xf32>
    %38 = arith.addf %37, %36 : vector<8x512xf32>
    %39 = arith.divf %37, %38 : vector<8x512xf32>
    %40 = arith.mulf %34, %39 : vector<8x512xf32>
    %c17_i32 = arith.constant 17 : i32
    %41 = tpu.dynamic_rotate %40 by %c17_i32 dim 1 : vector<8x512xf32>, i32 -> vector<8x512xf32>
    %c0_17 = arith.constant 0 : index
    %c0_18 = arith.constant 0 : index
    %42 = vector.load %arg3[%c0_17, %c0_18] : memref<9x512xf32, #tpu.memory_space<vmem>>, vector<1x512xf32>
    %43 = vector.shape_cast %42 : vector<1x512xf32> to vector<512xf32>
    %44 = vector.shape_cast %43 : vector<512xf32> to vector<1x512xf32>
    %45 = vector.broadcast %44 : vector<1x512xf32> to vector<8x512xf32>
    %46 = arith.mulf %41, %45 : vector<8x512xf32>
    %c16_i32 = arith.constant 16 : i32
    %47 = tpu.dynamic_rotate %40 by %c16_i32 dim 1 : vector<8x512xf32>, i32 -> vector<8x512xf32>
    %c1_19 = arith.constant 1 : index
    %c0_20 = arith.constant 0 : index
    %48 = vector.load %arg3[%c1_19, %c0_20] : memref<9x512xf32, #tpu.memory_space<vmem>>, vector<1x512xf32>
    %49 = vector.shape_cast %48 : vector<1x512xf32> to vector<512xf32>
    %50 = vector.shape_cast %49 : vector<512xf32> to vector<1x512xf32>
    %51 = vector.broadcast %50 : vector<1x512xf32> to vector<8x512xf32>
    %52 = arith.mulf %47, %51 : vector<8x512xf32>
    %c15_i32 = arith.constant 15 : i32
    %53 = tpu.dynamic_rotate %40 by %c15_i32 dim 1 : vector<8x512xf32>, i32 -> vector<8x512xf32>
    %c2 = arith.constant 2 : index
    %c0_21 = arith.constant 0 : index
    %54 = vector.load %arg3[%c2, %c0_21] : memref<9x512xf32, #tpu.memory_space<vmem>>, vector<1x512xf32>
    %55 = vector.shape_cast %54 : vector<1x512xf32> to vector<512xf32>
    %56 = vector.shape_cast %55 : vector<512xf32> to vector<1x512xf32>
    %57 = vector.broadcast %56 : vector<1x512xf32> to vector<8x512xf32>
    %58 = arith.mulf %53, %57 : vector<8x512xf32>
    %c1_i32 = arith.constant 1 : i32
    %59 = tpu.dynamic_rotate %40 by %c1_i32 dim 1 : vector<8x512xf32>, i32 -> vector<8x512xf32>
    %c3 = arith.constant 3 : index
    %c0_22 = arith.constant 0 : index
    %60 = vector.load %arg3[%c3, %c0_22] : memref<9x512xf32, #tpu.memory_space<vmem>>, vector<1x512xf32>
    %61 = vector.shape_cast %60 : vector<1x512xf32> to vector<512xf32>
    %62 = vector.shape_cast %61 : vector<512xf32> to vector<1x512xf32>
    %63 = vector.broadcast %62 : vector<1x512xf32> to vector<8x512xf32>
    %64 = arith.mulf %59, %63 : vector<8x512xf32>
    %c511_i32 = arith.constant 511 : i32
    %65 = tpu.dynamic_rotate %40 by %c511_i32 dim 1 : vector<8x512xf32>, i32 -> vector<8x512xf32>
    %c5 = arith.constant 5 : index
    %c0_23 = arith.constant 0 : index
    %66 = vector.load %arg3[%c5, %c0_23] : memref<9x512xf32, #tpu.memory_space<vmem>>, vector<1x512xf32>
    %67 = vector.shape_cast %66 : vector<1x512xf32> to vector<512xf32>
    %68 = vector.shape_cast %67 : vector<512xf32> to vector<1x512xf32>
    %69 = vector.broadcast %68 : vector<1x512xf32> to vector<8x512xf32>
    %70 = arith.mulf %65, %69 : vector<8x512xf32>
    %c497_i32 = arith.constant 497 : i32
    %71 = tpu.dynamic_rotate %40 by %c497_i32 dim 1 : vector<8x512xf32>, i32 -> vector<8x512xf32>
    %c6 = arith.constant 6 : index
    %c0_24 = arith.constant 0 : index
    %72 = vector.load %arg3[%c6, %c0_24] : memref<9x512xf32, #tpu.memory_space<vmem>>, vector<1x512xf32>
    %73 = vector.shape_cast %72 : vector<1x512xf32> to vector<512xf32>
    %74 = vector.shape_cast %73 : vector<512xf32> to vector<1x512xf32>
    %75 = vector.broadcast %74 : vector<1x512xf32> to vector<8x512xf32>
    %76 = arith.mulf %71, %75 : vector<8x512xf32>
    %c496_i32 = arith.constant 496 : i32
    %77 = tpu.dynamic_rotate %40 by %c496_i32 dim 1 : vector<8x512xf32>, i32 -> vector<8x512xf32>
    %c7 = arith.constant 7 : index
    %c0_25 = arith.constant 0 : index
    %78 = vector.load %arg3[%c7, %c0_25] : memref<9x512xf32, #tpu.memory_space<vmem>>, vector<1x512xf32>
    %79 = vector.shape_cast %78 : vector<1x512xf32> to vector<512xf32>
    %80 = vector.shape_cast %79 : vector<512xf32> to vector<1x512xf32>
    %81 = vector.broadcast %80 : vector<1x512xf32> to vector<8x512xf32>
    %82 = arith.mulf %77, %81 : vector<8x512xf32>
    %c495_i32 = arith.constant 495 : i32
    %83 = tpu.dynamic_rotate %40 by %c495_i32 dim 1 : vector<8x512xf32>, i32 -> vector<8x512xf32>
    %c8 = arith.constant 8 : index
    %c0_26 = arith.constant 0 : index
    %84 = vector.load %arg3[%c8, %c0_26] : memref<9x512xf32, #tpu.memory_space<vmem>>, vector<1x512xf32>
    %85 = vector.shape_cast %84 : vector<1x512xf32> to vector<512xf32>
    %86 = vector.shape_cast %85 : vector<512xf32> to vector<1x512xf32>
    %87 = vector.broadcast %86 : vector<1x512xf32> to vector<8x512xf32>
    %88 = arith.mulf %83, %87 : vector<8x512xf32>
    %89 = tpu.concatenate %46, %52, %58, %64, %40, %70, %76, %82, %88 in 0 : vector<8x512xf32>, vector<8x512xf32>, vector<8x512xf32>, vector<8x512xf32>, vector<8x512xf32>, vector<8x512xf32>, vector<8x512xf32>, vector<8x512xf32>, vector<8x512xf32> -> vector<72x512xf32>
    %90 = arith.truncf %89 : vector<72x512xf32> to vector<72x512xbf16>
    %c0_27 = arith.constant 0 : index
    %c0_28 = arith.constant 0 : index
    %91 = vector.load %arg10[%c0_27, %c0_28] : memref<16x72xbf16, #tpu.memory_space<vmem>>, vector<16x72xbf16>
    %cst_29 = arith.constant dense<0.000000e+00> : vector<16x512xf32>
    %92 = tpu.matmul %91, %90, %cst_29 {dimension_numbers = #tpu.dot_dimension_numbers<[1], [0], [0], [1], [0, 0, 1, 1], [], []>} : vector<16x72xbf16>, vector<72x512xbf16>, vector<16x512xf32> -> vector<16x512xf32>
    %c0_30 = arith.constant 0 : index
    %c0_31 = arith.constant 0 : index
    %c0_32 = arith.constant 0 : index
    %93 = vector.load %arg2[%c0_30, %c0_31, %c0_32] : memref<1x16x8xf32, #tpu.memory_space<vmem>>, vector<1x16x8xf32>
    %94 = vector.shape_cast %93 : vector<1x16x8xf32> to vector<16x8xf32>
    %c0_33 = arith.constant 0 : index
    %c0_34 = arith.constant 0 : index
    %95 = vector.load %arg5[%c0_33, %c0_34] : memref<8x512xf32, #tpu.memory_space<vmem>>, vector<8x512xf32>
    %cst_35 = arith.constant dense<0.000000e+00> : vector<16x512xf32>
    %96 = tpu.matmul %94, %95, %cst_35 {dimension_numbers = #tpu.dot_dimension_numbers<[1], [0], [0], [1], [0, 0, 1, 1], [], []>} : vector<16x8xf32>, vector<8x512xf32>, vector<16x512xf32> -> vector<16x512xf32>
    %97 = arith.addf %92, %96 : vector<16x512xf32>
    %c0_36 = arith.constant 0 : index
    %c0_37 = arith.constant 0 : index
    %98 = vector.load %arg11[%c0_36, %c0_37] : memref<16x1xf32, #tpu.memory_space<vmem>>, vector<16x1xf32>
    %c0_38 = arith.constant 0 : index
    %c0_39 = arith.constant 0 : index
    %99 = vector.load %arg12[%c0_38, %c0_39] : memref<16x1xf32, #tpu.memory_space<vmem>>, vector<16x1xf32>
    %c0_40 = arith.constant 0 : index
    %c0_41 = arith.constant 0 : index
    %100 = vector.load %arg13[%c0_40, %c0_41] : memref<8x16xf32, #tpu.memory_space<vmem>>, vector<8x16xf32>
    %c0_42 = arith.constant 0 : index
    %c0_43 = arith.constant 0 : index
    %101 = vector.load %arg14[%c0_42, %c0_43] : memref<16x8xf32, #tpu.memory_space<vmem>>, vector<16x8xf32>
    %102 = arith.mulf %97, %97 : vector<16x512xf32>
    %103 = tpu.concatenate %97, %102 in 0 : vector<16x512xf32>, vector<16x512xf32> -> vector<32x512xf32>
    %c0_44 = arith.constant 0 : index
    %c0_45 = arith.constant 0 : index
    %104 = vector.load %arg4[%c0_44, %c0_45] : memref<512x8xf32, #tpu.memory_space<vmem>>, vector<512x8xf32>
    %cst_46 = arith.constant dense<0.000000e+00> : vector<32x8xf32>
    %105 = tpu.matmul %103, %104, %cst_46 {dimension_numbers = #tpu.dot_dimension_numbers<[1], [0], [0], [1], [0, 0, 1, 1], [], []>} : vector<32x512xf32>, vector<512x8xf32>, vector<32x8xf32> -> vector<32x8xf32>
    %106 = vector.extract_strided_slice %105 {offsets = [0, 0], sizes = [16, 8], strides = [1, 1]} : vector<32x8xf32> to vector<16x8xf32>
    %cst_47 = arith.constant 0.001953125 : f32
    %107 = vector.broadcast %cst_47 : f32 to vector<16x8xf32>
    %108 = arith.mulf %106, %107 : vector<16x8xf32>
    %109 = vector.extract_strided_slice %105 {offsets = [16, 0], sizes = [16, 8], strides = [1, 1]} : vector<32x8xf32> to vector<16x8xf32>
    %cst_48 = arith.constant 0.001953125 : f32
    %110 = vector.broadcast %cst_48 : f32 to vector<16x8xf32>
    %111 = arith.mulf %109, %110 : vector<16x8xf32>
    %cst_49 = arith.constant dense<0.000000e+00> : vector<8x8xf32>
    %112 = tpu.matmul %100, %108, %cst_49 {dimension_numbers = #tpu.dot_dimension_numbers<[1], [0], [0], [1], [0, 0, 1, 1], [], []>} : vector<8x16xf32>, vector<16x8xf32>, vector<8x8xf32> -> vector<8x8xf32>
    %cst_50 = arith.constant dense<0.000000e+00> : vector<8x8xf32>
    %113 = tpu.matmul %100, %111, %cst_50 {dimension_numbers = #tpu.dot_dimension_numbers<[1], [0], [0], [1], [0, 0, 1, 1], [], []>} : vector<8x16xf32>, vector<16x8xf32>, vector<8x8xf32> -> vector<8x8xf32>
    %114 = arith.mulf %112, %112 : vector<8x8xf32>
    %115 = arith.subf %113, %114 : vector<8x8xf32>
    %cst_51 = arith.constant 9.99999974E-6 : f32
    %116 = vector.broadcast %cst_51 : f32 to vector<8x8xf32>
    %117 = arith.addf %115, %116 : vector<8x8xf32>
    %118 = math.rsqrt %117 : vector<8x8xf32>
    %cst_52 = arith.constant dense<0.000000e+00> : vector<16x8xf32>
    %119 = tpu.matmul %101, %112, %cst_52 {dimension_numbers = #tpu.dot_dimension_numbers<[1], [0], [0], [1], [0, 0, 1, 1], [], []>} : vector<16x8xf32>, vector<8x8xf32>, vector<16x8xf32> -> vector<16x8xf32>
    %cst_53 = arith.constant dense<0.000000e+00> : vector<16x8xf32>
    %120 = tpu.matmul %101, %118, %cst_53 {dimension_numbers = #tpu.dot_dimension_numbers<[1], [0], [0], [1], [0, 0, 1, 1], [], []>} : vector<16x8xf32>, vector<8x8xf32>, vector<16x8xf32> -> vector<16x8xf32>
    %121 = vector.broadcast %98 : vector<16x1xf32> to vector<16x8xf32>
    %122 = arith.mulf %120, %121 : vector<16x8xf32>
    %123 = arith.mulf %119, %122 : vector<16x8xf32>
    %124 = vector.broadcast %99 : vector<16x1xf32> to vector<16x8xf32>
    %125 = arith.subf %124, %123 : vector<16x8xf32>
    %126 = tpu.concatenate %122, %125 in 0 : vector<16x8xf32>, vector<16x8xf32> -> vector<32x8xf32>
    %c0_54 = arith.constant 0 : index
    %c0_55 = arith.constant 0 : index
    %127 = vector.load %arg5[%c0_54, %c0_55] : memref<8x512xf32, #tpu.memory_space<vmem>>, vector<8x512xf32>
    %cst_56 = arith.constant dense<0.000000e+00> : vector<32x512xf32>
    %128 = tpu.matmul %126, %127, %cst_56 {dimension_numbers = #tpu.dot_dimension_numbers<[1], [0], [0], [1], [0, 0, 1, 1], [], []>} : vector<32x8xf32>, vector<8x512xf32>, vector<32x512xf32> -> vector<32x512xf32>
    %129 = vector.extract_strided_slice %128 {offsets = [0, 0], sizes = [16, 512], strides = [1, 1]} : vector<32x512xf32> to vector<16x512xf32>
    %130 = arith.mulf %97, %129 : vector<16x512xf32>
    %131 = vector.extract_strided_slice %128 {offsets = [16, 0], sizes = [16, 512], strides = [1, 1]} : vector<32x512xf32> to vector<16x512xf32>
    %132 = arith.addf %130, %131 : vector<16x512xf32>
    %133 = arith.negf %132 : vector<16x512xf32>
    %134 = math.exp %133 : vector<16x512xf32>
    %cst_57 = arith.constant 1.000000e+00 : f32
    %135 = vector.broadcast %cst_57 : f32 to vector<16x512xf32>
    %136 = arith.addf %135, %134 : vector<16x512xf32>
    %137 = arith.divf %135, %136 : vector<16x512xf32>
    %138 = arith.mulf %132, %137 : vector<16x512xf32>
    %c17_i32_58 = arith.constant 17 : i32
    %139 = tpu.dynamic_rotate %138 by %c17_i32_58 dim 1 : vector<16x512xf32>, i32 -> vector<16x512xf32>
    %c0_59 = arith.constant 0 : index
    %c0_60 = arith.constant 0 : index
    %140 = vector.load %arg3[%c0_59, %c0_60] : memref<9x512xf32, #tpu.memory_space<vmem>>, vector<1x512xf32>
    %141 = vector.shape_cast %140 : vector<1x512xf32> to vector<512xf32>
    %142 = vector.shape_cast %141 : vector<512xf32> to vector<1x512xf32>
    %143 = vector.broadcast %142 : vector<1x512xf32> to vector<16x512xf32>
    %144 = arith.mulf %139, %143 : vector<16x512xf32>
    %c16_i32_61 = arith.constant 16 : i32
    %145 = tpu.dynamic_rotate %138 by %c16_i32_61 dim 1 : vector<16x512xf32>, i32 -> vector<16x512xf32>
    %c1_62 = arith.constant 1 : index
    %c0_63 = arith.constant 0 : index
    %146 = vector.load %arg3[%c1_62, %c0_63] : memref<9x512xf32, #tpu.memory_space<vmem>>, vector<1x512xf32>
    %147 = vector.shape_cast %146 : vector<1x512xf32> to vector<512xf32>
    %148 = vector.shape_cast %147 : vector<512xf32> to vector<1x512xf32>
    %149 = vector.broadcast %148 : vector<1x512xf32> to vector<16x512xf32>
    %150 = arith.mulf %145, %149 : vector<16x512xf32>
    %c15_i32_64 = arith.constant 15 : i32
    %151 = tpu.dynamic_rotate %138 by %c15_i32_64 dim 1 : vector<16x512xf32>, i32 -> vector<16x512xf32>
    %c2_65 = arith.constant 2 : index
    %c0_66 = arith.constant 0 : index
    %152 = vector.load %arg3[%c2_65, %c0_66] : memref<9x512xf32, #tpu.memory_space<vmem>>, vector<1x512xf32>
    %153 = vector.shape_cast %152 : vector<1x512xf32> to vector<512xf32>
    %154 = vector.shape_cast %153 : vector<512xf32> to vector<1x512xf32>
    %155 = vector.broadcast %154 : vector<1x512xf32> to vector<16x512xf32>
    %156 = arith.mulf %151, %155 : vector<16x512xf32>
    %c1_i32_67 = arith.constant 1 : i32
    %157 = tpu.dynamic_rotate %138 by %c1_i32_67 dim 1 : vector<16x512xf32>, i32 -> vector<16x512xf32>
    %c3_68 = arith.constant 3 : index
    %c0_69 = arith.constant 0 : index
    %158 = vector.load %arg3[%c3_68, %c0_69] : memref<9x512xf32, #tpu.memory_space<vmem>>, vector<1x512xf32>
    %159 = vector.shape_cast %158 : vector<1x512xf32> to vector<512xf32>
    %160 = vector.shape_cast %159 : vector<512xf32> to vector<1x512xf32>
    %161 = vector.broadcast %160 : vector<1x512xf32> to vector<16x512xf32>
    %162 = arith.mulf %157, %161 : vector<16x512xf32>
    %c511_i32_70 = arith.constant 511 : i32
    %163 = tpu.dynamic_rotate %138 by %c511_i32_70 dim 1 : vector<16x512xf32>, i32 -> vector<16x512xf32>
    %c5_71 = arith.constant 5 : index
    %c0_72 = arith.constant 0 : index
    %164 = vector.load %arg3[%c5_71, %c0_72] : memref<9x512xf32, #tpu.memory_space<vmem>>, vector<1x512xf32>
    %165 = vector.shape_cast %164 : vector<1x512xf32> to vector<512xf32>
    %166 = vector.shape_cast %165 : vector<512xf32> to vector<1x512xf32>
    %167 = vector.broadcast %166 : vector<1x512xf32> to vector<16x512xf32>
    %168 = arith.mulf %163, %167 : vector<16x512xf32>
    %c497_i32_73 = arith.constant 497 : i32
    %169 = tpu.dynamic_rotate %138 by %c497_i32_73 dim 1 : vector<16x512xf32>, i32 -> vector<16x512xf32>
    %c6_74 = arith.constant 6 : index
    %c0_75 = arith.constant 0 : index
    %170 = vector.load %arg3[%c6_74, %c0_75] : memref<9x512xf32, #tpu.memory_space<vmem>>, vector<1x512xf32>
    %171 = vector.shape_cast %170 : vector<1x512xf32> to vector<512xf32>
    %172 = vector.shape_cast %171 : vector<512xf32> to vector<1x512xf32>
    %173 = vector.broadcast %172 : vector<1x512xf32> to vector<16x512xf32>
    %174 = arith.mulf %169, %173 : vector<16x512xf32>
    %c496_i32_76 = arith.constant 496 : i32
    %175 = tpu.dynamic_rotate %138 by %c496_i32_76 dim 1 : vector<16x512xf32>, i32 -> vector<16x512xf32>
    %c7_77 = arith.constant 7 : index
    %c0_78 = arith.constant 0 : index
    %176 = vector.load %arg3[%c7_77, %c0_78] : memref<9x512xf32, #tpu.memory_space<vmem>>, vector<1x512xf32>
    %177 = vector.shape_cast %176 : vector<1x512xf32> to vector<512xf32>
    %178 = vector.shape_cast %177 : vector<512xf32> to vector<1x512xf32>
    %179 = vector.broadcast %178 : vector<1x512xf32> to vector<16x512xf32>
    %180 = arith.mulf %175, %179 : vector<16x512xf32>
    %c495_i32_79 = arith.constant 495 : i32
    %181 = tpu.dynamic_rotate %138 by %c495_i32_79 dim 1 : vector<16x512xf32>, i32 -> vector<16x512xf32>
    %c8_80 = arith.constant 8 : index
    %c0_81 = arith.constant 0 : index
    %182 = vector.load %arg3[%c8_80, %c0_81] : memref<9x512xf32, #tpu.memory_space<vmem>>, vector<1x512xf32>
    %183 = vector.shape_cast %182 : vector<1x512xf32> to vector<512xf32>
    %184 = vector.shape_cast %183 : vector<512xf32> to vector<1x512xf32>
    %185 = vector.broadcast %184 : vector<1x512xf32> to vector<16x512xf32>
    %186 = arith.mulf %181, %185 : vector<16x512xf32>
    %187 = tpu.concatenate %144, %150, %156, %162, %138, %168, %174, %180, %186 in 0 : vector<16x512xf32>, vector<16x512xf32>, vector<16x512xf32>, vector<16x512xf32>, vector<16x512xf32>, vector<16x512xf32>, vector<16x512xf32>, vector<16x512xf32>, vector<16x512xf32> -> vector<144x512xf32>
    %188 = arith.truncf %187 : vector<144x512xf32> to vector<144x512xbf16>
    %c0_82 = arith.constant 0 : index
    %c0_83 = arith.constant 0 : index
    %189 = vector.load %arg15[%c0_82, %c0_83] : memref<16x144xbf16, #tpu.memory_space<vmem>>, vector<16x144xbf16>
    %cst_84 = arith.constant dense<0.000000e+00> : vector<16x512xf32>
    %190 = tpu.matmul %189, %188, %cst_84 {dimension_numbers = #tpu.dot_dimension_numbers<[1], [0], [0], [1], [0, 0, 1, 1], [], []>} : vector<16x144xbf16>, vector<144x512xbf16>, vector<16x512xf32> -> vector<16x512xf32>
    %c0_85 = arith.constant 0 : index
    %c0_86 = arith.constant 0 : index
    %191 = vector.load %arg16[%c0_85, %c0_86] : memref<16x1xf32, #tpu.memory_space<vmem>>, vector<16x1xf32>
    %192 = vector.broadcast %191 : vector<16x1xf32> to vector<16x512xf32>
    %193 = arith.addf %190, %192 : vector<16x512xf32>
    %c0_87 = arith.constant 0 : index
    %c0_88 = arith.constant 0 : index
    %194 = vector.load %arg17[%c0_87, %c0_88] : memref<16x8xf32, #tpu.memory_space<vmem>>, vector<16x8xf32>
    %cst_89 = arith.constant dense<0.000000e+00> : vector<16x512xf32>
    %195 = tpu.matmul %194, %5, %cst_89 {dimension_numbers = #tpu.dot_dimension_numbers<[1], [0], [0], [1], [0, 0, 1, 1], [], []>} : vector<16x8xf32>, vector<8x512xf32>, vector<16x512xf32> -> vector<16x512xf32>
    %c0_90 = arith.constant 0 : index
    %c0_91 = arith.constant 0 : index
    %196 = vector.load %arg18[%c0_90, %c0_91] : memref<16x1xf32, #tpu.memory_space<vmem>>, vector<16x1xf32>
    %197 = vector.broadcast %196 : vector<16x1xf32> to vector<16x512xf32>
    %198 = arith.addf %195, %197 : vector<16x512xf32>
    %199 = arith.addf %193, %198 : vector<16x512xf32>
    %200 = arith.truncf %199 : vector<16x512xf32> to vector<16x512xbf16>
    %201 = vector.extract_strided_slice %200 {offsets = [0, 0], sizes = [16, 256], strides = [1, 1]} : vector<16x512xbf16> to vector<16x256xbf16>
    %c0_92 = arith.constant 0 : index
    %c0_93 = arith.constant 0 : index
    %c0_94 = arith.constant 0 : index
    %202 = vector.load %arg19[%c0_92, %c0_93, %c0_94] : memref<2x16x256xbf16, #tpu.memory_space<vmem>>, vector<1x16x256xbf16>
    %203 = vector.shape_cast %202 : vector<1x16x256xbf16> to vector<16x256xbf16>
    %204 = vector.shape_cast %201 : vector<16x256xbf16> to vector<1x16x256xbf16>
    tpu.vector_store %arg19[%c0_92, %c0_93, %c0_94], %204 {strides = array<i32>} : memref<2x16x256xbf16, #tpu.memory_space<vmem>>, vector<1x16x256xbf16>,
    %205 = vector.extract_strided_slice %200 {offsets = [0, 256], sizes = [16, 256], strides = [1, 1]} : vector<16x512xbf16> to vector<16x256xbf16>
    %c1_95 = arith.constant 1 : index
    %c0_96 = arith.constant 0 : index
    %c0_97 = arith.constant 0 : index
    %206 = vector.load %arg19[%c1_95, %c0_96, %c0_97] : memref<2x16x256xbf16, #tpu.memory_space<vmem>>, vector<1x16x256xbf16>
    %207 = vector.shape_cast %206 : vector<1x16x256xbf16> to vector<16x256xbf16>
    %208 = vector.shape_cast %205 : vector<16x256xbf16> to vector<1x16x256xbf16>
    tpu.vector_store %arg19[%c1_95, %c0_96, %c0_97], %208 {strides = array<i32>} : memref<2x16x256xbf16, #tpu.memory_space<vmem>>, vector<1x16x256xbf16>,
    return
  }
  func.func @transform_0(%arg0: i32) -> (i32, i32, i32) {
    %c0_i32 = arith.constant 0 : i32
    %c0_i32_0 = arith.constant 0 : i32
    %c0_i32_1 = arith.constant 0 : i32
    return %arg0, %c0_i32, %c0_i32_0 : i32, i32, i32
  }
  func.func @transform_1(%arg0: i32) -> (i32, i32, i32) {
    %c0_i32 = arith.constant 0 : i32
    %c0_i32_0 = arith.constant 0 : i32
    %c0_i32_1 = arith.constant 0 : i32
    return %arg0, %c0_i32, %c0_i32_0 : i32, i32, i32
  }
  func.func @transform_2(%arg0: i32) -> (i32, i32) {
    %c0_i32 = arith.constant 0 : i32
    %c0_i32_0 = arith.constant 0 : i32
    %c0_i32_1 = arith.constant 0 : i32
    return %c0_i32, %c0_i32_0 : i32, i32
  }
  func.func @transform_3(%arg0: i32) -> (i32, i32) {
    %c0_i32 = arith.constant 0 : i32
    %c0_i32_0 = arith.constant 0 : i32
    %c0_i32_1 = arith.constant 0 : i32
    return %c0_i32, %c0_i32_0 : i32, i32
  }
  func.func @transform_4(%arg0: i32) -> (i32, i32) {
    %c0_i32 = arith.constant 0 : i32
    %c0_i32_0 = arith.constant 0 : i32
    %c0_i32_1 = arith.constant 0 : i32
    return %c0_i32, %c0_i32_0 : i32, i32
  }
  func.func @transform_5(%arg0: i32) -> (i32, i32) {
    %c0_i32 = arith.constant 0 : i32
    %c0_i32_0 = arith.constant 0 : i32
    %c0_i32_1 = arith.constant 0 : i32
    return %c0_i32, %c0_i32_0 : i32, i32
  }
  func.func @transform_6(%arg0: i32) -> (i32, i32) {
    %c0_i32 = arith.constant 0 : i32
    %c0_i32_0 = arith.constant 0 : i32
    %c0_i32_1 = arith.constant 0 : i32
    return %c0_i32, %c0_i32_0 : i32, i32
  }
  func.func @transform_7(%arg0: i32) -> (i32, i32) {
    %c0_i32 = arith.constant 0 : i32
    %c0_i32_0 = arith.constant 0 : i32
    %c0_i32_1 = arith.constant 0 : i32
    return %c0_i32, %c0_i32_0 : i32, i32
  }
  func.func @transform_8(%arg0: i32) -> (i32, i32) {
    %c0_i32 = arith.constant 0 : i32
    %c0_i32_0 = arith.constant 0 : i32
    %c0_i32_1 = arith.constant 0 : i32
    return %c0_i32, %c0_i32_0 : i32, i32
  }
  func.func @transform_9(%arg0: i32) -> (i32, i32) {
    %c0_i32 = arith.constant 0 : i32
    %c0_i32_0 = arith.constant 0 : i32
    %c0_i32_1 = arith.constant 0 : i32
    return %c0_i32, %c0_i32_0 : i32, i32
  }
  func.func @transform_10(%arg0: i32) -> (i32, i32) {
    %c0_i32 = arith.constant 0 : i32
    %c0_i32_0 = arith.constant 0 : i32
    %c0_i32_1 = arith.constant 0 : i32
    return %c0_i32, %c0_i32_0 : i32, i32
  }
  func.func @transform_11(%arg0: i32) -> (i32, i32) {
    %c0_i32 = arith.constant 0 : i32
    %c0_i32_0 = arith.constant 0 : i32
    %c0_i32_1 = arith.constant 0 : i32
    return %c0_i32, %c0_i32_0 : i32, i32
  }
  func.func @transform_12(%arg0: i32) -> (i32, i32) {
    %c0_i32 = arith.constant 0 : i32
    %c0_i32_0 = arith.constant 0 : i32
    %c0_i32_1 = arith.constant 0 : i32
    return %c0_i32, %c0_i32_0 : i32, i32
  }
  func.func @transform_13(%arg0: i32) -> (i32, i32) {
    %c0_i32 = arith.constant 0 : i32
    %c0_i32_0 = arith.constant 0 : i32
    %c0_i32_1 = arith.constant 0 : i32
    return %c0_i32, %c0_i32_0 : i32, i32
  }
  func.func @transform_14(%arg0: i32) -> (i32, i32) {
    %c0_i32 = arith.constant 0 : i32
    %c0_i32_0 = arith.constant 0 : i32
    %c0_i32_1 = arith.constant 0 : i32
    return %c0_i32, %c0_i32_0 : i32, i32
  }
  func.func @transform_15(%arg0: i32) -> (i32, i32) {
    %c0_i32 = arith.constant 0 : i32
    %c0_i32_0 = arith.constant 0 : i32
    %c0_i32_1 = arith.constant 0 : i32
    return %c0_i32, %c0_i32_0 : i32, i32
  }
  func.func @transform_16(%arg0: i32) -> (i32, i32) {
    %c0_i32 = arith.constant 0 : i32
    %c0_i32_0 = arith.constant 0 : i32
    %c0_i32_1 = arith.constant 0 : i32
    return %c0_i32, %c0_i32_0 : i32, i32
  }
  func.func @transform_17(%arg0: i32) -> (i32, i32) {
    %c0_i32 = arith.constant 0 : i32
    %c0_i32_0 = arith.constant 0 : i32
    %c0_i32_1 = arith.constant 0 : i32
    return %c0_i32, %c0_i32_0 : i32, i32
  }
  func.func @transform_18(%arg0: i32) -> (i32, i32, i32) {
    %c0_i32 = arith.constant 0 : i32
    %c0_i32_0 = arith.constant 0 : i32
    %c0_i32_1 = arith.constant 0 : i32
    return %arg0, %c0_i32, %c0_i32_0 : i32, i32, i32
  }
}

module attributes {stable_mosaic.version = 11 : i64} {
  func.func @residual_block_kernel(%arg0: i32, %arg1: memref<2x8x256xbf16, #tpu.memory_space<vmem>>, %arg2: memref<1x16x8xf32, #tpu.memory_space<vmem>>, %arg3: memref<9x512xf32, #tpu.memory_space<vmem>>, %arg4: memref<512x8xf32, #tpu.memory_space<vmem>>, %arg5: memref<8x512xf32, #tpu.memory_space<vmem>>, %arg6: memref<8x1xf32, #tpu.memory_space<vmem>>, %arg7: memref<8x1xf32, #tpu.memory_space<vmem>>, %arg8: memref<4x8xf32, #tpu.memory_space<vmem>>, %arg9: memref<8x4xf32, #tpu.memory_space<vmem>>, %arg10: memref<16x72xbf16, #tpu.memory_space<vmem>>, %arg11: memref<16x1xf32, #tpu.memory_space<vmem>>, %arg12: memref<16x1xf32, #tpu.memory_space<vmem>>, %arg13: memref<8x16xf32, #tpu.memory_space<vmem>>, %arg14: memref<16x8xf32, #tpu.memory_space<vmem>>, %arg15: memref<16x144xbf16, #tpu.memory_space<vmem>>, %arg16: memref<16x1xf32, #tpu.memory_space<vmem>>, %arg17: memref<16x8xf32, #tpu.memory_space<vmem>>, %arg18: memref<16x1xf32, #tpu.memory_space<vmem>>, %arg19: memref<2x16x256xbf16, #tpu.memory_space<vmem>>) attributes {dimension_semantics = [#tpu.dimension_semantics<parallel>], iteration_bounds = array<i64: 2>, scalar_prefetch = 0 : i64, scratch_operands = 0 : i64, tpu.core_type = #tpu.core_type<tc>, window_params = [{transform_indices = @transform_0, window_bounds = array<i64: 2, 8, 256>}, {transform_indices = @transform_1, window_bounds = array<i64: 1, 16, 8>}, {pipeline_mode = #tpu.pipeline_mode<synchronous>, transform_indices = @transform_2, window_bounds = array<i64: 9, 512>}, {pipeline_mode = #tpu.pipeline_mode<synchronous>, transform_indices = @transform_3, window_bounds = array<i64: 512, 8>}, {pipeline_mode = #tpu.pipeline_mode<synchronous>, transform_indices = @transform_4, window_bounds = array<i64: 8, 512>}, {pipeline_mode = #tpu.pipeline_mode<synchronous>, transform_indices = @transform_5, window_bounds = array<i64: 8, 1>}, {pipeline_mode = #tpu.pipeline_mode<synchronous>, transform_indices = @transform_6, window_bounds = array<i64: 8, 1>}, {pipeline_mode = #tpu.pipeline_mode<synchronous>, transform_indices = @transform_7, window_bounds = array<i64: 4, 8>}, {pipeline_mode = #tpu.pipeline_mode<synchronous>, transform_indices = @transform_8, window_bounds = array<i64: 8, 4>}, {pipeline_mode = #tpu.pipeline_mode<synchronous>, transform_indices = @transform_9, window_bounds = array<i64: 16, 72>}, {pipeline_mode = #tpu.pipeline_mode<synchronous>, transform_indices = @transform_10, window_bounds = array<i64: 16, 1>}, {pipeline_mode = #tpu.pipeline_mode<synchronous>, transform_indices = @transform_11, window_bounds = array<i64: 16, 1>}, {pipeline_mode = #tpu.pipeline_mode<synchronous>, transform_indices = @transform_12, window_bounds = array<i64: 8, 16>}, {pipeline_mode = #tpu.pipeline_mode<synchronous>, transform_indices = @transform_13, window_bounds = array<i64: 16, 8>}, {pipeline_mode = #tpu.pipeline_mode<synchronous>, transform_indices = @transform_14, window_bounds = array<i64: 16, 144>}, {pipeline_mode = #tpu.pipeline_mode<synchronous>, transform_indices = @transform_15, window_bounds = array<i64: 16, 1>}, {pipeline_mode = #tpu.pipeline_mode<synchronous>, transform_indices = @transform_16, window_bounds = array<i64: 16, 8>}, {pipeline_mode = #tpu.pipeline_mode<synchronous>, transform_indices = @transform_17, window_bounds = array<i64: 16, 1>}, {transform_indices = @transform_18, window_bounds = array<i64: 2, 16, 256>}]} {
    %c0 = arith.constant 0 : index
    %c0_0 = arith.constant 0 : index
    %c0_1 = arith.constant 0 : index
    %0 = vector.load %arg1[%c0, %c0_0, %c0_1] : memref<2x8x256xbf16, #tpu.memory_space<vmem>>, vector<1x8x256xbf16>
    %1 = vector.shape_cast %0 : vector<1x8x256xbf16> to vector<8x256xbf16>
    %c1 = arith.constant 1 : index
    %c0_2 = arith.constant 0 : index
    %c0_3 = arith.constant 0 : index
    %2 = vector.load %arg1[%c1, %c0_2, %c0_3] : memref<2x8x256xbf16, #tpu.memory_space<vmem>>, vector<1x8x256xbf16>
    %3 = vector.shape_cast %2 : vector<1x8x256xbf16> to vector<8x256xbf16>
    %4 = tpu.concatenate %1, %3 in 1 : vector<8x256xbf16>, vector<8x256xbf16> -> vector<8x512xbf16>
    %5 = arith.extf %4 : vector<8x512xbf16> to vector<8x512xf32>
    %c0_4 = arith.constant 0 : index
    %c0_5 = arith.constant 0 : index
    %6 = vector.load %arg6[%c0_4, %c0_5] : memref<8x1xf32, #tpu.memory_space<vmem>>, vector<8x1xf32>
    %c0_6 = arith.constant 0 : index
    %c0_7 = arith.constant 0 : index
    %7 = vector.load %arg7[%c0_6, %c0_7] : memref<8x1xf32, #tpu.memory_space<vmem>>, vector<8x1xf32>
    %8 = arith.mulf %5, %5 : vector<8x512xf32>
    %9 = tpu.concatenate %5, %8 in 0 : vector<8x512xf32>, vector<8x512xf32> -> vector<16x512xf32>
    %c0_8 = arith.constant 0 : index
    %c0_9 = arith.constant 0 : index
    %10 = vector.load %arg4[%c0_8, %c0_9] : memref<512x8xf32, #tpu.memory_space<vmem>>, vector<512x8xf32>
    %cst = arith.constant dense<0.000000e+00> : vector<16x8xf32>
    %11 = tpu.matmul %9, %10, %cst {dimension_numbers = #tpu.dot_dimension_numbers<[1], [0], [0], [1], [0, 0, 1, 1], [], []>} : vector<16x512xf32>, vector<512x8xf32>, vector<16x8xf32> -> vector<16x8xf32>
    %12 = vector.extract_strided_slice %11 {offsets = [0, 0], sizes = [8, 8], strides = [1, 1]} : vector<16x8xf32> to vector<8x8xf32>
    %cst_10 = arith.constant 3.906250e-03 : f32
    %13 = vector.broadcast %cst_10 : f32 to vector<8x8xf32>
    %14 = arith.mulf %12, %13 : vector<8x8xf32>
    %15 = vector.extract_strided_slice %11 {offsets = [8, 0], sizes = [8, 8], strides = [1, 1]} : vector<16x8xf32> to vector<8x8xf32>
    %cst_11 = arith.constant 3.906250e-03 : f32
    %16 = vector.broadcast %cst_11 : f32 to vector<8x8xf32>
    %17 = arith.mulf %15, %16 : vector<8x8xf32>
    %18 = arith.mulf %14, %14 : vector<8x8xf32>
    %19 = arith.subf %17, %18 : vector<8x8xf32>
    %cst_12 = arith.constant 9.99999974E-6 : f32
    %20 = vector.broadcast %cst_12 : f32 to vector<8x8xf32>
    %21 = arith.addf %19, %20 : vector<8x8xf32>
    %22 = math.rsqrt %21 : vector<8x8xf32>
    %23 = vector.broadcast %6 : vector<8x1xf32> to vector<8x8xf32>
    %24 = arith.mulf %22, %23 : vector<8x8xf32>
    %25 = arith.mulf %14, %24 : vector<8x8xf32>
    %26 = vector.broadcast %7 : vector<8x1xf32> to vector<8x8xf32>
    %27 = arith.subf %26, %25 : vector<8x8xf32>
    %28 = tpu.concatenate %24, %27 in 0 : vector<8x8xf32>, vector<8x8xf32> -> vector<16x8xf32>
    %c0_13 = arith.constant 0 : index
    %c0_14 = arith.constant 0 : index
    %29 = vector.load %arg5[%c0_13, %c0_14] : memref<8x512xf32, #tpu.memory_space<vmem>>, vector<8x512xf32>
    %cst_15 = arith.constant dense<0.000000e+00> : vector<16x512xf32>
    %30 = tpu.matmul %28, %29, %cst_15 {dimension_numbers = #tpu.dot_dimension_numbers<[1], [0], [0], [1], [0, 0, 1, 1], [], []>} : vector<16x8xf32>, vector<8x512xf32>, vector<16x512xf32> -> vector<16x512xf32>
    %31 = vector.extract_strided_slice %30 {offsets = [0, 0], sizes = [8, 512], strides = [1, 1]} : vector<16x512xf32> to vector<8x512xf32>
    %32 = arith.mulf %5, %31 : vector<8x512xf32>
    %33 = vector.extract_strided_slice %30 {offsets = [8, 0], sizes = [8, 512], strides = [1, 1]} : vector<16x512xf32> to vector<8x512xf32>
    %34 = arith.addf %32, %33 : vector<8x512xf32>
    %35 = arith.negf %34 : vector<8x512xf32>
    %36 = math.exp %35 : vector<8x512xf32>
    %cst_16 = arith.constant 1.000000e+00 : f32
    %37 = vector.broadcast %cst_16 : f32 to vector<8x512xf32>
    %38 = arith.addf %37, %36 : vector<8x512xf32>
    %39 = arith.divf %37, %38 : vector<8x512xf32>
    %40 = arith.mulf %34, %39 : vector<8x512xf32>
    %c17_i32 = arith.constant 17 : i32
    %41 = tpu.dynamic_rotate %40 by %c17_i32 dim 1 : vector<8x512xf32>, i32 -> vector<8x512xf32>
    %c0_17 = arith.constant 0 : index
    %c0_18 = arith.constant 0 : index
    %42 = vector.load %arg3[%c0_17, %c0_18] : memref<9x512xf32, #tpu.memory_space<vmem>>, vector<1x512xf32>
    %43 = vector.shape_cast %42 : vector<1x512xf32> to vector<512xf32>
    %44 = vector.shape_cast %43 : vector<512xf32> to vector<1x512xf32>
    %45 = vector.broadcast %44 : vector<1x512xf32> to vector<8x512xf32>
    %46 = arith.mulf %41, %45 : vector<8x512xf32>
    %c16_i32 = arith.constant 16 : i32
    %47 = tpu.dynamic_rotate %40 by %c16_i32 dim 1 : vector<8x512xf32>, i32 -> vector<8x512xf32>
    %c1_19 = arith.constant 1 : index
    %c0_20 = arith.constant 0 : index
    %48 = vector.load %arg3[%c1_19, %c0_20] : memref<9x512xf32, #tpu.memory_space<vmem>>, vector<1x512xf32>
    %49 = vector.shape_cast %48 : vector<1x512xf32> to vector<512xf32>
    %50 = vector.shape_cast %49 : vector<512xf32> to vector<1x512xf32>
    %51 = vector.broadcast %50 : vector<1x512xf32> to vector<8x512xf32>
    %52 = arith.mulf %47, %51 : vector<8x512xf32>
    %c15_i32 = arith.constant 15 : i32
    %53 = tpu.dynamic_rotate %40 by %c15_i32 dim 1 : vector<8x512xf32>, i32 -> vector<8x512xf32>
    %c2 = arith.constant 2 : index
    %c0_21 = arith.constant 0 : index
    %54 = vector.load %arg3[%c2, %c0_21] : memref<9x512xf32, #tpu.memory_space<vmem>>, vector<1x512xf32>
    %55 = vector.shape_cast %54 : vector<1x512xf32> to vector<512xf32>
    %56 = vector.shape_cast %55 : vector<512xf32> to vector<1x512xf32>
    %57 = vector.broadcast %56 : vector<1x512xf32> to vector<8x512xf32>
    %58 = arith.mulf %53, %57 : vector<8x512xf32>
    %c1_i32 = arith.constant 1 : i32
    %59 = tpu.dynamic_rotate %40 by %c1_i32 dim 1 : vector<8x512xf32>, i32 -> vector<8x512xf32>
    %c3 = arith.constant 3 : index
    %c0_22 = arith.constant 0 : index
    %60 = vector.load %arg3[%c3, %c0_22] : memref<9x512xf32, #tpu.memory_space<vmem>>, vector<1x512xf32>
    %61 = vector.shape_cast %60 : vector<1x512xf32> to vector<512xf32>
    %62 = vector.shape_cast %61 : vector<512xf32> to vector<1x512xf32>
    %63 = vector.broadcast %62 : vector<1x512xf32> to vector<8x512xf32>
    %64 = arith.mulf %59, %63 : vector<8x512xf32>
    %c511_i32 = arith.constant 511 : i32
    %65 = tpu.dynamic_rotate %40 by %c511_i32 dim 1 : vector<8x512xf32>, i32 -> vector<8x512xf32>
    %c5 = arith.constant 5 : index
    %c0_23 = arith.constant 0 : index
    %66 = vector.load %arg3[%c5, %c0_23] : memref<9x512xf32, #tpu.memory_space<vmem>>, vector<1x512xf32>
    %67 = vector.shape_cast %66 : vector<1x512xf32> to vector<512xf32>
    %68 = vector.shape_cast %67 : vector<512xf32> to vector<1x512xf32>
    %69 = vector.broadcast %68 : vector<1x512xf32> to vector<8x512xf32>
    %70 = arith.mulf %65, %69 : vector<8x512xf32>
    %c497_i32 = arith.constant 497 : i32
    %71 = tpu.dynamic_rotate %40 by %c497_i32 dim 1 : vector<8x512xf32>, i32 -> vector<8x512xf32>
    %c6 = arith.constant 6 : index
    %c0_24 = arith.constant 0 : index
    %72 = vector.load %arg3[%c6, %c0_24] : memref<9x512xf32, #tpu.memory_space<vmem>>, vector<1x512xf32>
    %73 = vector.shape_cast %72 : vector<1x512xf32> to vector<512xf32>
    %74 = vector.shape_cast %73 : vector<512xf32> to vector<1x512xf32>
    %75 = vector.broadcast %74 : vector<1x512xf32> to vector<8x512xf32>
    %76 = arith.mulf %71, %75 : vector<8x512xf32>
    %c496_i32 = arith.constant 496 : i32
    %77 = tpu.dynamic_rotate %40 by %c496_i32 dim 1 : vector<8x512xf32>, i32 -> vector<8x512xf32>
    %c7 = arith.constant 7 : index
    %c0_25 = arith.constant 0 : index
    %78 = vector.load %arg3[%c7, %c0_25] : memref<9x512xf32, #tpu.memory_space<vmem>>, vector<1x512xf32>
    %79 = vector.shape_cast %78 : vector<1x512xf32> to vector<512xf32>
    %80 = vector.shape_cast %79 : vector<512xf32> to vector<1x512xf32>
    %81 = vector.broadcast %80 : vector<1x512xf32> to vector<8x512xf32>
    %82 = arith.mulf %77, %81 : vector<8x512xf32>
    %c495_i32 = arith.constant 495 : i32
    %83 = tpu.dynamic_rotate %40 by %c495_i32 dim 1 : vector<8x512xf32>, i32 -> vector<8x512xf32>
    %c8 = arith.constant 8 : index
    %c0_26 = arith.constant 0 : index
    %84 = vector.load %arg3[%c8, %c0_26] : memref<9x512xf32, #tpu.memory_space<vmem>>, vector<1x512xf32>
    %85 = vector.shape_cast %84 : vector<1x512xf32> to vector<512xf32>
    %86 = vector.shape_cast %85 : vector<512xf32> to vector<1x512xf32>
    %87 = vector.broadcast %86 : vector<1x512xf32> to vector<8x512xf32>
    %88 = arith.mulf %83, %87 : vector<8x512xf32>
    %89 = tpu.concatenate %46, %52, %58, %64, %40, %70, %76, %82, %88 in 0 : vector<8x512xf32>, vector<8x512xf32>, vector<8x512xf32>, vector<8x512xf32>, vector<8x512xf32>, vector<8x512xf32>, vector<8x512xf32>, vector<8x512xf32>, vector<8x512xf32> -> vector<72x512xf32>
    %90 = arith.truncf %89 : vector<72x512xf32> to vector<72x512xbf16>
    %c0_27 = arith.constant 0 : index
    %c0_28 = arith.constant 0 : index
    %91 = vector.load %arg10[%c0_27, %c0_28] : memref<16x72xbf16, #tpu.memory_space<vmem>>, vector<16x72xbf16>
    %cst_29 = arith.constant dense<0.000000e+00> : vector<16x512xf32>
    %92 = tpu.matmul %91, %90, %cst_29 {dimension_numbers = #tpu.dot_dimension_numbers<[1], [0], [0], [1], [0, 0, 1, 1], [], []>} : vector<16x72xbf16>, vector<72x512xbf16>, vector<16x512xf32> -> vector<16x512xf32>
    %c0_30 = arith.constant 0 : index
    %c0_31 = arith.constant 0 : index
    %c0_32 = arith.constant 0 : index
    %93 = vector.load %arg2[%c0_30, %c0_31, %c0_32] : memref<1x16x8xf32, #tpu.memory_space<vmem>>, vector<1x16x8xf32>
    %94 = vector.shape_cast %93 : vector<1x16x8xf32> to vector<16x8xf32>
    %c0_33 = arith.constant 0 : index
    %c0_34 = arith.constant 0 : index
    %95 = vector.load %arg5[%c0_33, %c0_34] : memref<8x512xf32, #tpu.memory_space<vmem>>, vector<8x512xf32>
    %cst_35 = arith.constant dense<0.000000e+00> : vector<16x512xf32>
    %96 = tpu.matmul %94, %95, %cst_35 {dimension_numbers = #tpu.dot_dimension_numbers<[1], [0], [0], [1], [0, 0, 1, 1], [], []>} : vector<16x8xf32>, vector<8x512xf32>, vector<16x512xf32> -> vector<16x512xf32>
    %97 = arith.addf %92, %96 : vector<16x512xf32>
    %c0_36 = arith.constant 0 : index
    %c0_37 = arith.constant 0 : index
    %98 = vector.load %arg11[%c0_36, %c0_37] : memref<16x1xf32, #tpu.memory_space<vmem>>, vector<16x1xf32>
    %c0_38 = arith.constant 0 : index
    %c0_39 = arith.constant 0 : index
    %99 = vector.load %arg12[%c0_38, %c0_39] : memref<16x1xf32, #tpu.memory_space<vmem>>, vector<16x1xf32>
    %c0_40 = arith.constant 0 : index
    %c0_41 = arith.constant 0 : index
    %100 = vector.load %arg13[%c0_40, %c0_41] : memref<8x16xf32, #tpu.memory_space<vmem>>, vector<8x16xf32>
    %c0_42 = arith.constant 0 : index
    %c0_43 = arith.constant 0 : index
    %101 = vector.load %arg14[%c0_42, %c0_43] : memref<16x8xf32, #tpu.memory_space<vmem>>, vector<16x8xf32>
    %102 = arith.mulf %97, %97 : vector<16x512xf32>
    %103 = tpu.concatenate %97, %102 in 0 : vector<16x512xf32>, vector<16x512xf32> -> vector<32x512xf32>
    %c0_44 = arith.constant 0 : index
    %c0_45 = arith.constant 0 : index
    %104 = vector.load %arg4[%c0_44, %c0_45] : memref<512x8xf32, #tpu.memory_space<vmem>>, vector<512x8xf32>
    %cst_46 = arith.constant dense<0.000000e+00> : vector<32x8xf32>
    %105 = tpu.matmul %103, %104, %cst_46 {dimension_numbers = #tpu.dot_dimension_numbers<[1], [0], [0], [1], [0, 0, 1, 1], [], []>} : vector<32x512xf32>, vector<512x8xf32>, vector<32x8xf32> -> vector<32x8xf32>
    %106 = vector.extract_strided_slice %105 {offsets = [0, 0], sizes = [16, 8], strides = [1, 1]} : vector<32x8xf32> to vector<16x8xf32>
    %cst_47 = arith.constant 0.001953125 : f32
    %107 = vector.broadcast %cst_47 : f32 to vector<16x8xf32>
    %108 = arith.mulf %106, %107 : vector<16x8xf32>
    %109 = vector.extract_strided_slice %105 {offsets = [16, 0], sizes = [16, 8], strides = [1, 1]} : vector<32x8xf32> to vector<16x8xf32>
    %cst_48 = arith.constant 0.001953125 : f32
    %110 = vector.broadcast %cst_48 : f32 to vector<16x8xf32>
    %111 = arith.mulf %109, %110 : vector<16x8xf32>
    %cst_49 = arith.constant dense<0.000000e+00> : vector<8x8xf32>
    %112 = tpu.matmul %100, %108, %cst_49 {dimension_numbers = #tpu.dot_dimension_numbers<[1], [0], [0], [1], [0, 0, 1, 1], [], []>} : vector<8x16xf32>, vector<16x8xf32>, vector<8x8xf32> -> vector<8x8xf32>
    %cst_50 = arith.constant dense<0.000000e+00> : vector<8x8xf32>
    %113 = tpu.matmul %100, %111, %cst_50 {dimension_numbers = #tpu.dot_dimension_numbers<[1], [0], [0], [1], [0, 0, 1, 1], [], []>} : vector<8x16xf32>, vector<16x8xf32>, vector<8x8xf32> -> vector<8x8xf32>
    %114 = arith.mulf %112, %112 : vector<8x8xf32>
    %115 = arith.subf %113, %114 : vector<8x8xf32>
    %cst_51 = arith.constant 9.99999974E-6 : f32
    %116 = vector.broadcast %cst_51 : f32 to vector<8x8xf32>
    %117 = arith.addf %115, %116 : vector<8x8xf32>
    %118 = math.rsqrt %117 : vector<8x8xf32>
    %cst_52 = arith.constant dense<0.000000e+00> : vector<16x8xf32>
    %119 = tpu.matmul %101, %112, %cst_52 {dimension_numbers = #tpu.dot_dimension_numbers<[1], [0], [0], [1], [0, 0, 1, 1], [], []>} : vector<16x8xf32>, vector<8x8xf32>, vector<16x8xf32> -> vector<16x8xf32>
    %cst_53 = arith.constant dense<0.000000e+00> : vector<16x8xf32>
    %120 = tpu.matmul %101, %118, %cst_53 {dimension_numbers = #tpu.dot_dimension_numbers<[1], [0], [0], [1], [0, 0, 1, 1], [], []>} : vector<16x8xf32>, vector<8x8xf32>, vector<16x8xf32> -> vector<16x8xf32>
    %121 = vector.broadcast %98 : vector<16x1xf32> to vector<16x8xf32>
    %122 = arith.mulf %120, %121 : vector<16x8xf32>
    %123 = arith.mulf %119, %122 : vector<16x8xf32>
    %124 = vector.broadcast %99 : vector<16x1xf32> to vector<16x8xf32>
    %125 = arith.subf %124, %123 : vector<16x8xf32>
    %126 = tpu.concatenate %122, %125 in 0 : vector<16x8xf32>, vector<16x8xf32> -> vector<32x8xf32>
    %c0_54 = arith.constant 0 : index
    %c0_55 = arith.constant 0 : index
    %127 = vector.load %arg5[%c0_54, %c0_55] : memref<8x512xf32, #tpu.memory_space<vmem>>, vector<8x512xf32>
    %cst_56 = arith.constant dense<0.000000e+00> : vector<32x512xf32>
    %128 = tpu.matmul %126, %127, %cst_56 {dimension_numbers = #tpu.dot_dimension_numbers<[1], [0], [0], [1], [0, 0, 1, 1], [], []>} : vector<32x8xf32>, vector<8x512xf32>, vector<32x512xf32> -> vector<32x512xf32>
    %129 = vector.extract_strided_slice %128 {offsets = [0, 0], sizes = [16, 512], strides = [1, 1]} : vector<32x512xf32> to vector<16x512xf32>
    %130 = arith.mulf %97, %129 : vector<16x512xf32>
    %131 = vector.extract_strided_slice %128 {offsets = [16, 0], sizes = [16, 512], strides = [1, 1]} : vector<32x512xf32> to vector<16x512xf32>
    %132 = arith.addf %130, %131 : vector<16x512xf32>
    %133 = arith.negf %132 : vector<16x512xf32>
    %134 = math.exp %133 : vector<16x512xf32>
    %cst_57 = arith.constant 1.000000e+00 : f32
    %135 = vector.broadcast %cst_57 : f32 to vector<16x512xf32>
    %136 = arith.addf %135, %134 : vector<16x512xf32>
    %137 = arith.divf %135, %136 : vector<16x512xf32>
    %138 = arith.mulf %132, %137 : vector<16x512xf32>
    %c17_i32_58 = arith.constant 17 : i32
    %139 = tpu.dynamic_rotate %138 by %c17_i32_58 dim 1 : vector<16x512xf32>, i32 -> vector<16x512xf32>
    %c0_59 = arith.constant 0 : index
    %c0_60 = arith.constant 0 : index
    %140 = vector.load %arg3[%c0_59, %c0_60] : memref<9x512xf32, #tpu.memory_space<vmem>>, vector<1x512xf32>
    %141 = vector.shape_cast %140 : vector<1x512xf32> to vector<512xf32>
    %142 = vector.shape_cast %141 : vector<512xf32> to vector<1x512xf32>
    %143 = vector.broadcast %142 : vector<1x512xf32> to vector<16x512xf32>
    %144 = arith.mulf %139, %143 : vector<16x512xf32>
    %c16_i32_61 = arith.constant 16 : i32
    %145 = tpu.dynamic_rotate %138 by %c16_i32_61 dim 1 : vector<16x512xf32>, i32 -> vector<16x512xf32>
    %c1_62 = arith.constant 1 : index
    %c0_63 = arith.constant 0 : index
    %146 = vector.load %arg3[%c1_62, %c0_63] : memref<9x512xf32, #tpu.memory_space<vmem>>, vector<1x512xf32>
    %147 = vector.shape_cast %146 : vector<1x512xf32> to vector<512xf32>
    %148 = vector.shape_cast %147 : vector<512xf32> to vector<1x512xf32>
    %149 = vector.broadcast %148 : vector<1x512xf32> to vector<16x512xf32>
    %150 = arith.mulf %145, %149 : vector<16x512xf32>
    %c15_i32_64 = arith.constant 15 : i32
    %151 = tpu.dynamic_rotate %138 by %c15_i32_64 dim 1 : vector<16x512xf32>, i32 -> vector<16x512xf32>
    %c2_65 = arith.constant 2 : index
    %c0_66 = arith.constant 0 : index
    %152 = vector.load %arg3[%c2_65, %c0_66] : memref<9x512xf32, #tpu.memory_space<vmem>>, vector<1x512xf32>
    %153 = vector.shape_cast %152 : vector<1x512xf32> to vector<512xf32>
    %154 = vector.shape_cast %153 : vector<512xf32> to vector<1x512xf32>
    %155 = vector.broadcast %154 : vector<1x512xf32> to vector<16x512xf32>
    %156 = arith.mulf %151, %155 : vector<16x512xf32>
    %c1_i32_67 = arith.constant 1 : i32
    %157 = tpu.dynamic_rotate %138 by %c1_i32_67 dim 1 : vector<16x512xf32>, i32 -> vector<16x512xf32>
    %c3_68 = arith.constant 3 : index
    %c0_69 = arith.constant 0 : index
    %158 = vector.load %arg3[%c3_68, %c0_69] : memref<9x512xf32, #tpu.memory_space<vmem>>, vector<1x512xf32>
    %159 = vector.shape_cast %158 : vector<1x512xf32> to vector<512xf32>
    %160 = vector.shape_cast %159 : vector<512xf32> to vector<1x512xf32>
    %161 = vector.broadcast %160 : vector<1x512xf32> to vector<16x512xf32>
    %162 = arith.mulf %157, %161 : vector<16x512xf32>
    %c511_i32_70 = arith.constant 511 : i32
    %163 = tpu.dynamic_rotate %138 by %c511_i32_70 dim 1 : vector<16x512xf32>, i32 -> vector<16x512xf32>
    %c5_71 = arith.constant 5 : index
    %c0_72 = arith.constant 0 : index
    %164 = vector.load %arg3[%c5_71, %c0_72] : memref<9x512xf32, #tpu.memory_space<vmem>>, vector<1x512xf32>
    %165 = vector.shape_cast %164 : vector<1x512xf32> to vector<512xf32>
    %166 = vector.shape_cast %165 : vector<512xf32> to vector<1x512xf32>
    %167 = vector.broadcast %166 : vector<1x512xf32> to vector<16x512xf32>
    %168 = arith.mulf %163, %167 : vector<16x512xf32>
    %c497_i32_73 = arith.constant 497 : i32
    %169 = tpu.dynamic_rotate %138 by %c497_i32_73 dim 1 : vector<16x512xf32>, i32 -> vector<16x512xf32>
    %c6_74 = arith.constant 6 : index
    %c0_75 = arith.constant 0 : index
    %170 = vector.load %arg3[%c6_74, %c0_75] : memref<9x512xf32, #tpu.memory_space<vmem>>, vector<1x512xf32>
    %171 = vector.shape_cast %170 : vector<1x512xf32> to vector<512xf32>
    %172 = vector.shape_cast %171 : vector<512xf32> to vector<1x512xf32>
    %173 = vector.broadcast %172 : vector<1x512xf32> to vector<16x512xf32>
    %174 = arith.mulf %169, %173 : vector<16x512xf32>
    %c496_i32_76 = arith.constant 496 : i32
    %175 = tpu.dynamic_rotate %138 by %c496_i32_76 dim 1 : vector<16x512xf32>, i32 -> vector<16x512xf32>
    %c7_77 = arith.constant 7 : index
    %c0_78 = arith.constant 0 : index
    %176 = vector.load %arg3[%c7_77, %c0_78] : memref<9x512xf32, #tpu.memory_space<vmem>>, vector<1x512xf32>
    %177 = vector.shape_cast %176 : vector<1x512xf32> to vector<512xf32>
    %178 = vector.shape_cast %177 : vector<512xf32> to vector<1x512xf32>
    %179 = vector.broadcast %178 : vector<1x512xf32> to vector<16x512xf32>
    %180 = arith.mulf %175, %179 : vector<16x512xf32>
    %c495_i32_79 = arith.constant 495 : i32
    %181 = tpu.dynamic_rotate %138 by %c495_i32_79 dim 1 : vector<16x512xf32>, i32 -> vector<16x512xf32>
    %c8_80 = arith.constant 8 : index
    %c0_81 = arith.constant 0 : index
    %182 = vector.load %arg3[%c8_80, %c0_81] : memref<9x512xf32, #tpu.memory_space<vmem>>, vector<1x512xf32>
    %183 = vector.shape_cast %182 : vector<1x512xf32> to vector<512xf32>
    %184 = vector.shape_cast %183 : vector<512xf32> to vector<1x512xf32>
    %185 = vector.broadcast %184 : vector<1x512xf32> to vector<16x512xf32>
    %186 = arith.mulf %181, %185 : vector<16x512xf32>
    %187 = tpu.concatenate %144, %150, %156, %162, %138, %168, %174, %180, %186 in 0 : vector<16x512xf32>, vector<16x512xf32>, vector<16x512xf32>, vector<16x512xf32>, vector<16x512xf32>, vector<16x512xf32>, vector<16x512xf32>, vector<16x512xf32>, vector<16x512xf32> -> vector<144x512xf32>
    %188 = arith.truncf %187 : vector<144x512xf32> to vector<144x512xbf16>
    %c0_82 = arith.constant 0 : index
    %c0_83 = arith.constant 0 : index
    %189 = vector.load %arg15[%c0_82, %c0_83] : memref<16x144xbf16, #tpu.memory_space<vmem>>, vector<16x144xbf16>
    %cst_84 = arith.constant dense<0.000000e+00> : vector<16x512xf32>
    %190 = tpu.matmul %189, %188, %cst_84 {dimension_numbers = #tpu.dot_dimension_numbers<[1], [0], [0], [1], [0, 0, 1, 1], [], []>} : vector<16x144xbf16>, vector<144x512xbf16>, vector<16x512xf32> -> vector<16x512xf32>
    %c0_85 = arith.constant 0 : index
    %c0_86 = arith.constant 0 : index
    %191 = vector.load %arg16[%c0_85, %c0_86] : memref<16x1xf32, #tpu.memory_space<vmem>>, vector<16x1xf32>
    %192 = vector.broadcast %191 : vector<16x1xf32> to vector<16x512xf32>
    %193 = arith.addf %190, %192 : vector<16x512xf32>
    %c0_87 = arith.constant 0 : index
    %c0_88 = arith.constant 0 : index
    %194 = vector.load %arg17[%c0_87, %c0_88] : memref<16x8xf32, #tpu.memory_space<vmem>>, vector<16x8xf32>
    %cst_89 = arith.constant dense<0.000000e+00> : vector<16x512xf32>
    %195 = tpu.matmul %194, %5, %cst_89 {dimension_numbers = #tpu.dot_dimension_numbers<[1], [0], [0], [1], [0, 0, 1, 1], [], []>} : vector<16x8xf32>, vector<8x512xf32>, vector<16x512xf32> -> vector<16x512xf32>
    %c0_90 = arith.constant 0 : index
    %c0_91 = arith.constant 0 : index
    %196 = vector.load %arg18[%c0_90, %c0_91] : memref<16x1xf32, #tpu.memory_space<vmem>>, vector<16x1xf32>
    %197 = vector.broadcast %196 : vector<16x1xf32> to vector<16x512xf32>
    %198 = arith.addf %195, %197 : vector<16x512xf32>
    %199 = arith.addf %193, %198 : vector<16x512xf32>
    %200 = arith.truncf %199 : vector<16x512xf32> to vector<16x512xbf16>
    %201 = vector.extract_strided_slice %200 {offsets = [0, 0], sizes = [16, 256], strides = [1, 1]} : vector<16x512xbf16> to vector<16x256xbf16>
    %c0_92 = arith.constant 0 : index
    %c0_93 = arith.constant 0 : index
    %c0_94 = arith.constant 0 : index
    %202 = vector.load %arg19[%c0_92, %c0_93, %c0_94] : memref<2x16x256xbf16, #tpu.memory_space<vmem>>, vector<1x16x256xbf16>
    %203 = vector.shape_cast %202 : vector<1x16x256xbf16> to vector<16x256xbf16>
    %204 = vector.shape_cast %201 : vector<16x256xbf16> to vector<1x16x256xbf16>
    tpu.vector_store %arg19[%c0_92, %c0_93, %c0_94], %204 {strides = array<i32>} : memref<2x16x256xbf16, #tpu.memory_space<vmem>>, vector<1x16x256xbf16>,
    %205 = vector.extract_strided_slice %200 {offsets = [0, 256], sizes = [16, 256], strides = [1, 1]} : vector<16x512xbf16> to vector<16x256xbf16>
    %c1_95 = arith.constant 1 : index
    %c0_96 = arith.constant 0 : index
    %c0_97 = arith.constant 0 : index
    %206 = vector.load %arg19[%c1_95, %c0_96, %c0_97] : memref<2x16x256xbf16, #tpu.memory_space<vmem>>, vector<1x16x256xbf16>
    %207 = vector.shape_cast %206 : vector<1x16x256xbf16> to vector<16x256xbf16>
    %208 = vector.shape_cast %205 : vector<16x256xbf16> to vector<1x16x256xbf16>
    tpu.vector_store %arg19[%c1_95, %c0_96, %c0_97], %208 {strides = array<i32>} : memref<2x16x256xbf16, #tpu.memory_space<vmem>>, vector<1x16x256xbf16>,
    return
  }
  func.func @transform_0(%arg0: i32) -> (i32, i32, i32) {
    %c0_i32 = arith.constant 0 : i32
    %c0_i32_0 = arith.constant 0 : i32
    %c0_i32_1 = arith.constant 0 : i32
    return %arg0, %c0_i32, %c0_i32_0 : i32, i32, i32
  }
  func.func @transform_1(%arg0: i32) -> (i32, i32, i32) {
    %c0_i32 = arith.constant 0 : i32
    %c0_i32_0 = arith.constant 0 : i32
    %c0_i32_1 = arith.constant 0 : i32
    return %arg0, %c0_i32, %c0_i32_0 : i32, i32, i32
  }
  func.func @transform_2(%arg0: i32) -> (i32, i32) {
    %c0_i32 = arith.constant 0 : i32
    %c0_i32_0 = arith.constant 0 : i32
    %c0_i32_1 = arith.constant 0 : i32
    return %c0_i32, %c0_i32_0 : i32, i32
  }
  func.func @transform_3(%arg0: i32) -> (i32, i32) {
    %c0_i32 = arith.constant 0 : i32
    %c0_i32_0 = arith.constant 0 : i32
    %c0_i32_1 = arith.constant 0 : i32
    return %c0_i32, %c0_i32_0 : i32, i32
  }
  func.func @transform_4(%arg0: i32) -> (i32, i32) {
    %c0_i32 = arith.constant 0 : i32
    %c0_i32_0 = arith.constant 0 : i32
    %c0_i32_1 = arith.constant 0 : i32
    return %c0_i32, %c0_i32_0 : i32, i32
  }
  func.func @transform_5(%arg0: i32) -> (i32, i32) {
    %c0_i32 = arith.constant 0 : i32
    %c0_i32_0 = arith.constant 0 : i32
    %c0_i32_1 = arith.constant 0 : i32
    return %c0_i32, %c0_i32_0 : i32, i32
  }
  func.func @transform_6(%arg0: i32) -> (i32, i32) {
    %c0_i32 = arith.constant 0 : i32
    %c0_i32_0 = arith.constant 0 : i32
    %c0_i32_1 = arith.constant 0 : i32
    return %c0_i32, %c0_i32_0 : i32, i32
  }
  func.func @transform_7(%arg0: i32) -> (i32, i32) {
    %c0_i32 = arith.constant 0 : i32
    %c0_i32_0 = arith.constant 0 : i32
    %c0_i32_1 = arith.constant 0 : i32
    return %c0_i32, %c0_i32_0 : i32, i32
  }
  func.func @transform_8(%arg0: i32) -> (i32, i32) {
    %c0_i32 = arith.constant 0 : i32
    %c0_i32_0 = arith.constant 0 : i32
    %c0_i32_1 = arith.constant 0 : i32
    return %c0_i32, %c0_i32_0 : i32, i32
  }
  func.func @transform_9(%arg0: i32) -> (i32, i32) {
    %c0_i32 = arith.constant 0 : i32
    %c0_i32_0 = arith.constant 0 : i32
    %c0_i32_1 = arith.constant 0 : i32
    return %c0_i32, %c0_i32_0 : i32, i32
  }
  func.func @transform_10(%arg0: i32) -> (i32, i32) {
    %c0_i32 = arith.constant 0 : i32
    %c0_i32_0 = arith.constant 0 : i32
    %c0_i32_1 = arith.constant 0 : i32
    return %c0_i32, %c0_i32_0 : i32, i32
  }
  func.func @transform_11(%arg0: i32) -> (i32, i32) {
    %c0_i32 = arith.constant 0 : i32
    %c0_i32_0 = arith.constant 0 : i32
    %c0_i32_1 = arith.constant 0 : i32
    return %c0_i32, %c0_i32_0 : i32, i32
  }
  func.func @transform_12(%arg0: i32) -> (i32, i32) {
    %c0_i32 = arith.constant 0 : i32
    %c0_i32_0 = arith.constant 0 : i32
    %c0_i32_1 = arith.constant 0 : i32
    return %c0_i32, %c0_i32_0 : i32, i32
  }
  func.func @transform_13(%arg0: i32) -> (i32, i32) {
    %c0_i32 = arith.constant 0 : i32
    %c0_i32_0 = arith.constant 0 : i32
    %c0_i32_1 = arith.constant 0 : i32
    return %c0_i32, %c0_i32_0 : i32, i32
  }
  func.func @transform_14(%arg0: i32) -> (i32, i32) {
    %c0_i32 = arith.constant 0 : i32
    %c0_i32_0 = arith.constant 0 : i32
    %c0_i32_1 = arith.constant 0 : i32
    return %c0_i32, %c0_i32_0 : i32, i32
  }
  func.func @transform_15(%arg0: i32) -> (i32, i32) {
    %c0_i32 = arith.constant 0 : i32
    %c0_i32_0 = arith.constant 0 : i32
    %c0_i32_1 = arith.constant 0 : i32
    return %c0_i32, %c0_i32_0 : i32, i32
  }
  func.func @transform_16(%arg0: i32) -> (i32, i32) {
    %c0_i32 = arith.constant 0 : i32
    %c0_i32_0 = arith.constant 0 : i32
    %c0_i32_1 = arith.constant 0 : i32
    return %c0_i32, %c0_i32_0 : i32, i32
  }
  func.func @transform_17(%arg0: i32) -> (i32, i32) {
    %c0_i32 = arith.constant 0 : i32
    %c0_i32_0 = arith.constant 0 : i32
    %c0_i32_1 = arith.constant 0 : i32
    return %c0_i32, %c0_i32_0 : i32, i32
  }
  func.func @transform_18(%arg0: i32) -> (i32, i32, i32) {
    %c0_i32 = arith.constant 0 : i32
    %c0_i32_0 = arith.constant 0 : i32
    %c0_i32_1 = arith.constant 0 : i32
    return %arg0, %c0_i32, %c0_i32_0 : i32, i32, i32
  }
}

</mosaic_0001>

<bundles_post_ra>
// kernel: tpu_custom_call.1
= control target key start
LH: loop header
LB: loop body
LE: loop exit
PB: predicated region body
PF: predicated region fallthrough
CT: control target
= control target key end

     0   :  { %s4839_s0 = inlined_call_operand.vmem [shape: bf16[4,8,256], index: 0, kind: input, shape index: {}]   ;;  %s4840_s1 = inlined_call_operand.vmem [shape: f32[2,16,8], index: 1, kind: input, shape index: {}]   ;;  %s4841_s2 = inlined_call_operand.vmem [shape: f32[9,512], index: 2, kind: input, shape index: {}]   ;;  %s4842_s3 = inlined_call_operand.vmem [shape: f32[512,8], index: 3, kind: input, shape index: {}]   ;;  %s4843_s4 = inlined_call_operand.vmem [shape: f32[8,512], index: 4, kind: input, shape index: {}]   ;;  %s4844_s5 = inlined_call_operand.vmem [shape: f32[8,1], index: 5, kind: input, shape index: {}]   ;;  %s4845_s6 = inlined_call_operand.vmem [shape: f32[8,1], index: 6, kind: input, shape index: {}]   ;;  %s4846_s7 = inlined_call_operand.vmem [shape: f32[4,8], index: 7, kind: input, shape index: {}]   ;;  %s4847_s8 = inlined_call_operand.vmem [shape: f32[8,4], index: 8, kind: input, shape index: {}]   ;;  %s4848_s9 = inlined_call_operand.vmem [shape: bf16[16,72], index: 9, kind: input, shape index: {}]   ;;  %s4849_s10 = inlined_call_operand.vmem [shape: f32[16,1], index: 10, kind: input, shape index: {}]   ;;  %s4850_s11 = inlined_call_operand.vmem [shape: f32[16,1], index: 11, kind: input, shape index: {}]   ;;  %s4851_s12 = inlined_call_operand.vmem [shape: f32[8,16], index: 12, kind: input, shape index: {}]   ;;  %s4852_s13 = inlined_call_operand.vmem [shape: f32[16,8], index: 13, kind: input, shape index: {}]   ;;  %s4853_s14 = inlined_call_operand.vmem [shape: bf16[16,144], index: 14, kind: input, shape index: {}]   ;;  %s4854_s15 = inlined_call_operand.vmem [shape: f32[16,1], index: 15, kind: input, shape index: {}]   ;;  %s4855_s16 = inlined_call_operand.vmem [shape: f32[16,8], index: 16, kind: input, shape index: {}]   ;;  %s4856_s17 = inlined_call_operand.vmem [shape: f32[16,1], index: 17, kind: input, shape index: {}]   ;;  %s4857_s18 = inlined_call_operand.hbm [shape: bf16[4,16,256], index: 18, kind: output, shape index: {}]  }
   0x1   :  { %4917 = sst [smem:[#allocation40_spill]] %s4839_s0 }
   0x2   :  { %4918 = sst [smem:[#allocation41_spill]] %s4840_s1 }
   0x3   :  { %4919 = sst [smem:[#allocation42_spill]] %s4841_s2 }
   0x4   :  { %23 = vsyncpa [#allocation3], 0 }
   0x5   :  { %25 = vsyncpa [#allocation3 + $0x1], 0  ;;  %s3087_s25 = smov 0   ;;  %s3089_s26 = smov 0  }
   0x6   :  { %s3091_s27 = smov 0   ;;  %s3093_s28 = smov 0  }
   0x7 LB: > { %4920 = sst [smem:[#allocation5_spill]] %s2967_s25  ;;  %s3108_s29 = sadd.s32 4294967295, %s2979_s28   ;;  %s2979_s28 = sphi %s3093_s28, %s5021_s28   ;;  %s2975_s27 = sphi %s3091_s27, %s5023_s27   ;;  %s2971_s26 = sphi %s3089_s26, %s5025_s26   ;;  %s2967_s25 = sphi %s3087_s25, %s5024_s25  }
   0x8   : > { %4921 = sst [smem:[#allocation6_spill]] %s2975_s27  ;;  %s2652_s30 = sadd.s32 4294967294, %s2979_s28  }
   0x9   : > { %s3112_s0 = sadd.s32 1, %s2979_s28   ;;  %s426_s19 = sadd.s32 1, %s2975_s27 }
   0xa   : > { %4922 = sst [smem:[#allocation7_spill]] %s3112_s0  ;;  %s423_s1 = ssub.s32 %s2979_s28, %s3112_s0 }
   0xb   : > { %p436_p0 = scmp.ne.s32.totalorder %s2975_s27, %s2971_s26  ;;  %p424_p1 = scmp.eq.s32.totalorder %s423_s1, 0 }
   0xc   : > { %p437_p2 = scmp.eq.s32.totalorder %s3108_s29, 1  ;;  %p442_p3 = scmp.ne.s32.totalorder %s2971_s26, %s2967_s25 }
   0xd   : > { %p443_p4 = scmp.eq.s32.totalorder %s2652_s30, 1  ;;  %p2655_p7 = scmp.ge.s32.totalorder %s2979_s28, 1 }
   0xe   : > { %s3123_s7 = scalar_select %p424_p1, %s2975_s27, %s426_s19  }
   0xf   : > { %p3125_p5 = por %p437_p2, %p436_p0  ;;  %p3129_p6 = por %p443_p4, %p442_p3 }
  0x10   : > { %4923 = sst [smem:[#allocation8_spill]] %s3123_s7  ;;  %p527_p8 = scmp.lt.s32.totalorder %s2979_s28, 3 }
  0x11   : > { %s4925_s20 = scalar_select %p3129_p6, 1, 0 }
  0x12   : > { %p528_p9 = pnand %p2655_p7, %p527_p8 }
  0x13   : > { %4926 = sst [smem:[#allocation9_spill]] %s4925_s20 }
  0x14   : > { %531 = sbr.rel (%p528_p9) target bundleno = 1809 (0x711), region = 92 }
  0x19   : > { %v675_v0 = vld [vmem:[%s4842_s3 + $0x178] sm:$0xff]  ;;  %v674_v1 = vld [vmem:[%s4842_s3 + $0x170] sm:$0xff]  ;;  %v673_v5 = vld [vmem:[%s4842_s3 + $0x168] sm:$0xff]  ;;  %s2657_s27 = sshll.u32 %s3108_s29, 1  ;;  %s4928_s20 = sld [smem:[#allocation40_spill]]  ;;  %vm4888_vm3 = vcmask 64512  }
  0x1a   : > { %v691_v2 = vld [vmem:[%s4842_s3 + $0x1f8] sm:$0xff]  ;;  %738 = vmatpush.msra.mxu2 %v675_v0  ;;  %v690_v6 = vld [vmem:[%s4842_s3 + $0x1f0] sm:$0xff]  ;;  %v689_v9 = vld [vmem:[%s4842_s3 + $0x1e8] sm:$0xff]  ;;  %p3186_p10 = scmp.lt.s32.totalorder %s2657_s27, 3  ;;  %s2982_s23 = smov 112  }
  0x1b   : > { %761 = vmatpush.msra.mxu3 %v691_v2  ;;  %v643_v3 = vld [vmem:[%s4842_s3 + $0x78] sm:$0xff]  ;;  %v642_v7 = vld [vmem:[%s4842_s3 + $0x70] sm:$0xff]  ;;  %v641_v10 = vld [vmem:[%s4842_s3 + $0x68] sm:$0xff]  ;;  %s4884_s24 = smov 111   ;;  %s4886_s30 = smov 127  }
  0x1c   : > { %v659_v4 = vld [vmem:[%s4842_s3 + $0xf8] sm:$0xff]  ;;  %692 = vmatpush.msra.mxu0 %v643_v3  ;;  %v658_v8 = vld [vmem:[%s4842_s3 + $0xf0] sm:$0xff]  ;;  %739 = vmatpush.msra.mxu2 %v674_v1  ;;  %v672_v11 = vld [vmem:[%s4842_s3 + $0x160] sm:$0xff]  ;;  %s5027_s27 = smov (!%p3186_p10, %s2657_s27), 3  ;;  %s4882_s19 = smov 1  }
  0x1d   : > { %715 = vmatpush.msra.mxu1 %v659_v4  ;;  %762 = vmatpush.msra.mxu3 %v690_v6  ;;  %v657_v12 = vld [vmem:[%s4842_s3 + $0xe8] sm:$0xff]  ;;  %v688_v13 = vld [vmem:[%s4842_s3 + $0x1e0] sm:$0xff]  ;;  %v3193_v16 = vld [vmem:[%s4842_s3 + $0x158] sm:$0xff]  ;;  %s2756_s22 = sshll.u32 %s5027_s27, 3  ;;  %s4880_s27 = smov 15  }
  0x1e   : > { %693 = vmatpush.msra.mxu0 %v642_v7  ;;  %740 = vmatpush.msra.mxu2 %v673_v5  ;;  %v640_v14 = vld [vmem:[%s4842_s3 + $0x60] sm:$0xff]  ;;  %v687_v17 = vld [vmem:[%s4842_s3 + $0x1d8] sm:$0xff]  ;;  %v3207_v20 = vld [vmem:[%s4842_s3 + $0x150] sm:$0xff]  ;;  %s4866_s1 = smov 16   ;;  %s4933_s0 = sld [smem:[#allocation42_spill]] }
  0x1f   : > { %716 = vmatpush.msra.mxu1 %v658_v8  ;;  %763 = vmatpush.msra.mxu3 %v689_v9  ;;  %v656_v15 = vld [vmem:[%s4842_s3 + $0xe0] sm:$0xff]  ;;  %v639_v18 = vld [vmem:[%s4842_s3 + $0x58] sm:$0xff]  ;;  %v686_v21 = vld [vmem:[%s4842_s3 + $0x1d0] sm:$0xff]  ;;  %s592_s21 = scalar_lea.vmem %s4928_s20, %s2756_s22  ;;  %s4864_s20 = smov 17  }
  0x20   : > { %694 = vmatpush.msra.mxu0 %v641_v10  ;;  %741 = vmatpush.msra.mxu2 %v672_v11  ;;  %v655_v19 = vld [vmem:[%s4842_s3 + $0xd8] sm:$0xff]  ;;  %v638_v22 = vld [vmem:[%s4842_s3 + $0x50] sm:$0xff]  ;;  %v3228_v24 = vld [vmem:[%s4842_s3 + $0x148] sm:$0xff]  ;;  %p594_p11 = scmp.lt.s32.totalorder %s3108_s29, 1  ;;  %s4934_s25 = sld [smem:[#allocation41_spill]] }
  0x21   : > { %717 = vmatpush.msra.mxu1 %v657_v12  ;;  %764 = vmatpush.msra.mxu3 %v688_v13  ;;  %v654_v23 = vld [vmem:[%s4842_s3 + $0xd0] sm:$0xff]  ;;  %v685_v25 = vld [vmem:[%s4842_s3 + $0x1c8] sm:$0xff]  ;;  %v3243_v28 = vld [vmem:[%s4842_s3 + $0x140] sm:$0xff] }
  0x22   : > { %695 = vmatpush.msra.mxu0 %v640_v14  ;;  %742 = vmatpush.msra.mxu2 %v3193_v16  ;;  %v637_v26 = vld [vmem:[%s4842_s3 + $0x48] sm:$0xff]  ;;  %v684_v29 = vld [vmem:[%s4842_s3 + $0x1c0] sm:$0xff]  ;;  %v3259_v32 = vld [vmem:[%s4842_s3 + $0x138] sm:$0xff]  ;;  %s595_s22 = scalar_select %p594_p11, %s3108_s29, 1 }
  0x23   : > { %718 = vmatpush.msra.mxu1 %v656_v15  ;;  %765 = vmatpush.msra.mxu3 %v687_v17  ;;  %v653_v27 = vld [vmem:[%s4842_s3 + $0xc8] sm:$0xff]  ;;  %v636_v30 = vld [vmem:[%s4842_s3 + $0x40] sm:$0xff]  ;;  %v683_v33 = vld [vmem:[%s4842_s3 + $0x1b8] sm:$0xff]  ;;  %v2981_v15 = vmov 0  }
  0x24   : > { %696 = vmatpush.msra.mxu0 %v639_v18  ;;  %743 = vmatpush.msra.mxu2 %v3207_v20  ;;  %v652_v31 = vld [vmem:[%s4842_s3 + $0xc0] sm:$0xff]  ;;  %v635_v34 = vld [vmem:[%s4842_s3 + $0x38] sm:$0xff]  ;;  %v3274_v36 = vld [vmem:[%s4842_s3 + $0x130] sm:$0xff] }
  0x25   : > { %719 = vmatpush.msra.mxu1 %v655_v19  ;;  %766 = vmatpush.msra.mxu3 %v686_v21  ;;  %v651_v35 = vld [vmem:[%s4842_s3 + $0xb8] sm:$0xff]  ;;  %v682_v37 = vld [vmem:[%s4842_s3 + $0x1b0] sm:$0xff]  ;;  %v3292_v40 = vld [vmem:[%s4842_s3 + $0x128] sm:$0xff] }
  0x26   : > { %697 = vmatpush.msra.mxu0 %v638_v22  ;;  %744 = vmatpush.msra.mxu2 %v3228_v24  ;;  %v634_v38 = vld [vmem:[%s4842_s3 + $0x30] sm:$0xff]  ;;  %v681_v41 = vld [vmem:[%s4842_s3 + $0x1a8] sm:$0xff]  ;;  %v3307_v45 = vld [vmem:[%s4842_s3 + $0x120] sm:$0xff] }
  0x27   : > { %720 = vmatpush.msra.mxu1 %v654_v23  ;;  %767 = vmatpush.msra.mxu3 %v685_v25  ;;  %v650_v39 = vld [vmem:[%s4842_s3 + $0xb0] sm:$0xff]  ;;  %v633_v42 = vld [vmem:[%s4842_s3 + $0x28] sm:$0xff]  ;;  %v680_v46 = vld [vmem:[%s4842_s3 + $0x1a0] sm:$0xff] }
  0x28   : > { %698 = vmatpush.msra.mxu0 %v637_v26  ;;  %745 = vmatpush.msra.mxu2 %v3243_v28  ;;  %v649_v43 = vld [vmem:[%s4842_s3 + $0xa8] sm:$0xff]  ;;  %v632_v49 = vld [vmem:[%s4842_s3 + $0x20] sm:$0xff]  ;;  %v3322_v52 = vld [vmem:[%s4842_s3 + $0x118] sm:$0xff] }
  0x29   : > { %721 = vmatpush.msra.mxu1 %v653_v27  ;;  %768 = vmatpush.msra.mxu3 %v684_v29  ;;  %v2662_v44 = vld [vmem:[%s592_s21 + $0x8] sm:$0xff]  ;;  %v648_v50 = vld [vmem:[%s4842_s3 + $0xa0] sm:$0xff]  ;;  %v679_v53 = vld [vmem:[%s4842_s3 + $0x198] sm:$0xff] }
  0x2a   : > { %699 = vmatpush.msra.mxu0 %v636_v30  ;;  %746 = vmatpush.msra.mxu2 %v3259_v32  ;;  %v612_v47 = vunpack.c.l.b16 %v2662_v44  ;;  %v613_v48 = vunpack.c.h.b16 %v2662_v44  ;;  %v601_v51 = vld [vmem:[%s592_s21] sm:$0xff]  ;;  %v631_v56 = vld [vmem:[%s4842_s3 + $0x18] sm:$0xff]  ;;  %v3337_v58 = vld [vmem:[%s4842_s3 + $0x110] sm:$0xff]  ;;  %s2983_s21 = smov 113  }
  0x2b   : > { %722 = vmatpush.msra.mxu1 %v652_v31  ;;  %769 = vmatpush.msra.mxu3 %v683_v33  ;;  %v605_v54 = vunpack.c.l.b16 %v601_v51  ;;  %v606_v55 = vunpack.c.h.b16 %v601_v51  ;;  %v647_v57 = vld [vmem:[%s4842_s3 + $0x98] sm:$0xff]  ;;  %v3342_v59 = vld [vmem:[%s4842_s3 + $0x190] sm:$0xff]  ;;  %v3354_v0 = vld [vmem:[%s4842_s3 + $0x108] sm:$0xff] }
  0x2c   : > { %700 = vmatpush.msra.mxu0 %v635_v34  ;;  %747 = vmatpush.msra.mxu2 %v3274_v36  ;;  %v614_v60 = vpack.c.b16 %v612_v47, %v612_v47  ;;  %v615_v61 = vpack.c.b16 %v613_v48, %v613_v48  ;;  %v630_v62 = vld [vmem:[%s4842_s3 + $0x10] sm:$0xff]  ;;  %v3359_v1 = vld [vmem:[%s4842_s3 + $0x188] sm:$0xff]  ;;  %v3376_v6 = vld [vmem:[%s4842_s3 + $0x100] sm:$0xff] }
  0x2d   : > { %723 = vmatpush.msra.mxu1 %v651_v35  ;;  %770 = vmatpush.msra.mxu3 %v682_v37  ;;  %v646_v63 = vld [vmem:[%s4842_s3 + $0x90] sm:$0xff]  ;;  %v607_v2 = vpack.c.b16 %v605_v54, %v605_v54  ;;  %v608_v3 = vpack.c.b16 %v606_v55, %v606_v55  ;;  %v3366_v4 = vld [vmem:[%s4842_s3 + $0x8] sm:$0xff]  ;;  %v3383_v8 = vld [vmem:[%s4842_s3 + $0x180] sm:$0xff] }
  0x2e   : > { %701 = vmatpush.msra.mxu0 %v634_v38  ;;  %748 = vmatpush.msra.mxu2 %v3292_v40  ;;  %v3371_v5 = vld [vmem:[%s4842_s3 + $0x88] sm:$0xff]  ;;  %v3378_v7 = vunpack.c.l.bf16 %v614_v60  ;;  %v3385_v9 = vunpack.c.l.bf16 %v615_v61  ;;  %v3394_v10 = vld [vmem:[%s4842_s3] sm:$0xff] }
  0x2f   : > { %724 = vmatpush.msra.mxu1 %v650_v39  ;;  %771 = vmatpush.msra.mxu3 %v681_v41  ;;  %v3399_v11 = vld [vmem:[%s4842_s3 + $0x80] sm:$0xff]  ;;  %v3401_v12 = vunpack.c.l.bf16 %v607_v2  ;;  %v3403_v13 = vunpack.c.l.bf16 %v608_v3  ;;  %v813_v38 = vld [vmem:[%s4843_s4 + $0x8] sm:$0xff]  ;;  %v814_v39 = vld [vmem:[%s4843_s4 + $0x10] sm:$0xff] }
  0x30   : > { %702 = vmatpush.msra.mxu0 %v633_v42  ;;  %749 = vmatpush.msra.mxu2 %v3307_v45  ;;  %4929 = vst [vmem:[#allocation10_spill] sm:$0xff] %v3378_v7  ;;  %v622_v14 = vld [vmem:[%s4844_s5] sm:$0xff]  ;;  %v626_v17 = vmul.f32 %v3378_v7, %v3378_v7  ;;  %v627_v18 = vmul.f32 %v3385_v9, %v3385_v9  ;;  %v815_v41 = vld [vmem:[%s4843_s4 + $0x18] sm:$0xff] }
  0x31   : > { %725 = vmatpush.msra.mxu1 %v649_v43  ;;  %772 = vmatpush.msra.mxu3 %v680_v46  ;;  %4930 = vst [vmem:[#allocation11_spill] sm:$0xff] %v3385_v9  ;;  %v624_v19 = vmul.f32 %v3401_v12, %v3401_v12  ;;  %v625_v21 = vmul.f32 %v3403_v13, %v3403_v13  ;;  %v623_v22 = vld [vmem:[%s4845_s6] sm:$0xff] }
  0x32   : > { %703 = vmatpush.msra.mxu0 %v632_v49  ;;  %750 = vmatpush.msra.mxu2 %v3322_v52  ;;  %4931 = vst [vmem:[#allocation12_spill] sm:$0xff] %v3401_v12  ;;  %v812_v37 = vld [vmem:[%s4843_s4] sm:$0xff] }
  0x33   : > { %726 = vmatpush.msra.mxu1 %v648_v50  ;;  %773 = vmatpush.msra.mxu3 %v679_v53  ;;  %4932 = vst [vmem:[#allocation13_spill] sm:$0xff] %v3403_v13 }
  0x34   : > { %704 = vmatpush.msra.mxu0 %v631_v56  ;;  %751 = vmatpush.msra.mxu2 %v3337_v58 }
  0x35   : > { %727 = vmatpush.msra.mxu1 %v647_v57  ;;  %774 = vmatpush.msra.mxu3 %v3342_v59 }
  0x36   : > { %705 = vmatpush.msra.mxu0 %v630_v62  ;;  %752 = vmatpush.msra.mxu2 %v3354_v0 }
  0x37   : > { %728 = vmatpush.msra.mxu1 %v646_v63  ;;  %775 = vmatpush.msra.mxu3 %v3359_v1 }
  0x38   : > { %706 = vmatpush.msra.mxu0 %v3366_v4  ;;  %753 = vmatpush.msra.mxu2 %v3376_v6 }
  0x39   : > { %729 = vmatpush.msra.mxu1 %v3371_v5  ;;  %776 = vmatpush.msra.mxu3 %v3383_v8 }
  0x3a   : > { %754 = vmatmul.f32.vlgmr.msra.gmra.mxu2 %v3378_v7  ;;  %777 = vmatmul.f32.vlgmr.msra.gmra.mxu3 %v3385_v9 }
  0x3b   : > { %707 = vmatpush.msra.mxu0 %v3394_v10  ;;  %730 = vmatpush.msra.mxu1 %v3399_v11 }
  0x3c   : > { %708 = vmatmul.f32.vlgmr.msra.gmra.mxu0 %v3401_v12  ;;  %731 = vmatmul.f32.vlgmr.msra.gmra.mxu1 %v3403_v13 }
  0x3d   : > { %2813 = vset.pattern.permute.xlu0 %v2981_v15  ;;  %2814 = vset.pattern.permute.xlu1 %v2981_v15 }
  0x3e   : > { %801 = vperm.xlu0 %2813, %v622_v14   ;;  %2815 = vset.pattern.permute.xlu2 %v2981_v15 }
  0x3f   : > { %838 = vmatpush.msrb.mxu0 %v812_v37  ;;  %861 = vmatpush.msrb.mxu1 %v813_v38 }
  0x40   : > { %884 = vmatpush.msrb.mxu2 %v814_v39  ;;  %907 = vmatpush.msrb.mxu3 %v815_v41 }
  0x41   : > { %1273 = vmatpush.msra.mxu0 %v812_v37  ;;  %1296 = vmatpush.msra.mxu1 %v813_v38 }
  0x42   : > { %757 = vmatmul.f32.gmra.mxu2 %v626_v17  ;;  %780 = vmatmul.f32.gmra.mxu3 %v627_v18 }
  0x43   : > { %1319 = vmatpush.msra.mxu2 %v814_v39  ;;  %1342 = vmatpush.msra.mxu3 %v815_v41 }
  0x44   : > { %711 = vmatmul.f32.gmra.mxu0 %v624_v19  ;;  %734 = vmatmul.f32.gmra.mxu1 %v625_v21 }
  0x46   : > { %808 = vperm.xlu0 %2813, %v623_v22  }
  0xb0   : > { %v802_v60 = vpop.permute.xlu0 %801 }
  0xb8   : > { %v809_v3 = vpop.permute.xlu0 %808 }
  0xb9   : > { %v709_v23 = vpop.f32.mrf.mxu0  ;;  %v732_v25 = vpop.f32.mrf.mxu1 }
  0xba   : > { %v733_v26 = vadd.f32 %v732_v25, %v709_v23 }
  0xbd   : > { %v755_v27 = vpop.f32.mrf.mxu2  ;;  %v778_v29 = vpop.f32.mrf.mxu3 }
  0xbe   : > { %v756_v30 = vadd.f32 %v755_v27, %v733_v26 }
  0xc0   : > { %v779_v34 = vadd.f32 %v778_v29, %v756_v30 }
  0xc1   : > { %v712_v31 = vpop.f32.mrf.mxu0  ;;  %v735_v33 = vpop.f32.mrf.mxu1 }
  0xc2   : > { %v736_v35 = vadd.f32 %v735_v33, %v712_v31  ;;  %v784_v44 = vmul.f32 0.00390625, %v779_v34 }
  0xc4   : > { %v786_v48 = vmul.f32 %v784_v44, %v784_v44 }
  0xc5   : > { %v758_v42 = vpop.f32.mrf.mxu2  ;;  %v781_v43 = vpop.f32.mrf.mxu3 }
  0xc6   : > { %v759_v46 = vadd.f32 %v758_v42, %v736_v35 }
  0xc8   : > { %v782_v47 = vadd.f32 %v781_v43, %v759_v46 }
  0xca   : > { %v785_v49 = vmul.f32 0.00390625, %v782_v47 }
  0xcc   : > { %v787_v50 = vsub.f32 %v785_v49, %v786_v48 }
  0xce   : > { %v788_v51 = vadd.f32 1e-05, %v787_v50 }
  0xd0   : > { %2816 = vrsqrt.f32 %v788_v51  ;;  %vm795_vm1 = vweird.f32 %v788_v51 }
  0xd6   : > { %v2817_v53 = vpop.eup %2816 }
  0xd7   : > { %v790_v54 = vmul.f32 %v2817_v53, %v788_v51  ;;  %vm796_vm0 = vweird.f32 %v2817_v53 }
  0xd8   : > { %vm797_vm2 = vmor %vm795_vm1, %vm796_vm0 }
  0xd9   : > { %v791_v55 = vmul.f32 %v2817_v53, %v790_v54 }
  0xdb   : > { %v792_v56 = vmul.f32 0.5, %v791_v55 }
  0xdd   : > { %v793_v57 = vsub.f32 1.5, %v792_v56 }
  0xdf   : > { %v794_v61 = vmul.f32 %v2817_v53, %v793_v57 }
  0xe1   : > { %v798_v62 = vsel %vm797_vm2, %v2817_v53, %v794_v61 }
  0xe2   : > { %v804_v63 = vmul.f32 %v802_v60, %v798_v62 }
  0xe4   : > { %2663 = vmatmul.msk.f32.vlgmr.msrb.gmra.mxu0 %vm4888_vm3, %v804_v63  ;;  %2665 = vmatmul.msk.f32.vlgmr.msrb.gmra.mxu1 %vm4888_vm3, %v804_v63  ;;  %v805_v2 = vmul.f32 %v804_v63, %v784_v44 }
  0xe5   : > { %2667 = vmatmul.msk.f32.vlgmr.msrb.gmra.mxu2 %vm4888_vm3, %v804_v63  ;;  %2669 = vmatmul.msk.f32.vlgmr.msrb.gmra.mxu3 %vm4888_vm3, %v804_v63 }
  0xe6   : > { %v811_v14 = vsub.f32 %v809_v3, %v805_v2 }
  0xec   : > { %2664 = vmatmul.msk.f32.gmra.mxu0 %vm4888_vm3, %v811_v14  ;;  %2666 = vmatmul.msk.f32.gmra.mxu1 %vm4888_vm3, %v811_v14 }
  0xed   : > { %2668 = vmatmul.msk.f32.gmra.mxu2 %vm4888_vm3, %v811_v14  ;;  %2670 = vmatmul.msk.f32.gmra.mxu3 %vm4888_vm3, %v811_v14 }
 0x161   : > { %v840_v15 = vpop.f32.mrf.mxu0  ;;  %v863_v17 = vpop.f32.mrf.mxu1 }
 0x162   : > { %v915_v18 = vmul.f32 %v840_v15, %v3401_v12  ;;  %v916_v19 = vmul.f32 %v863_v17, %v3403_v13 }
 0x168   : > { %v886_v21 = vpop.f32.mrf.mxu2  ;;  %v909_v22 = vpop.f32.mrf.mxu3 }
 0x169   : > { %v843_v23 = vpop.f32.mrf.mxu0  ;;  %v866_v25 = vpop.f32.mrf.mxu1  ;;  %v918_v31 = vmul.f32 %v909_v22, %v3385_v9  ;;  %v917_v37 = vmul.f32 %v886_v21, %v3378_v7 }
 0x16a   : > { %v919_v26 = vadd.f32 %v915_v18, %v843_v23  ;;  %v3449_v27 = vadd.f32 %v916_v19, %v866_v25 }
 0x16c   : > { %v2671_v29 = vmul.f32 -1.442695, %v919_v26  ;;  %v2672_v30 = vmul.f32 -1.442695, %v3449_v27 }
 0x16e   : > { %2818 = vpow2.f32 %v2671_v29 }
 0x16f   : > { %2820 = vpow2.f32 %v2672_v30 }
 0x170   : > { %v912_v33 = vpop.f32.mrf.mxu3  ;;  %v889_v34 = vpop.f32.mrf.mxu2 }
 0x171   : > { %v3453_v35 = vadd.f32 %v918_v31, %v912_v33  ;;  %v3457_v41 = vadd.f32 %v917_v37, %v889_v34 }
 0x173   : > { %v2674_v38 = vmul.f32 -1.442695, %v3453_v35  ;;  %v2673_v46 = vmul.f32 -1.442695, %v3457_v41 }
 0x174   : > { %v2819_v39 = vpop.eup %2818 }
 0x175   : > { %v2821_v42 = vpop.eup %2820  ;;  %v935_v43 = vadd.f32 1.0, %v2819_v39  ;;  %2822 = vpow2.f32 %v2674_v38 }
 0x176   : > { %v936_v44 = vadd.f32 1.0, %v2821_v42 }
 0x177   : > { %2824 = vrcp.f32 %v935_v43  ;;  %v950_v55 = vand.u32 2147483648, %v935_v43  ;;  %v948_v61 = vand.u32 2147483647, %v935_v43  ;;  %vm944_vm5 = vweird.f32 %v935_v43 }
 0x178   : > { %2826 = vrcp.f32 %v936_v44  ;;  %v965_v19 = vand.u32 2147483648, %v936_v44  ;;  %vm959_vm9 = vweird.f32 %v936_v44  ;;  %v963_v22 = vand.u32 2147483647, %v936_v44 }
 0x179   : > { %2828 = vpow2.f32 %v2673_v46  ;;  %v951_v2 = vor.u32 1.1754944e-38, %v950_v55  ;;  %vm949_vm7 = vcmp.eq.f32.partialorder %v948_v61, 8.507059e+37  ;;  %v1011_v61 = vlaneseq }
 0x17a   : > { %v966_v29 = vor.u32 1.1754944e-38, %v965_v19  ;;  %vm964_vm11 = vcmp.eq.f32.partialorder %v963_v22, 8.507059e+37 }
 0x17b   : > { %v2823_v47 = vpop.eup %2822 }
 0x17c   : > { %v3460_v49 = vadd.f32 1.0, %v2823_v47 }
 0x17d   : > { %v2825_v48 = vpop.eup %2824 }
 0x17e   : > { %v2827_v50 = vpop.eup %2826  ;;  %v940_v51 = vmul.f32 %v2825_v48, %v935_v43  ;;  %2830 = vrcp.f32 %v3460_v49  ;;  %vm945_vm4 = vweird.f32 %v2825_v48  ;;  %vm989_vm13 = vweird.f32 %v3460_v49 }
 0x17f   : > { %v955_v53 = vmul.f32 %v2827_v50, %v936_v44  ;;  %v2829_v57 = vpop.eup %2828  ;;  %vm946_vm6 = vmor %vm944_vm5, %vm945_vm4  ;;  %vm960_vm8 = vweird.f32 %v2827_v50  ;;  %v993_v42 = vand.u32 2147483647, %v3460_v49 }
 0x180   : > { %v941_v54 = vsub.f32 1.0, %v940_v51  ;;  %v3463_v3 = vadd.f32 1.0, %v2829_v57  ;;  %vm961_vm10 = vmor %vm959_vm9, %vm960_vm8 }
 0x181   : > { %v956_v56 = vsub.f32 1.0, %v955_v53  ;;  %vm994_vm15 = vcmp.eq.f32.partialorder %v993_v42, 8.507059e+37 }
 0x182   : > { %v942_v60 = vmul.f32 %v2825_v48, %v941_v54  ;;  %2832 = vrcp.f32 %v3463_v3  ;;  %vm974_vm1 = vweird.f32 %v3463_v3 }
 0x183   : > { %v957_v62 = vmul.f32 %v2827_v50, %v956_v56 }
 0x184   : > { %v943_v63 = vadd.f32 %v2825_v48, %v942_v60  ;;  %v2831_v17 = vpop.eup %2830 }
 0x185   : > { %v958_v15 = vadd.f32 %v2827_v50, %v957_v62  ;;  %v985_v25 = vmul.f32 %v2831_v17, %v3460_v49  ;;  %vm990_vm12 = vweird.f32 %v2831_v17 }
 0x186   : > { %v947_v14 = vsel %vm946_vm6, %v2825_v48, %v943_v63  ;;  %vm991_vm14 = vmor %vm989_vm13, %vm990_vm12  ;;  %vm1359_vm6 = vcmask 1043456  }
 0x187   : > { %v952_v18 = vsel %vm949_vm7, %v951_v2, %v947_v14  ;;  %v962_v23 = vsel %vm961_vm10, %v2827_v50, %v958_v15  ;;  %v986_v30 = vsub.f32 1.0, %v985_v25  ;;  %v978_v50 = vand.u32 2147483647, %v3463_v3  ;;  %v2681_v14 = vld [vmem:[%s4933_s0 + $0x20] ss:$8 sm:$0xf] }
 0x188   : > { %v3465_v21 = vmul.f32 %v952_v18, %v919_v26  ;;  %v967_v26 = vsel %vm964_vm11, %v966_v29, %v962_v23  ;;  %v2833_v31 = vpop.eup %2832  ;;  %v3570_v15 = vperm.slane %v2681_v14, 0  ;;  %v3585_v25 = vld [vmem:[%s4933_s0 + $0x7] ss:$8 sm:$0xf] }
 0x189   : > { %v3476_v33 = vmul.f32 %v967_v26, %v3449_v27  ;;  %v970_v34 = vmul.f32 %v2833_v31, %v3463_v3  ;;  %v987_v37 = vmul.f32 %v2831_v17, %v986_v30  ;;  %v995_v27 = vand.u32 2147483648, %v3460_v49  ;;  %v2679_v29 = vld [vmem:[%s4933_s0 + $0x6] ss:$8 sm:$0xf] }
 0x18a   : > { %1172 = vrot.lane.b32.xlu1 %v3465_v21, %s2982_s23  ;;  %1144 = vrot.lane.b32.xlu0 %v3465_v21, %s2983_s21  ;;  %vm975_vm0 = vweird.f32 %v2833_v31  ;;  %v980_v49 = vand.u32 2147483648, %v3463_v3  ;;  %vm979_vm4 = vcmp.eq.f32.partialorder %v978_v50, 8.507059e+37  ;;  %v3564_v3 = vand.u32 127, %v1011_v61 }
 0x18b   : > { %1200 = vrot.lane.b32.xlu2 %v3465_v21, %s4884_s24  ;;  %v971_v38 = vsub.f32 1.0, %v970_v34  ;;  %v988_v39 = vadd.f32 %v2831_v17, %v987_v37  ;;  %v996_v46 = vor.u32 1.1754944e-38, %v995_v27  ;;  %vm976_vm2 = vmor %vm974_vm1, %vm975_vm0  ;;  %v3596_v34 = vperm.slane %v2679_v29, 0 }
 0x18c   : > { %v981_v54 = vor.u32 1.1754944e-38, %v980_v49  ;;  %vm1208_vm5 = vcmp.lt.s32.totalorder %v3564_v3, 111  ;;  %vm1180_vm7 = vcmp.lt.s32.totalorder %v3564_v3, 112  ;;  %vm1152_vm8 = vcmp.lt.s32.totalorder %v3564_v3, 113 }
 0x18d   : > { %v972_v43 = vmul.f32 %v2833_v31, %v971_v38  ;;  %v992_v44 = vsel %vm991_vm14, %v2831_v17, %v988_v39  ;;  %vm1124_vm9 = vcmp.lt.s32.totalorder %v3564_v3, 127  ;;  %v3676_v13 = vperm.slane %v3585_v25, 1 }
 0x18e   : > { %v997_v47 = vsel %vm994_vm15, %v996_v46, %v992_v44  ;;  %vm1096_vm10 = vcmp.lt.s32.totalorder %v3564_v3, 1  ;;  %vm4889_vm11 = vcmp.lt.s32.totalorder %v3564_v3, 17  ;;  %vm1068_vm12 = vcmp.lt.s32.totalorder %v3564_v3, 15 }
 0x18f   : > { %v973_v48 = vadd.f32 %v2833_v31, %v972_v43  ;;  %v3498_v51 = vmul.f32 %v997_v47, %v3453_v35  ;;  %v1430_v35 = vld [vmem:[%s4850_s11] sm:$0xff]  ;;  %vm1040_vm13 = vcmp.lt.s32.totalorder %v3564_v3, 16  ;;  %vm1355_vm14 = vcmask 588800  }
 0x190   : > { %vm1563_vm15 = vcmask 130048  }
 0x191   : > { %v977_v53 = vsel %vm976_vm2, %v2833_v31, %v973_v48  ;;  %v3593_v31 = vperm.slane %v3585_v25, 0 }
 0x192   : > { %1202 = vrot.lane.b32.xlu1 %v3476_v33, %s4884_s24  ;;  %1062 = vrot.lane.b32.xlu0 %v3476_v33, %s4880_s27  ;;  %v982_v55 = vsel %vm979_vm4, %v981_v54, %v977_v53  ;;  %v3624_v54 = vperm.slane %v2681_v14, 1 }
 0x193   : > { %1116 = vrot.lane.b32.xlu2 %v3465_v21, %s4886_s30  ;;  %v3507_v56 = vmul.f32 %v982_v55, %v3457_v41 }
 0x194   : > { %4935 = vst [vmem:[#allocation14_spill] sm:$0xff] %v3624_v54 }
 0x19a   : > { %1174 = vrot.lane.b32.xlu1 %v3476_v33, %s2982_s23  ;;  %1146 = vrot.lane.b32.xlu0 %v3476_v33, %s2983_s21 }
 0x19b   : > { %1090 = vrot.lane.b32.xlu2 %v3476_v33, %s4882_s19 }
 0x1a2   : > { %1034 = vrot.lane.b32.xlu1 %v3476_v33, %s4866_s1  ;;  %1150 = vrot.lane.b32.xlu0 %v3498_v51, %s2983_s21 }
 0x1a3   : > { %1005 = vrot.lane.b32.xlu2 %v3476_v33, %s4864_s20 }
 0x1aa   : > { %1204 = vrot.lane.b32.xlu1 %v3507_v56, %s4884_s24  ;;  %1122 = vrot.lane.b32.xlu0 %v3498_v51, %s4886_s30 }
 0x1ab   : > { %1148 = vrot.lane.b32.xlu2 %v3507_v56, %s2983_s21 }
 0x1b2   : > { %1206 = vrot.lane.b32.xlu1 %v3498_v51, %s4884_s24  ;;  %1092 = vrot.lane.b32.xlu0 %v3507_v56, %s4882_s19  ;;  %s4954_s24 = smov 16  }
 0x1b3   : > { %1178 = vrot.lane.b32.xlu2 %v3498_v51, %s2982_s23 }
 0x1ba   : > { %1176 = vrot.lane.b32.xlu1 %v3507_v56, %s2982_s23  ;;  %1007 = vrot.lane.b32.xlu0 %v3507_v56, %s4864_s20 }
 0x1bb   : > { %1120 = vrot.lane.b32.xlu2 %v3507_v56, %s4886_s30 }
 0x1c2   : > { %1064 = vrot.lane.b32.xlu1 %v3507_v56, %s4880_s27  ;;  %1060 = vrot.lane.b32.xlu0 %v3465_v21, %s4880_s27 }
 0x1c3   : > { %1094 = vrot.lane.b32.xlu2 %v3498_v51, %s4882_s19 }
 0x1ca   : > { %1066 = vrot.lane.b32.xlu1 %v3498_v51, %s4880_s27  ;;  %1009 = vrot.lane.b32.xlu0 %v3498_v51, %s4864_s20  ;;  %s4950_s27 = smov 127  }
 0x1cb   : > { %1036 = vrot.lane.b32.xlu2 %v3507_v56, %s4866_s1 }
 0x1d2   : > { %1038 = vrot.lane.b32.xlu1 %v3498_v51, %s4866_s1  ;;  %1032 = vrot.lane.b32.xlu0 %v3465_v21, %s4866_s1  ;;  %s2757_s1 = sshll.u32 %s595_s22, 4  ;;  %s4953_s22 = smov 15  }
 0x1d3   : > { %1118 = vrot.lane.b32.xlu2 %v3476_v33, %s4886_s30  ;;  %s598_s2 = scalar_lea.vmem %s4934_s25, %s2757_s1  ;;  %s4951_s1 = smov 111  }
 0x1d4   : > { %v1250_v47 = vld [vmem:[%s598_s2] sm:$0xff]  ;;  %v1251_v53 = vld [vmem:[%s598_s2 + $0x8] sm:$0xff]  ;;  %s4955_s30 = smov 17  }
 0x1d5   : > { %2686 = vmatmul.msk.f32.vlgmr.msra.gmra.mxu2 %vm4888_vm3, %v1250_v47  ;;  %2688 = vmatmul.msk.f32.vlgmr.msra.gmra.mxu3 %vm4888_vm3, %v1250_v47 }
 0x1d6   : > { %2684 = vmatmul.msk.f32.vlgmr.msra.gmra.mxu1 %vm4888_vm3, %v1250_v47  ;;  %2682 = vmatmul.msk.f32.vlgmr.msra.gmra.mxu0 %vm4888_vm3, %v1250_v47 }
 0x1da   : > { %1088 = vrot.lane.b32.xlu1 %v3465_v21, %s4882_s19  ;;  %1688 = vperm.xlu0 %2813, %v1430_v35   ;;  %s4952_s19 = smov 1  }
 0x1db   : > { %1003 = vrot.lane.b32.xlu2 %v3465_v21, %s4864_s20 }
 0x1dd   : > { %2687 = vmatmul.msk.f32.gmra.mxu2 %vm4888_vm3, %v1251_v53  ;;  %2689 = vmatmul.msk.f32.gmra.mxu3 %vm4888_vm3, %v1251_v53 }
 0x1de   : > { %2685 = vmatmul.msk.f32.gmra.mxu1 %vm4888_vm3, %v1251_v53  ;;  %2683 = vmatmul.msk.f32.gmra.mxu0 %vm4888_vm3, %v1251_v53 }
 0x1e5   : > { %v3552_v41 = vpop.permute.xlu2 %1200 }
 0x1ed   : > { %v3554_v57 = vpop.permute.xlu2 %1116 }
 0x1f5   : > { %v3556_v60 = vpop.permute.xlu2 %1090 }
 0x1fc   : > { %v3558_v62 = vpop.permute.xlu1 %1172  ;;  %v3560_v63 = vpop.permute.xlu0 %1144 }
 0x1fd   : > { %v3562_v2 = vpop.permute.xlu2 %1005 }
 0x204   : > { %v1203_v17 = vpop.permute.xlu1 %1202  ;;  %v3573_v18 = vpop.permute.xlu0 %1062 }
 0x205   : > { %v1211_v19 = vsel %vm1208_vm5, %v3552_v41, %v1203_v17  ;;  %v3578_v22 = vpop.permute.xlu2 %1148 }
 0x206   : > { %v1224_v23 = vmul.f32 %v3570_v15, %v1211_v19 }
 0x208   : > { %v1244_v26 = vpack.c.bf16 %v1224_v23, %v1224_v23 }
 0x20a   : > { %v1361_v30 = vsel %vm1359_vm6, %v1244_v26, 0 }
 0x20b   : > { %1375 = vmatpush.bf16.msrb.mxu0 %v1361_v30 }
 0x20c   : > { %v3598_v37 = vpop.permute.xlu1 %1174  ;;  %v1147_v38 = vpop.permute.xlu0 %1146 }
 0x20d   : > { %v1183_v39 = vsel %vm1180_vm7, %v3558_v62, %v3598_v37  ;;  %v1155_v27 = vsel %vm1152_vm8, %v3560_v63, %v1147_v38  ;;  %v3607_v42 = vpop.permute.xlu2 %1178 }
 0x20e   : > { %v1196_v43 = vmul.f32 %v3593_v31, %v1183_v39  ;;  %v1168_v44 = vmul.f32 %v3596_v34, %v1155_v27  ;;  %v3634_v39 = vperm.slane %v2681_v14, 2  ;;  %v3636_v27 = vperm.slane %v2681_v14, 3 }
 0x210   : > { %v1240_v46 = vpack.c.bf16 %v1196_v43, %v1168_v44  ;;  %4936 = vst [vmem:[#allocation15_spill] sm:$0xff] %v3634_v39 }
 0x211   : > { %4937 = vst [vmem:[#allocation16_spill] sm:$0xff] %v3636_v27 }
 0x212   : > { %1376 = vmatpush.bf16.msrb.mxu0 %v1240_v46  ;;  %v3640_v46 = vperm.slane %v2679_v29, 3 }
 0x214   : > { %v3618_v48 = vpop.permute.xlu1 %1034  ;;  %v1151_v49 = vpop.permute.xlu0 %1150 }
 0x215   : > { %v3620_v50 = vpop.permute.xlu2 %1120  ;;  %v1156_v14 = vsel %vm1152_vm8, %v1151_v49, %v3560_v63  ;;  %v3667_v63 = vperm.slane %v2679_v29, 2 }
 0x217   : > { %4938 = vst [vmem:[#allocation17_spill] sm:$0xff] %v3667_v63 }
 0x21c   : > { %v1205_v55 = vpop.permute.xlu1 %1204  ;;  %v1123_v35 = vpop.permute.xlu0 %1122 }
 0x21d   : > { %v1210_v61 = vsel %vm1208_vm5, %v1203_v17, %v1205_v55  ;;  %v3630_v19 = vpop.permute.xlu2 %1094  ;;  %v1128_v12 = vsel %vm1124_vm9, %v1123_v35, %v3554_v57 }
 0x21e   : > { %v1225_v23 = vmul.f32 %v3624_v54, %v1210_v61  ;;  %v2678_v61 = vld [vmem:[%s4933_s0 + $0x5] ss:$8 sm:$0xf] }
 0x21f   : > { %v3673_v9 = vperm.slane %v2678_v61, 3 }
 0x220   : > { %v1245_v26 = vpack.c.bf16 %v1225_v23, %v1225_v23 }
 0x221   : > { %4939 = vst [vmem:[#allocation18_spill] sm:$0xff] %v3673_v9  ;;  %v1143_v54 = vmul.f32 %v3673_v9, %v1128_v12 }
 0x222   : > { %v1364_v30 = vsel %vm1359_vm6, %v1245_v26, 0 }
 0x223   : > { %1389 = vmatpush.bf16.msrb.mxu1 %v1364_v30  ;;  %v3657_v30 = vperm.slane %v2679_v29, 1 }
 0x224   : > { %v1207_v43 = vpop.permute.xlu1 %1206  ;;  %v3638_v44 = vpop.permute.xlu0 %1092 }
 0x225   : > { %v1209_v17 = vsel %vm1208_vm5, %v1205_v55, %v1207_v43  ;;  %v1212_v47 = vsel %vm1208_vm5, %v1207_v43, %v3552_v41  ;;  %v3647_v53 = vpop.permute.xlu2 %1036  ;;  %v3660_v55 = vperm.slane %v3585_v25, 3  ;;  %v1184_v41 = vsel %vm1180_vm7, %v3607_v42, %v3558_v62 }
 0x226   : > { %v1226_v23 = vmul.f32 %v3634_v39, %v1209_v17  ;;  %v1227_v26 = vmul.f32 %v3636_v27, %v1212_v47  ;;  %v1154_v17 = vsel %vm1152_vm8, %v1147_v38, %v3578_v22  ;;  %v1171_v47 = vmul.f32 %v3640_v46, %v1156_v14 }
 0x227   : > { %v1199_v38 = vmul.f32 %v3660_v55, %v1184_v41  ;;  %v1153_v14 = vsel %vm1152_vm8, %v3578_v22, %v1151_v49  ;;  %v1169_v27 = vmul.f32 %v3657_v30, %v1154_v17  ;;  %v3700_v41 = vperm.slane %v2678_v61, 1 }
 0x228   : > { %v1246_v43 = vpack.c.bf16 %v1226_v23, %v1226_v23  ;;  %v1247_v7 = vpack.c.bf16 %v1227_v26, %v1227_v26  ;;  %v3684_v23 = vperm.slane %v3585_v25, 2  ;;  %v3690_v26 = vperm.slane %v2678_v61, 2 }
 0x229   : > { %v3698_v25 = vperm.slane %v2678_v61, 0 }
 0x22a   : > { %v1367_v62 = vsel %vm1359_vm6, %v1246_v43, 0  ;;  %v1370_v29 = vsel %vm1359_vm6, %v1247_v7, 0  ;;  %4940 = vst [vmem:[#allocation19_spill] sm:$0xff] %v3690_v26  ;;  %v1125_v43 = vsel %vm1124_vm9, %v3620_v50, %v1123_v35  ;;  %v1170_v35 = vmul.f32 %v3667_v63, %v1153_v14 }
 0x22b   : > { %1403 = vmatpush.bf16.msrb.mxu2 %v1367_v62  ;;  %1417 = vmatpush.bf16.msrb.mxu3 %v1370_v29  ;;  %v1243_v62 = vpack.c.bf16 %v1199_v38, %v1171_v47  ;;  %v3713_v29 = vld [vmem:[%s4933_s0 + $0x3] ss:$8 sm:$0xf]  ;;  %v1142_v9 = vmul.f32 %v3690_v26, %v1125_v43  ;;  %v3728_v47 = vld [vmem:[%s4933_s0 + $0x2] ss:$8 sm:$0xf] }
 0x22c   : > { %v1177_v7 = vpop.permute.xlu1 %1176  ;;  %v3696_v39 = vpop.permute.xlu0 %1007  ;;  %v3733_v43 = vperm.slane %v3713_v29, 2 }
 0x22d   : > { %v1181_v22 = vsel %vm1180_vm7, %v1177_v7, %v3607_v42  ;;  %v1182_v49 = vsel %vm1180_vm7, %v3598_v37, %v1177_v7  ;;  %v1119_v17 = vpop.permute.xlu2 %1118 }
 0x22e   : > { %v1197_v61 = vmul.f32 %v3676_v13, %v1182_v49  ;;  %v1198_v12 = vmul.f32 %v3684_v23, %v1181_v22  ;;  %v1126_v42 = vsel %vm1124_vm9, %v1119_v17, %v3620_v50  ;;  %v1127_v37 = vsel %vm1124_vm9, %v3554_v57, %v1119_v17  ;;  %4941 = vst [vmem:[#allocation20_spill] sm:$0xff] %v3733_v43  ;;  %v3738_v22 = vld [vmem:[%s4933_s0] ss:$8 sm:$0xf] }
 0x22f   : > { %1418 = vmatpush.bf16.msrb.mxu3 %v1243_v62  ;;  %v1140_v38 = vmul.f32 %v3698_v25, %v1127_v37  ;;  %v1141_v14 = vmul.f32 %v3700_v41, %v1126_v42  ;;  %v1239_v57 = vpack.c.bf16 %v1143_v54, %v3498_v51  ;;  %v1098_v17 = vsel %vm1096_vm10, %v3556_v60, %v3638_v44  ;;  %v3754_v51 = vld [vmem:[%s4933_s0 + $0x1] ss:$8 sm:$0xf] }
 0x230   : > { %v1241_v7 = vpack.c.bf16 %v1197_v61, %v1169_v27  ;;  %v1242_v50 = vpack.c.bf16 %v1198_v12, %v1170_v35  ;;  %v3745_v27 = vperm.slane %v3728_v47, 2  ;;  %v1238_v35 = vpack.c.bf16 %v1142_v9, %v3507_v56 }
 0x231   : > { %v1236_v49 = vpack.c.bf16 %v1140_v38, %v3465_v21  ;;  %v3758_v21 = vperm.slane %v3738_v22, 2  ;;  %v1237_v62 = vpack.c.bf16 %v1141_v14, %v3476_v33  ;;  %v1015_v61 = vsel %vm4889_vm11, %v3562_v2, %v3696_v39 }
 0x232   : > { %1390 = vmatpush.bf16.msrb.mxu1 %v1241_v7  ;;  %1404 = vmatpush.bf16.msrb.mxu2 %v1242_v50  ;;  %4942 = vst [vmem:[#allocation21_spill] sm:$0xff] %v3745_v27  ;;  %v1114_v37 = vmul.f32 %v3733_v43, %v1098_v17  ;;  %v3771_v38 = vperm.slane %v3754_v51, 2  ;;  %v1042_v9 = vsel %vm1040_vm13, %v3618_v48, %v3647_v53  ;;  %v3780_v14 = vperm.slane %v3713_v29, 3 }
 0x233   : > { %1419 = vmatpush.bf16.msrb.mxu3 %v1239_v57  ;;  %4943 = vst [vmem:[#allocation22_spill] sm:$0xff] %v3758_v21  ;;  %1377 = vmatpush.bf16.msrb.mxu0 %v1236_v49  ;;  %v1030_v33 = vmul.f32 %v3758_v21, %v1015_v61  ;;  %v3784_v57 = vperm.slane %v3728_v47, 3  ;;  %v1097_v49 = vsel %vm1096_vm10, %v3638_v44, %v3630_v19  ;;  %v3795_v61 = vld [vmem:[%s4848_s9] sm:$0xff]  ;;  %v2868_v44 = vld [vmem:[%s4842_s3 + $0x178] sm:$0xff] }
 0x234   : > { %v1065_v54 = vpop.permute.xlu1 %1064  ;;  %v1061_v42 = vpop.permute.xlu0 %1060  ;;  %4944 = vst [vmem:[#allocation23_spill] sm:$0xff] %v3771_v38  ;;  %v1058_v50 = vmul.f32 %v3771_v38, %v1042_v9 }
 0x235   : > { %v1070_v12 = vsel %vm1068_vm12, %v3573_v18, %v1065_v54  ;;  %4945 = vst [vmem:[#allocation24_spill] sm:$0xff] %v3780_v14 }
 0x236   : > { %v1086_v7 = vmul.f32 %v3745_v27, %v1070_v12  ;;  %1391 = vmatpush.bf16.msrb.mxu1 %v1237_v62  ;;  %1405 = vmatpush.bf16.msrb.mxu2 %v1238_v35  ;;  %4946 = vst [vmem:[#allocation25_spill] sm:$0xff] %v3784_v57  ;;  %v1230_v62 = vpack.c.bf16 %v1058_v50, %v1030_v33  ;;  %v3808_v33 = vperm.slane %v3754_v51, 3 }
 0x237   : > { %v1115_v12 = vmul.f32 %v3780_v14, %v1097_v49 }
 0x238   : > { %v1234_v56 = vpack.c.bf16 %v1114_v37, %v1086_v7  ;;  %4948 = vst [vmem:[#allocation27_spill] sm:$0xff] %v3808_v33 }
 0x23a   : > { %1406 = vmatpush.bf16.msrb.mxu2 %v1234_v56  ;;  %v2869_v56 = vld [vmem:[%s4842_s3 + $0x170] sm:$0xff] }
 0x23c   : > { %v1067_v17 = vpop.permute.xlu1 %1066  ;;  %v1010_v7 = vpop.permute.xlu0 %1009 }
 0x23d   : > { %v1069_v35 = vsel %vm1068_vm12, %v1065_v54, %v1067_v17  ;;  %v3805_v54 = vperm.slane %v3738_v22, 3  ;;  %v1014_v50 = vsel %vm4889_vm11, %v3696_v39, %v1010_v7 }
 0x23e   : > { %v1087_v37 = vmul.f32 %v3784_v57, %v1069_v35  ;;  %1407 = vmatpush.bf16.msrb.mxu2 %v1230_v62  ;;  %v2870_v62 = vld [vmem:[%s4842_s3 + $0x168] sm:$0xff] }
 0x23f   : > { %4947 = vst [vmem:[#allocation26_spill] sm:$0xff] %v3805_v54 }
 0x240   : > { %v1235_v9 = vpack.c.bf16 %v1115_v12, %v1087_v37  ;;  %v1031_v12 = vmul.f32 %v3805_v54, %v1014_v50  ;;  %v3835_v50 = vperm.slane %v3728_v47, 0 }
 0x241   : > { %2696 = vmatmul.msk.bf16.vlgmr.msrb.gmra.mxu2 %vm1355_vm14, %v3795_v61 }
 0x242   : > { %1501 = vmatpush.msra.mxu2 %v2868_v44  ;;  %1420 = vmatpush.bf16.msrb.mxu3 %v1235_v9  ;;  %v2871_v44 = vld [vmem:[%s4842_s3 + $0x160] sm:$0xff]  ;;  %v3829_v9 = vperm.slane %v3728_v47, 1  ;;  %v3853_v47 = vperm.slane %v3738_v22, 1 }
 0x244   : > { %1502 = vmatpush.msra.mxu2 %v2869_v56  ;;  %v1039_v49 = vpop.permute.xlu1 %1038  ;;  %v1033_v56 = vpop.permute.xlu0 %1032  ;;  %4949 = vst [vmem:[#allocation28_spill] sm:$0xff] %v3853_v47 }
 0x245   : > { %v1041_v35 = vsel %vm1040_vm13, %v3647_v53, %v1039_v49  ;;  %v1071_v53 = vsel %vm1068_vm12, %v1061_v42, %v3573_v18  ;;  %v2872_v18 = vld [vmem:[%s4842_s3 + $0x1f8] sm:$0xff] }
 0x246   : > { %1503 = vmatpush.msra.mxu2 %v2870_v62  ;;  %v1059_v37 = vmul.f32 %v3808_v33, %v1041_v35  ;;  %v3838_v62 = vperm.slane %v3713_v29, 0  ;;  %v3841_v35 = vperm.slane %v3713_v29, 1  ;;  %v3856_v29 = vperm.slane %v3754_v51, 1 }
 0x248   : > { %1504 = vmatpush.msra.mxu2 %v2871_v44  ;;  %v1231_v39 = vpack.c.bf16 %v1059_v37, %v1031_v12  ;;  %v3847_v12 = vperm.slane %v3754_v51, 0  ;;  %v1004_v37 = vpop.permute.xlu2 %1003 }
 0x24a   : > { %1505 = vmatpush.msra.mxu2 %v3193_v16  ;;  %1421 = vmatpush.bf16.msrb.mxu3 %v1231_v39  ;;  %v1072_v16 = vsel %vm1068_vm12, %v1067_v17, %v1061_v42  ;;  %v1085_v42 = vmul.f32 %v3829_v9, %v1071_v53  ;;  %v1043_v17 = vsel %vm1040_vm13, %v1033_v56, %v3618_v48 }
 0x24c   : > { %1506 = vmatpush.msra.mxu2 %v3207_v20  ;;  %v1044_v20 = vsel %vm1040_vm13, %v1039_v49, %v1033_v56  ;;  %v1089_v44 = vpop.permute.xlu1 %1088  ;;  %v1084_v49 = vmul.f32 %v3835_v50, %v1072_v16  ;;  %v1017_v56 = vsel %vm4889_vm11, %v1010_v7, %v1004_v37  ;;  %v1057_v16 = vmul.f32 %v3856_v29, %v1043_v17  ;;  %v2875_v7 = vld [vmem:[%s4842_s3 + $0x1e0] sm:$0xff]  ;;  %v2880_v17 = vld [vmem:[%s4842_s3 + $0x70] sm:$0xff] }
 0x24d   : > { %v1099_v39 = vsel %vm1096_vm10, %v1089_v44, %v3556_v60  ;;  %v1100_v51 = vsel %vm1096_vm10, %v3630_v19, %v1089_v44  ;;  %2697 = vmatmul.msk.bf16.vlgmr.msrb.gmra.mxu3 %vm1355_vm14, %v3795_v61  ;;  %v2873_v60 = vld [vmem:[%s4842_s3 + $0x1f0] sm:$0xff]  ;;  %v1016_v19 = vsel %vm4889_vm11, %v1004_v37, %v3562_v2 }
 0x24e   : > { %1530 = vmatpush.msra.mxu3 %v2872_v18  ;;  %1507 = vmatpush.msra.mxu2 %v3228_v24  ;;  %v3875_v24 = vperm.slane %v3738_v22, 0  ;;  %v1112_v53 = vmul.f32 %v3838_v62, %v1100_v51  ;;  %v1113_v48 = vmul.f32 %v3841_v35, %v1099_v39  ;;  %v1056_v22 = vmul.f32 %v3847_v12, %v1044_v20  ;;  %v2876_v20 = vld [vmem:[%s4842_s3 + $0x1d8] sm:$0xff]  ;;  %v2882_v51 = vld [vmem:[%s4842_s3 + $0x1c8] sm:$0xff] }
 0x24f   : > { %v1029_v39 = vmul.f32 %v3853_v47, %v1016_v19  ;;  %v2890_v19 = vld [vmem:[%s4842_s3 + $0xd8] sm:$0xff] }
 0x250   : > { %1508 = vmatpush.msra.mxu2 %v3243_v28  ;;  %1531 = vmatpush.msra.mxu3 %v2873_v60  ;;  %v1232_v18 = vpack.c.bf16 %v1112_v53, %v1084_v49  ;;  %v1233_v44 = vpack.c.bf16 %v1113_v48, %v1085_v42  ;;  %v2874_v28 = vld [vmem:[%s4842_s3 + $0x1e8] sm:$0xff]  ;;  %v1028_v2 = vmul.f32 %v3875_v24, %v1017_v56  ;;  %v2878_v42 = vld [vmem:[%s4842_s3 + $0xf8] sm:$0xff]  ;;  %v2886_v53 = vld [vmem:[%s4842_s3 + $0x60] sm:$0xff] }
 0x251   : > { %v2884_v49 = vld [vmem:[%s4842_s3 + $0xe8] sm:$0xff]  ;;  %v2887_v48 = vld [vmem:[%s4842_s3 + $0xe0] sm:$0xff]  ;;  %v2889_v60 = vld [vmem:[%s4842_s3 + $0x58] sm:$0xff] }
 0x252   : > { %1509 = vmatpush.msra.mxu2 %v3259_v32  ;;  %1532 = vmatpush.msra.mxu3 %v2874_v28  ;;  %v1228_v37 = vpack.c.bf16 %v1056_v22, %v1028_v2  ;;  %v1229_v32 = vpack.c.bf16 %v1057_v16, %v1029_v39  ;;  %v2892_v56 = vld [vmem:[%s4842_s3 + $0x50] sm:$0xff]  ;;  %v2894_v16 = vld [vmem:[%s4842_s3 + $0x1a8] sm:$0xff]  ;;  %v2898_v28 = vld [vmem:[%s4842_s3 + $0x40] sm:$0xff] }
 0x253   : > { %1378 = vmatpush.bf16.msrb.mxu0 %v1232_v18  ;;  %1392 = vmatpush.bf16.msrb.mxu1 %v1233_v44  ;;  %v2893_v22 = vld [vmem:[%s4842_s3 + $0xd0] sm:$0xff]  ;;  %v2896_v18 = vld [vmem:[%s4842_s3 + $0xc8] sm:$0xff]  ;;  %v2897_v44 = vld [vmem:[%s4842_s3 + $0x1a0] sm:$0xff] }
 0x254   : > { %1510 = vmatpush.msra.mxu2 %v3274_v36  ;;  %1533 = vmatpush.msra.mxu3 %v2875_v7  ;;  %v2877_v36 = vld [vmem:[%s4842_s3 + $0x78] sm:$0xff]  ;;  %v2899_v39 = vld [vmem:[%s4842_s3 + $0xc0] sm:$0xff] }
 0x255   : > { %v2900_v2 = vld [vmem:[%s4842_s3 + $0x198] sm:$0xff] }
 0x256   : > { %1511 = vmatpush.msra.mxu2 %v3292_v40  ;;  %1534 = vmatpush.msra.mxu3 %v2876_v20  ;;  %v2879_v40 = vld [vmem:[%s4842_s3 + $0x1d0] sm:$0xff]  ;;  %v2901_v7 = vld [vmem:[%s4842_s3 + $0x38] sm:$0xff] }
 0x257   : > { %1379 = vmatpush.bf16.msrb.mxu0 %v1228_v37  ;;  %1393 = vmatpush.bf16.msrb.mxu1 %v1229_v32  ;;  %v2902_v37 = vld [vmem:[%s4842_s3 + $0xb8] sm:$0xff]  ;;  %v2903_v32 = vld [vmem:[%s4842_s3 + $0x30] sm:$0xff] }
 0x258   : > { %1512 = vmatpush.msra.mxu2 %v3307_v45  ;;  %1535 = vmatpush.msra.mxu3 %v2879_v40  ;;  %v2881_v45 = vld [vmem:[%s4842_s3 + $0xf0] sm:$0xff]  ;;  %v2909_v40 = vld [vmem:[%s4842_s3 + $0x18] sm:$0xff] }
 0x259   : > { %v2904_v20 = vld [vmem:[%s4842_s3 + $0xb0] sm:$0xff] }
 0x25a   : > { %2694 = vmatmul.msk.bf16.vlgmr.msrb.gmra.mxu0 %vm1355_vm14, %v3795_v61  ;;  %2695 = vmatmul.msk.bf16.vlgmr.msrb.gmra.mxu1 %vm1355_vm14, %v3795_v61  ;;  %v2883_v61 = vld [vmem:[%s4842_s3 + $0x68] sm:$0xff] }
 0x25b   : > { %1443 = vmatpush.msra.mxu0 %v2877_v36  ;;  %1472 = vmatpush.msra.mxu1 %v2878_v42  ;;  %v2905_v36 = vld [vmem:[%s4842_s3 + $0x28] sm:$0xff]  ;;  %v2907_v42 = vld [vmem:[%s4842_s3 + $0x20] sm:$0xff] }
 0x25c   : > { %1513 = vmatpush.msra.mxu2 %v3322_v52  ;;  %1536 = vmatpush.msra.mxu3 %v2882_v51  ;;  %v2885_v52 = vld [vmem:[%s4842_s3 + $0x1c0] sm:$0xff]  ;;  %v1321_v51 = vpop.f32.mrf.mxu2 }
 0x25d   : > { %1444 = vmatpush.msra.mxu0 %v2880_v17  ;;  %1473 = vmatpush.msra.mxu1 %v2881_v45  ;;  %v2910_v17 = vld [vmem:[%s4842_s3 + $0x98] sm:$0xff]  ;;  %v2912_v45 = vld [vmem:[%s4842_s3 + $0x90] sm:$0xff] }
 0x25e   : > { %1514 = vmatpush.msra.mxu2 %v3337_v58  ;;  %1537 = vmatpush.msra.mxu3 %v2885_v52  ;;  %v2888_v58 = vld [vmem:[%s4842_s3 + $0x1b8] sm:$0xff]  ;;  %v1275_v52 = vpop.f32.mrf.mxu0 }
 0x25f   : > { %1445 = vmatpush.msra.mxu0 %v2883_v61  ;;  %1474 = vmatpush.msra.mxu1 %v2884_v49  ;;  %v1344_v49 = vpop.f32.mrf.mxu3 }
 0x260   : > { %1515 = vmatpush.msra.mxu2 %v3354_v0  ;;  %1538 = vmatpush.msra.mxu3 %v2888_v58  ;;  %v2891_v0 = vld [vmem:[%s4842_s3 + $0x1b0] sm:$0xff] }
 0x261   : > { %1446 = vmatpush.msra.mxu0 %v2886_v53  ;;  %1475 = vmatpush.msra.mxu1 %v2887_v48  ;;  %v1298_v53 = vpop.f32.mrf.mxu1 }
 0x262   : > { %1516 = vmatpush.msra.mxu2 %v3376_v6  ;;  %1539 = vmatpush.msra.mxu3 %v2891_v0  ;;  %v2895_v6 = vld [vmem:[%s4842_s3 + $0x48] sm:$0xff] }
 0x263   : > { %1447 = vmatpush.msra.mxu0 %v2889_v60  ;;  %1476 = vmatpush.msra.mxu1 %v2890_v19 }
 0x264   : > { %1540 = vmatpush.msra.mxu3 %v2894_v16  ;;  %v1324_v61 = vpop.f32.mrf.mxu2 }
 0x265   : > { %1448 = vmatpush.msra.mxu0 %v2892_v56  ;;  %1477 = vmatpush.msra.mxu1 %v2893_v22 }
 0x266   : > { %1541 = vmatpush.msra.mxu3 %v2897_v44  ;;  %v1278_v19 = vpop.f32.mrf.mxu0 }
 0x267   : > { %1449 = vmatpush.msra.mxu0 %v2895_v6  ;;  %1478 = vmatpush.msra.mxu1 %v2896_v18  ;;  %v1347_v60 = vpop.f32.mrf.mxu3 }
 0x268   : > { %1542 = vmatpush.msra.mxu3 %v2900_v2 }
 0x269   : > { %1450 = vmatpush.msra.mxu0 %v2898_v28  ;;  %1479 = vmatpush.msra.mxu1 %v2899_v39 }
 0x26a   : > { %1543 = vmatpush.msra.mxu3 %v3342_v59  ;;  %v2906_v59 = vld [vmem:[%s4842_s3 + $0xa8] sm:$0xff] }
 0x26b   : > { %1451 = vmatpush.msra.mxu0 %v2901_v7  ;;  %1480 = vmatpush.msra.mxu1 %v2902_v37 }
 0x26c   : > { %1544 = vmatpush.msra.mxu3 %v3359_v1  ;;  %v2908_v1 = vld [vmem:[%s4842_s3 + $0xa0] sm:$0xff] }
 0x26d   : > { %1452 = vmatpush.msra.mxu0 %v2903_v32  ;;  %1481 = vmatpush.msra.mxu1 %v2904_v20 }
 0x26e   : > { %1545 = vmatpush.msra.mxu3 %v3383_v8  ;;  %v2911_v8 = vld [vmem:[%s4842_s3 + $0x10] sm:$0xff] }
 0x26f   : > { %1453 = vmatpush.msra.mxu0 %v2905_v36  ;;  %1482 = vmatpush.msra.mxu1 %v2906_v59 }
 0x271   : > { %1454 = vmatpush.msra.mxu0 %v2907_v42  ;;  %1483 = vmatpush.msra.mxu1 %v2908_v1 }
 0x273   : > { %1455 = vmatpush.msra.mxu0 %v2909_v40  ;;  %1484 = vmatpush.msra.mxu1 %v2910_v17 }
 0x275   : > { %1456 = vmatpush.msra.mxu0 %v2911_v8  ;;  %1485 = vmatpush.msra.mxu1 %v2912_v45 }
 0x277   : > { %1457 = vmatpush.msra.mxu0 %v3366_v4  ;;  %1486 = vmatpush.msra.mxu1 %v3371_v5  ;;  %v1301_v4 = vpop.f32.mrf.mxu1 }
 0x279   : > { %1458 = vmatpush.msra.mxu0 %v3394_v10  ;;  %1487 = vmatpush.msra.mxu1 %v3399_v11 }
 0x2c4   : > { %v1409_v48 = vpop.f32.mrf.mxu2 }
 0x2c5   : > { %v4028_v58 = vadd.f32 %v1409_v48, %v1321_v51 }
 0x2c7   : > { %1517 = vmatmul.f32.vlgmr.msra.gmra.mxu2 %v4028_v58  ;;  %v1437_v11 = vmul.f32 %v4028_v58, %v4028_v58 }
 0x2cc   : > { %v1411_v0 = vpop.f32.mrf.mxu2 }
 0x2cd   : > { %v4031_v56 = vadd.f32 %v1411_v0, %v1324_v61 }
 0x2cf   : > { %1520 = vmatmul.f32.gmra.mxu2 %v4031_v56  ;;  %v1441_v39 = vmul.f32 %v4031_v56, %v4031_v56 }
 0x2d0   : > { %v1423_v5 = vpop.f32.mrf.mxu3 }
 0x2d1   : > { %v4034_v10 = vadd.f32 %v1423_v5, %v1344_v49 }
 0x2d3   : > { %1546 = vmatmul.f32.vlgmr.msra.gmra.mxu3 %v4034_v10  ;;  %v1438_v20 = vmul.f32 %v4034_v10, %v4034_v10 }
 0x2d7   : > { %v1381_v22 = vpop.f32.mrf.mxu0  ;;  %v1395_v16 = vpop.f32.mrf.mxu1  ;;  %1523 = vmatmul.f32.gmra.mxu2 %v1437_v11 }
 0x2d8   : > { %v4039_v6 = vadd.f32 %v1381_v22, %v1275_v52  ;;  %v4041_v18 = vadd.f32 %v1395_v16, %v1298_v53  ;;  %v1425_v44 = vpop.f32.mrf.mxu3 }
 0x2d9   : > { %v4043_v28 = vadd.f32 %v1425_v44, %v1347_v60 }
 0x2da   : > { %1459 = vmatmul.f32.vlgmr.msra.gmra.mxu0 %v4039_v6  ;;  %1488 = vmatmul.f32.vlgmr.msra.gmra.mxu1 %v4041_v18  ;;  %v1435_v36 = vmul.f32 %v4039_v6, %v4039_v6  ;;  %v1436_v59 = vmul.f32 %v4041_v18, %v4041_v18 }
 0x2db   : > { %1549 = vmatmul.f32.gmra.mxu3 %v4043_v28  ;;  %v1442_v42 = vmul.f32 %v4043_v28, %v4043_v28 }
 0x2df   : > { %v1383_v2 = vpop.f32.mrf.mxu0  ;;  %v1397_v7 = vpop.f32.mrf.mxu1  ;;  %1526 = vmatmul.f32.gmra.mxu2 %v1441_v39 }
 0x2e0   : > { %v4050_v37 = vadd.f32 %v1383_v2, %v1278_v19  ;;  %v4052_v32 = vadd.f32 %v1397_v7, %v1301_v4  ;;  %v1432_v2 = vld [vmem:[%s4851_s12] sm:$0xff] }
 0x2e2   : > { %1462 = vmatmul.f32.gmra.mxu0 %v4050_v37  ;;  %1491 = vmatmul.f32.gmra.mxu1 %v4052_v32  ;;  %v1439_v1 = vmul.f32 %v4050_v37, %v4050_v37  ;;  %v1440_v40 = vmul.f32 %v4052_v32, %v4052_v32 }
 0x2e3   : > { %1552 = vmatmul.f32.gmra.mxu3 %v1438_v20 }
 0x2ea   : > { %1465 = vmatmul.f32.gmra.mxu0 %v1435_v36  ;;  %1494 = vmatmul.f32.gmra.mxu1 %v1436_v59  ;;  %v2913_v36 = vld [vmem:[%s4843_s4] sm:$0xff] }
 0x2eb   : > { %1555 = vmatmul.f32.gmra.mxu3 %v1442_v42 }
 0x2f2   : > { %1468 = vmatmul.f32.gmra.mxu0 %v1439_v1  ;;  %1497 = vmatmul.f32.gmra.mxu1 %v1440_v40 }
 0x34a   : > { %v1518_v17 = vpop.f32.mrf.mxu2 }
 0x352   : > { %v1521_v61 = vpop.f32.mrf.mxu2 }
 0x356   : > { %v1547_v51 = vpop.f32.mrf.mxu3 }
 0x357   : > { %v1460_v8 = vpop.f32.mrf.mxu0  ;;  %v1489_v45 = vpop.f32.mrf.mxu1 }
 0x358   : > { %v1490_v49 = vadd.f32 %v1489_v45, %v1460_v8 }
 0x35a   : > { %v1519_v48 = vadd.f32 %v1518_v17, %v1490_v49  ;;  %v1524_v11 = vpop.f32.mrf.mxu2 }
 0x35c   : > { %v1548_v4 = vadd.f32 %v1547_v51, %v1519_v48 }
 0x35e   : > { %v1550_v19 = vpop.f32.mrf.mxu3  ;;  %v1559_v39 = vmul.f32 0.001953125, %v1548_v4  ;;  %v1434_v4 = vld [vmem:[%s4852_s13 + $0x8] sm:$0xff] }
 0x35f   : > { %v1463_v52 = vpop.f32.mrf.mxu0  ;;  %v1492_v53 = vpop.f32.mrf.mxu1 }
 0x360   : > { %v1493_v60 = vadd.f32 %v1492_v53, %v1463_v52  ;;  %v2914_v53 = vld [vmem:[%s4843_s4 + $0x8] sm:$0xff] }
 0x362   : > { %v1522_v0 = vadd.f32 %v1521_v61, %v1493_v60  ;;  %v1527_v17 = vpop.f32.mrf.mxu2  ;;  %v2915_v60 = vld [vmem:[%s4843_s4 + $0x10] sm:$0xff] }
 0x364   : > { %v1551_v5 = vadd.f32 %v1550_v19, %v1522_v0  ;;  %v1433_v19 = vld [vmem:[%s4852_s13] sm:$0xff] }
 0x366   : > { %v1560_v22 = vmul.f32 0.001953125, %v1551_v5  ;;  %v1553_v7 = vpop.f32.mrf.mxu3 }
 0x367   : > { %v1466_v16 = vpop.f32.mrf.mxu0  ;;  %v1495_v44 = vpop.f32.mrf.mxu1 }
 0x368   : > { %1581 = vmatpush.msrb.mxu0 %v1560_v22  ;;  %v1496_v20 = vadd.f32 %v1495_v44, %v1466_v16  ;;  %v1429_v22 = vld [vmem:[%s4849_s10 + $0x8] sm:$0xff] }
 0x369   : > { %1679 = vperm.xlu2 %2815, %v1429_v22  }
 0x36a   : > { %1582 = vmatpush.msrb.mxu0 %v1559_v39  ;;  %v1525_v1 = vadd.f32 %v1524_v11, %v1496_v20  ;;  %v1428_v11 = vld [vmem:[%s4849_s10] sm:$0xff]  ;;  %v1431_v39 = vld [vmem:[%s4850_s11 + $0x8] sm:$0xff] }
 0x36b   : > { %2698 = vmatmul.msk.f32.vlgmr.msrb.gmra.mxu0 %vm1563_vm15, %v1432_v2  ;;  %1674 = vperm.xlu1 %2814, %v1428_v11  }
 0x36c   : > { %1725 = vmatpush.msra.mxu0 %v2913_v36  ;;  %v1554_v51 = vadd.f32 %v1553_v7, %v1525_v1 }
 0x36e   : > { %v1556_v45 = vpop.f32.mrf.mxu3  ;;  %v1561_v52 = vmul.f32 0.001953125, %v1554_v51 }
 0x36f   : > { %v1469_v59 = vpop.f32.mrf.mxu0  ;;  %v1498_v42 = vpop.f32.mrf.mxu1 }
 0x370   : > { %v1499_v40 = vadd.f32 %v1498_v42, %v1469_v59 }
 0x372   : > { %v1528_v8 = vadd.f32 %v1527_v17, %v1499_v40  ;;  %v2916_v40 = vld [vmem:[%s4843_s4 + $0x18] sm:$0xff] }
 0x373   : > { %1693 = vperm.xlu1 %2814, %v1431_v39  }
 0x374   : > { %v1557_v61 = vadd.f32 %v1556_v45, %v1528_v8 }
 0x376   : > { %v1562_v49 = vmul.f32 0.001953125, %v1557_v61 }
 0x378   : > { %1601 = vmatpush.msrb.mxu1 %v1562_v49 }
 0x37a   : > { %1602 = vmatpush.msrb.mxu1 %v1561_v52 }
 0x37b   : > { %2699 = vmatmul.msk.f32.vlgmr.msrb.gmra.mxu1 %vm1563_vm15, %v1432_v2 }
 0x37c   : > { %1754 = vmatpush.msra.mxu1 %v2914_v53 }
 0x3c3   : > { %v1680_v51 = vpop.permute.xlu2 %1679 }
 0x3dd   : > { %v1675_v17 = vpop.permute.xlu1 %1674 }
 0x3e8   : > { %v1584_v48 = vpop.f32.mrf.mxu0 }
 0x3e9   : > { %1641 = vmatpush.msrb.mxu2 %v1584_v48  ;;  %v1607_v0 = vmul.f32 %v1584_v48, %v1584_v48  ;;  %v1689_v48 = vpop.permute.xlu0 %1688 }
 0x3ea   : > { %2700 = vmatmul.msk.f32.vlgmr.msrb.gmra.mxu2 %vm4888_vm3, %v1433_v19 }
 0x3eb   : > { %1783 = vmatpush.msra.mxu2 %v2915_v60 }
 0x3f2   : > { %2701 = vmatmul.msk.f32.gmra.mxu2 %vm4888_vm3, %v1434_v4 }
 0x3f8   : > { %v1604_v5 = vpop.f32.mrf.mxu1 }
 0x3f9   : > { %v1608_v16 = vsub.f32 %v1604_v5, %v1607_v0 }
 0x3fb   : > { %v1609_v44 = vadd.f32 1e-05, %v1608_v16 }
 0x3fd   : > { %2834 = vrsqrt.f32 %v1609_v44  ;;  %vm1616_vm1 = vweird.f32 %v1609_v44 }
 0x403   : > { %v2835_v2 = vpop.eup %2834 }
 0x404   : > { %v1611_v7 = vmul.f32 %v2835_v2, %v1609_v44  ;;  %vm1617_vm0 = vweird.f32 %v2835_v2 }
 0x405   : > { %vm1618_vm2 = vmor %vm1616_vm1, %vm1617_vm0 }
 0x406   : > { %v1612_v20 = vmul.f32 %v2835_v2, %v1611_v7 }
 0x408   : > { %v1613_v36 = vmul.f32 0.5, %v1612_v20 }
 0x40a   : > { %v1614_v59 = vsub.f32 1.5, %v1613_v36 }
 0x40c   : > { %v1615_v42 = vmul.f32 %v2835_v2, %v1614_v59 }
 0x40e   : > { %v1619_v1 = vsel %vm1618_vm2, %v2835_v2, %v1615_v42 }
 0x40f   : > { %1664 = vmatpush.msrb.mxu3 %v1619_v1 }
 0x410   : > { %2702 = vmatmul.msk.f32.vlgmr.msrb.gmra.mxu3 %vm4888_vm3, %v1433_v19 }
 0x411   : > { %1812 = vmatpush.msra.mxu3 %v2916_v40 }
 0x418   : > { %2703 = vmatmul.msk.f32.gmra.mxu3 %vm4888_vm3, %v1434_v4  ;;  %v1694_v4 = vpop.permute.xlu1 %1693 }
 0x46d   : > { %v1643_v61 = vpop.f32.mrf.mxu2 }
 0x475   : > { %v1646_v19 = vpop.f32.mrf.mxu2 }
 0x493   : > { %v1666_v8 = vpop.f32.mrf.mxu3 }
 0x494   : > { %v1682_v45 = vmul.f32 %v1675_v17, %v1666_v8 }
 0x496   : > { %2704 = vmatmul.msk.f32.vlgmr.msra.gmra.mxu0 %vm4888_vm3, %v1682_v45  ;;  %2708 = vmatmul.msk.f32.vlgmr.msra.gmra.mxu1 %vm4888_vm3, %v1682_v45  ;;  %v1684_v53 = vmul.f32 %v1682_v45, %v1643_v61 }
 0x497   : > { %2712 = vmatmul.msk.f32.vlgmr.msra.gmra.mxu2 %vm4888_vm3, %v1682_v45  ;;  %2716 = vmatmul.msk.f32.vlgmr.msra.gmra.mxu3 %vm4888_vm3, %v1682_v45 }
 0x498   : > { %v1696_v60 = vsub.f32 %v1689_v48, %v1684_v53 }
 0x49b   : > { %v1669_v49 = vpop.f32.mrf.mxu3 }
 0x49c   : > { %v1683_v52 = vmul.f32 %v1680_v51, %v1669_v49 }
 0x49e   : > { %2705 = vmatmul.msk.f32.gmra.mxu0 %vm4888_vm3, %v1683_v52  ;;  %2709 = vmatmul.msk.f32.gmra.mxu1 %vm4888_vm3, %v1683_v52  ;;  %v1685_v0 = vmul.f32 %v1683_v52, %v1646_v19 }
 0x49f   : > { %2713 = vmatmul.msk.f32.gmra.mxu2 %vm4888_vm3, %v1683_v52  ;;  %2717 = vmatmul.msk.f32.gmra.mxu3 %vm4888_vm3, %v1683_v52 }
 0x4a0   : > { %v1697_v5 = vsub.f32 %v1694_v4, %v1685_v0 }
 0x4a6   : > { %2706 = vmatmul.msk.f32.gmra.mxu0 %vm4888_vm3, %v1696_v60  ;;  %2710 = vmatmul.msk.f32.gmra.mxu1 %vm4888_vm3, %v1696_v60 }
 0x4a7   : > { %2714 = vmatmul.msk.f32.gmra.mxu2 %vm4888_vm3, %v1696_v60  ;;  %2718 = vmatmul.msk.f32.gmra.mxu3 %vm4888_vm3, %v1696_v60 }
 0x4ae   : > { %2707 = vmatmul.msk.f32.gmra.mxu0 %vm4888_vm3, %v1697_v5  ;;  %2711 = vmatmul.msk.f32.gmra.mxu1 %vm4888_vm3, %v1697_v5 }
 0x4af   : > { %2715 = vmatmul.msk.f32.gmra.mxu2 %vm4888_vm3, %v1697_v5  ;;  %2719 = vmatmul.msk.f32.gmra.mxu3 %vm4888_vm3, %v1697_v5 }
 0x513   : > { %v1727_v11 = vpop.f32.mrf.mxu0  ;;  %v1756_v22 = vpop.f32.mrf.mxu1 }
 0x514   : > { %v1826_v2 = vmul.f32 %v1727_v11, %v4039_v6  ;;  %v1827_v7 = vmul.f32 %v1756_v22, %v4041_v18 }
 0x51a   : > { %v1785_v39 = vpop.f32.mrf.mxu2  ;;  %v1814_v17 = vpop.f32.mrf.mxu3 }
 0x51b   : > { %v4120_v16 = vpop.f32.mrf.mxu0  ;;  %v4122_v44 = vpop.f32.mrf.mxu1  ;;  %v1828_v18 = vmul.f32 %v1785_v39, %v4028_v58  ;;  %v1829_v11 = vmul.f32 %v1814_v17, %v4034_v10 }
 0x522   : > { %v4126_v8 = vpop.f32.mrf.mxu2  ;;  %v4128_v52 = vpop.f32.mrf.mxu3 }
 0x523   : > { %v1733_v20 = vpop.f32.mrf.mxu0  ;;  %v1762_v36 = vpop.f32.mrf.mxu1 }
 0x524   : > { %v1834_v59 = vadd.f32 %v1826_v2, %v1733_v20  ;;  %v1835_v42 = vadd.f32 %v1827_v7, %v1762_v36 }
 0x526   : > { %v2720_v1 = vmul.f32 -1.442695, %v1834_v59  ;;  %v2721_v40 = vmul.f32 -1.442695, %v1835_v42 }
 0x528   : > { %2836 = vpow2.f32 %v2720_v1 }
 0x529   : > { %2838 = vpow2.f32 %v2721_v40 }
 0x52a   : > { %v1791_v6 = vpop.f32.mrf.mxu2  ;;  %v1820_v7 = vpop.f32.mrf.mxu3 }
 0x52b   : > { %v4131_v53 = vadd.f32 %v1828_v18, %v1791_v6 }
 0x52d   : > { %v2722_v5 = vmul.f32 -1.442695, %v4131_v53 }
 0x52e   : > { %v2837_v45 = vpop.eup %2836 }
 0x52f   : > { %v2839_v51 = vpop.eup %2838  ;;  %v1866_v61 = vadd.f32 1.0, %v2837_v45  ;;  %v4135_v45 = vadd.f32 %v1829_v11, %v1820_v7  ;;  %v1736_v7 = vpop.f32.mrf.mxu0 }
 0x530   : > { %v1867_v49 = vadd.f32 1.0, %v2839_v51 }
 0x531   : > { %2840 = vrcp.f32 %v1866_v61  ;;  %v1885_v22 = vand.u32 2147483648, %v1866_v61  ;;  %v1883_v36 = vand.u32 2147483647, %v1866_v61  ;;  %vm1879_vm14 = vweird.f32 %v1866_v61 }
 0x532   : > { %2842 = vrcp.f32 %v1867_v49  ;;  %v1900_v1 = vand.u32 2147483648, %v1867_v49  ;;  %v1898_v58 = vand.u32 2147483647, %v1867_v49  ;;  %vm1894_vm1 = vweird.f32 %v1867_v49 }
 0x533   : > { %2844 = vpow2.f32 %v2722_v5  ;;  %v1886_v51 = vor.u32 1.1754944e-38, %v1885_v22  ;;  %vm1884_vm2 = vcmp.eq.f32.partialorder %v1883_v36, 8.507059e+37  ;;  %v1765_v36 = vpop.f32.mrf.mxu1 }
 0x534   : > { %v1901_v17 = vor.u32 1.1754944e-38, %v1900_v1  ;;  %vm1899_vm11 = vcmp.eq.f32.partialorder %v1898_v58, 8.507059e+37  ;;  %v1831_v1 = vmul.f32 %v4122_v44, %v4052_v32 }
 0x537   : > { %v2841_v48 = vpop.eup %2840 }
 0x538   : > { %v2843_v60 = vpop.eup %2842  ;;  %v1875_v19 = vmul.f32 %v2841_v48, %v1866_v61  ;;  %vm1880_vm4 = vweird.f32 %v2841_v48 }
 0x539   : > { %v1890_v0 = vmul.f32 %v2843_v60, %v1867_v49  ;;  %vm1895_vm6 = vweird.f32 %v2843_v60  ;;  %vm1881_vm0 = vmor %vm1879_vm14, %vm1880_vm4  ;;  %v2845_v5 = vpop.eup %2844 }
 0x53a   : > { %v1876_v4 = vsub.f32 1.0, %v1875_v19  ;;  %vm1896_vm3 = vmor %vm1894_vm1, %vm1895_vm6  ;;  %v1868_v49 = vadd.f32 1.0, %v2845_v5 }
 0x53b   : > { %v1891_v2 = vsub.f32 1.0, %v1890_v0 }
 0x53c   : > { %v1877_v20 = vmul.f32 %v2841_v48, %v1876_v4  ;;  %v1913_v44 = vand.u32 2147483647, %v1868_v49 }
 0x53d   : > { %v1892_v40 = vmul.f32 %v2843_v60, %v1891_v2  ;;  %v2723_v2 = vmul.f32 -1.442695, %v4135_v45 }
 0x53e   : > { %v1878_v39 = vadd.f32 %v2841_v48, %v1877_v20  ;;  %v1830_v20 = vmul.f32 %v4120_v16, %v4050_v37  ;;  %vm1914_vm6 = vcmp.eq.f32.partialorder %v1913_v44, 8.507059e+37 }
 0x53f   : > { %v1893_v6 = vadd.f32 %v2843_v60, %v1892_v40  ;;  %2846 = vpow2.f32 %v2723_v2 }
 0x540   : > { %v1882_v10 = vsel %vm1881_vm0, %v2841_v48, %v1878_v39  ;;  %2848 = vrcp.f32 %v1868_v49  ;;  %v4168_v39 = vadd.f32 %v1830_v20, %v1736_v7 }
 0x541   : > { %v1887_v18 = vsel %vm1884_vm2, %v1886_v51, %v1882_v10  ;;  %v1897_v19 = vsel %vm1896_vm3, %v2843_v60, %v1893_v6  ;;  %v4172_v51 = vadd.f32 %v1831_v1, %v1765_v36  ;;  %v1915_v6 = vand.u32 2147483648, %v1868_v49 }
 0x542   : > { %v4137_v0 = vmul.f32 %v1887_v18, %v1834_v59  ;;  %v1902_v4 = vsel %vm1899_vm11, %v1901_v17, %v1897_v19  ;;  %v2724_v32 = vmul.f32 -1.442695, %v4168_v39  ;;  %vm1909_vm11 = vweird.f32 %v1868_v49 }
 0x543   : > { %v4140_v61 = vmul.f32 %v1902_v4, %v1835_v42  ;;  %v2725_v10 = vmul.f32 -1.442695, %v4172_v51  ;;  %v1916_v19 = vor.u32 1.1754944e-38, %v1915_v6  ;;  %v1832_v6 = vmul.f32 %v4126_v8, %v4031_v56 }
 0x544   : > { %2162 = vrot.lane.b32.xlu0 %v4137_v0, %s2983_s21  ;;  %2194 = vrot.lane.b32.xlu2 %v4137_v0, %s2982_s23 }
 0x545   : > { %2198 = vrot.lane.b32.xlu1 %v4140_v61, %s2982_s23  ;;  %v2847_v59 = vpop.eup %2846 }
 0x546   : > { %v1869_v42 = vadd.f32 1.0, %v2847_v59  ;;  %v2849_v48 = vpop.eup %2848 }
 0x547   : > { %v1905_v60 = vmul.f32 %v2849_v48, %v1868_v49  ;;  %vm1910_vm3 = vweird.f32 %v2849_v48 }
 0x548   : > { %2850 = vrcp.f32 %v1869_v42  ;;  %vm1911_vm4 = vmor %vm1909_vm11, %vm1910_vm3  ;;  %v1930_v5 = vand.u32 2147483648, %v1869_v42  ;;  %vm1924_vm0 = vweird.f32 %v1869_v42  ;;  %v1928_v59 = vand.u32 2147483647, %v1869_v42 }
 0x549   : > { %v1906_v11 = vsub.f32 1.0, %v1905_v60  ;;  %2852 = vpow2.f32 %v2724_v32 }
 0x54a   : > { %2854 = vpow2.f32 %v2725_v10  ;;  %v1931_v7 = vor.u32 1.1754944e-38, %v1930_v5  ;;  %vm1929_vm2 = vcmp.eq.f32.partialorder %v1928_v59, 8.507059e+37 }
 0x54b   : > { %v1907_v40 = vmul.f32 %v2849_v48, %v1906_v11 }
 0x54c   : > { %2134 = vrot.lane.b32.xlu0 %v4140_v61, %s4950_s27  ;;  %2166 = vrot.lane.b32.xlu2 %v4140_v61, %s2983_s21 }
 0x54d   : > { %2130 = vrot.lane.b32.xlu1 %v4137_v0, %s4950_s27  ;;  %v1908_v37 = vadd.f32 %v2849_v48, %v1907_v40 }
 0x54e   : > { %v2851_v22 = vpop.eup %2850 }
 0x54f   : > { %v1920_v58 = vmul.f32 %v2851_v22, %v1869_v42  ;;  %v1912_v17 = vsel %vm1911_vm4, %v2849_v48, %v1908_v37  ;;  %vm1925_vm14 = vweird.f32 %v2851_v22  ;;  %v2853_v48 = vpop.eup %2852 }
 0x550   : > { %v1917_v4 = vsel %vm1914_vm6, %v1916_v19, %v1912_v17  ;;  %vm1926_vm1 = vmor %vm1924_vm0, %vm1925_vm14  ;;  %v2855_v60 = vpop.eup %2854  ;;  %v1870_v20 = vadd.f32 1.0, %v2853_v48  ;;  %v1823_v48 = vpop.f32.mrf.mxu3 }
 0x551   : > { %v1921_v16 = vsub.f32 1.0, %v1920_v58  ;;  %v4183_v49 = vmul.f32 %v1917_v4, %v4131_v53  ;;  %v1871_v36 = vadd.f32 1.0, %v2855_v60  ;;  %v1833_v60 = vmul.f32 %v4128_v52, %v4043_v28 }
 0x552   : > { %2856 = vrcp.f32 %v1870_v20  ;;  %vm1939_vm4 = vweird.f32 %v1870_v20  ;;  %v1945_v19 = vand.u32 2147483648, %v1870_v20  ;;  %v1943_v4 = vand.u32 2147483647, %v1870_v20 }
 0x553   : > { %v1922_v18 = vmul.f32 %v2851_v22, %v1921_v16  ;;  %4956 = vst [vmem:[#allocation29_spill] sm:$0xff] %v4183_v49  ;;  %2858 = vrcp.f32 %v1871_v36  ;;  %v1794_v16 = vpop.f32.mrf.mxu2  ;;  %v1960_v56 = vand.u32 2147483648, %v1871_v36  ;;  %vm1954_vm14 = vweird.f32 %v1871_v36 }
 0x554   : > { %2226 = vrot.lane.b32.xlu0 %v4137_v0, %s4951_s1  ;;  %2230 = vrot.lane.b32.xlu2 %v4140_v61, %s4951_s1  ;;  %v4214_v10 = vadd.f32 %v1832_v6, %v1794_v16  ;;  %v4237_v28 = vadd.f32 %v1833_v60, %v1823_v48 }
 0x555   : > { %2098 = vrot.lane.b32.xlu1 %v4137_v0, %s4952_s19  ;;  %v1923_v2 = vadd.f32 %v2851_v22, %v1922_v18 }
 0x556   : > { %v2726_v5 = vmul.f32 -1.442695, %v4214_v10 }
 0x557   : > { %v1927_v11 = vsel %vm1926_vm1, %v2851_v22, %v1923_v2  ;;  %v1958_v2 = vand.u32 2147483647, %v1871_v36  ;;  %vm1944_vm1 = vcmp.eq.f32.partialorder %v1943_v4, 8.507059e+37 }
 0x558   : > { %v1932_v53 = vsel %vm1929_vm2, %v1931_v7, %v1927_v11  ;;  %v2857_v22 = vpop.eup %2856  ;;  %2860 = vpow2.f32 %v2726_v5 }
 0x559   : > { %v4192_v42 = vmul.f32 %v1932_v53, %v4135_v45  ;;  %v2859_v1 = vpop.eup %2858  ;;  %v1935_v40 = vmul.f32 %v2857_v22, %v1870_v20  ;;  %vm1940_vm3 = vweird.f32 %v2857_v22  ;;  %v1946_v20 = vor.u32 1.1754944e-38, %v1945_v19 }
 0x55a   : > { %v1950_v58 = vmul.f32 %v2859_v1, %v1871_v36  ;;  %vm1955_vm11 = vweird.f32 %v2859_v1  ;;  %vm4216_vm6 = vmor %vm1939_vm4, %vm1940_vm3  ;;  %v1961_v53 = vor.u32 1.1754944e-38, %v1960_v56  ;;  %vm1959_vm2 = vcmp.eq.f32.partialorder %v1958_v2, 8.507059e+37 }
 0x55b   : > { %4957 = vst [vmem:[#allocation30_spill] sm:$0xff] %v4192_v42  ;;  %v1936_v45 = vsub.f32 1.0, %v1935_v40  ;;  %vm4221_vm0 = vmor %vm1954_vm14, %vm1955_vm11  ;;  %v2727_v40 = vmul.f32 -1.442695, %v4237_v28 }
 0x55c   : > { %2066 = vrot.lane.b32.xlu0 %v4137_v0, %s4953_s22  ;;  %2034 = vrot.lane.b32.xlu2 %v4137_v0, %s4954_s24  ;;  %v1951_v37 = vsub.f32 1.0, %v1950_v58 }
 0x55d   : > { %2002 = vrot.lane.b32.xlu1 %v4137_v0, %s4955_s30  ;;  %v1937_v32 = vmul.f32 %v2857_v22, %v1936_v45  ;;  %2862 = vpow2.f32 %v2727_v40 }
 0x55e   : > { %v1952_v44 = vmul.f32 %v2859_v1, %v1951_v37  ;;  %v2861_v58 = vpop.eup %2860 }
 0x55f   : > { %v1938_v17 = vadd.f32 %v2857_v22, %v1937_v32  ;;  %v1872_v45 = vadd.f32 1.0, %v2861_v58 }
 0x560   : > { %v1953_v18 = vadd.f32 %v2859_v1, %v1952_v44 }
 0x561   : > { %v1942_v11 = vsel %vm4216_vm6, %v2857_v22, %v1938_v17  ;;  %2864 = vrcp.f32 %v1872_v45  ;;  %v1975_v2 = vand.u32 2147483648, %v1872_v45  ;;  %vm1969_vm11 = vweird.f32 %v1872_v45 }
 0x562   : > { %v1957_v7 = vsel %vm4221_vm0, %v2859_v1, %v1953_v18  ;;  %v1947_v52 = vsel %vm1944_vm1, %v1946_v20, %v1942_v11  ;;  %v1973_v5 = vand.u32 2147483647, %v1872_v45 }
 0x563   : > { %v1962_v36 = vsel %vm1959_vm2, %v1961_v53, %v1957_v7  ;;  %v4240_v22 = vmul.f32 %v1947_v52, %v4168_v39  ;;  %v2863_v39 = vpop.eup %2862  ;;  %v1976_v60 = vor.u32 1.1754944e-38, %v1975_v2 }
 0x564   : > { %2102 = vrot.lane.b32.xlu0 %v4140_v61, %s4952_s19  ;;  %2070 = vrot.lane.b32.xlu2 %v4140_v61, %s4953_s22  ;;  %v4243_v1 = vmul.f32 %v1962_v36, %v4172_v51  ;;  %v1873_v37 = vadd.f32 1.0, %v2863_v39  ;;  %vm1974_vm6 = vcmp.eq.f32.partialorder %v1973_v5, 8.507059e+37 }
 0x565   : > { %2006 = vrot.lane.b32.xlu1 %v4140_v61, %s4955_s30 }
 0x566   : > { %2866 = vrcp.f32 %v1873_v37  ;;  %v1990_v40 = vand.u32 2147483648, %v1873_v37  ;;  %vm1984_vm0 = vweird.f32 %v1873_v37 }
 0x567   : > { %v2865_v16 = vpop.eup %2864 }
 0x568   : > { %v1965_v6 = vmul.f32 %v2865_v16, %v1872_v45  ;;  %vm1970_vm3 = vweird.f32 %v2865_v16  ;;  %v1988_v45 = vand.u32 2147483647, %v1873_v37 }
 0x569   : > { %vm1971_vm4 = vmor %vm1969_vm11, %vm1970_vm3 }
 0x56a   : > { %v1966_v44 = vsub.f32 1.0, %v1965_v6  ;;  %vm1989_vm2 = vcmp.eq.f32.partialorder %v1988_v45, 8.507059e+37 }
 0x56c   : > { %2038 = vrot.lane.b32.xlu0 %v4140_v61, %s4954_s24  ;;  %2202 = vrot.lane.b32.xlu2 %v4183_v49, %s2982_s23  ;;  %v2867_v17 = vpop.eup %2866  ;;  %v1967_v18 = vmul.f32 %v2865_v16, %v1966_v44 }
 0x56d   : > { %2170 = vrot.lane.b32.xlu1 %v4183_v49, %s2983_s21  ;;  %v1980_v19 = vmul.f32 %v2867_v17, %v1873_v37  ;;  %vm1985_vm14 = vweird.f32 %v2867_v17 }
 0x56e   : > { %v1968_v8 = vadd.f32 %v2865_v16, %v1967_v18  ;;  %vm1986_vm1 = vmor %vm1984_vm0, %vm1985_vm14 }
 0x56f   : > { %v1981_v4 = vsub.f32 1.0, %v1980_v19 }
 0x570   : > { %v1972_v59 = vsel %vm1971_vm4, %v2865_v16, %v1968_v8  ;;  %v1991_v16 = vor.u32 1.1754944e-38, %v1990_v40 }
 0x571   : > { %v1982_v48 = vmul.f32 %v2867_v17, %v1981_v4  ;;  %v1977_v20 = vsel %vm1974_vm6, %v1976_v60, %v1972_v59 }
 0x572   : > { %v4295_v58 = vmul.f32 %v1977_v20, %v4214_v10 }
 0x573   : > { %v1983_v36 = vadd.f32 %v2867_v17, %v1982_v48 }
 0x574   : > { %2110 = vrot.lane.b32.xlu0 %v4192_v42, %s4952_s19  ;;  %2138 = vrot.lane.b32.xlu2 %v4183_v49, %s4950_s27  ;;  %4962 = vst [vmem:[#allocation31_spill] sm:$0xff] %v4295_v58 }
 0x575   : > { %2206 = vrot.lane.b32.xlu1 %v4192_v42, %s2982_s23  ;;  %v1987_v39 = vsel %vm1986_vm1, %v2867_v17, %v1983_v36 }
 0x576   : > { %v1992_v10 = vsel %vm1989_vm2, %v1991_v16, %v1987_v39 }
 0x577   : > { %v4310_v17 = vmul.f32 %v1992_v10, %v4237_v28 }
 0x579   : > { %4963 = vst [vmem:[#allocation32_spill] sm:$0xff] %v4310_v17 }
 0x57c   : > { %2234 = vrot.lane.b32.xlu0 %v4183_v49, %s4951_s1  ;;  %2078 = vrot.lane.b32.xlu2 %v4192_v42, %s4953_s22 }
 0x57d   : > { %2174 = vrot.lane.b32.xlu1 %v4192_v42, %s2983_s21 }
 0x584   : > { %2014 = vrot.lane.b32.xlu0 %v4192_v42, %s4955_s30  ;;  %2142 = vrot.lane.b32.xlu2 %v4192_v42, %s4950_s27 }
 0x585   : > { %2046 = vrot.lane.b32.xlu1 %v4192_v42, %s4954_s24 }
 0x58c   : > { %2074 = vrot.lane.b32.xlu0 %v4183_v49, %s4953_s22  ;;  %2106 = vrot.lane.b32.xlu2 %v4183_v49, %s4952_s19 }
 0x58d   : > { %2238 = vrot.lane.b32.xlu1 %v4192_v42, %s4951_s1  ;;  %v2296_v42 = vld [vmem:[%s4854_s15] sm:$0xff] }
 0x594   : > { %2200 = vrot.lane.b32.xlu2 %v4243_v1, %s2982_s23  ;;  %2196 = vrot.lane.b32.xlu0 %v4240_v22, %s2982_s23 }
 0x595   : > { %2164 = vrot.lane.b32.xlu1 %v4240_v22, %s2983_s21 }
 0x59c   : > { %2132 = vrot.lane.b32.xlu2 %v4240_v22, %s4950_s27  ;;  %2168 = vrot.lane.b32.xlu0 %v4243_v1, %s2983_s21 }
 0x59d   : > { %2136 = vrot.lane.b32.xlu1 %v4243_v1, %s4950_s27 }
 0x59e   : > { %v4258_v51 = vpop.permute.xlu2 %2194 }
 0x5a4   : > { %2100 = vrot.lane.b32.xlu2 %v4240_v22, %s4952_s19  ;;  %2232 = vrot.lane.b32.xlu0 %v4243_v1, %s4951_s1 }
 0x5a5   : > { %2228 = vrot.lane.b32.xlu1 %v4240_v22, %s4951_s1 }
 0x5a6   : > { %v4266_v32 = vpop.permute.xlu2 %2166 }
 0x5ac   : > { %2004 = vrot.lane.b32.xlu2 %v4240_v22, %s4955_s30  ;;  %2036 = vrot.lane.b32.xlu0 %v4240_v22, %s4954_s24 }
 0x5ad   : > { %2068 = vrot.lane.b32.xlu1 %v4240_v22, %s4953_s22 }
 0x5ae   : > { %v4274_v56 = vpop.permute.xlu2 %2230 }
 0x5b4   : > { %2008 = vrot.lane.b32.xlu2 %v4243_v1, %s4955_s30  ;;  %2072 = vrot.lane.b32.xlu0 %v4243_v1, %s4953_s22 }
 0x5b5   : > { %2104 = vrot.lane.b32.xlu1 %v4243_v1, %s4952_s19 }
 0x5b6   : > { %v4282_v11 = vpop.permute.xlu0 %2162  ;;  %v4284_v7 = vpop.permute.xlu2 %2034 }
 0x5b7   : > { %v4286_v53 = vpop.permute.xlu1 %2198  ;;  %v4292_v52 = vsel %vm1152_vm8, %v4282_v11, %v4266_v32 }
 0x5b8   : > { %v2186_v26 = vmul.f32 %v4292_v52, %v3596_v34 }
 0x5bc   : > { %2172 = vrot.lane.b32.xlu2 %v4295_v58, %s2983_s21  ;;  %2204 = vrot.lane.b32.xlu0 %v4295_v58, %s2982_s23 }
 0x5bd   : > { %2040 = vrot.lane.b32.xlu1 %v4243_v1, %s4954_s24 }
 0x5be   : > { %v2135_v6 = vpop.permute.xlu0 %2134  ;;  %v4303_v44 = vpop.permute.xlu2 %2070 }
 0x5bf   : > { %v2131_v18 = vpop.permute.xlu1 %2130 }
 0x5c0   : > { %v4307_v37 = vsel %vm1124_vm9, %v2131_v18, %v2135_v6 }
 0x5c4   : > { %2208 = vrot.lane.b32.xlu2 %v4310_v17, %s2982_s23  ;;  %2140 = vrot.lane.b32.xlu0 %v4295_v58, %s4950_s27 }
 0x5c5   : > { %2112 = vrot.lane.b32.xlu1 %v4310_v17, %s4952_s19 }
 0x5c6   : > { %v4318_v19 = vpop.permute.xlu0 %2226  ;;  %v2203_v8 = vpop.permute.xlu2 %2202 }
 0x5c7   : > { %v2099_v4 = vpop.permute.xlu1 %2098  ;;  %v4324_v2 = vsel %vm1208_vm5, %v4318_v19, %v4274_v56  ;;  %v4329_v28 = vsel %vm1180_vm7, %v4286_v53, %v2203_v8 }
 0x5cc   : > { %2176 = vrot.lane.b32.xlu2 %v4310_v17, %s2983_s21  ;;  %2080 = vrot.lane.b32.xlu0 %v4310_v17, %s4953_s22 }
 0x5cd   : > { %2236 = vrot.lane.b32.xlu1 %v4295_v58, %s4951_s1 }
 0x5ce   : > { %v2067_v5 = vpop.permute.xlu0 %2066  ;;  %v2139_v59 = vpop.permute.xlu2 %2138 }
 0x5cf   : > { %v4337_v48 = vpop.permute.xlu1 %2002  ;;  %v4342_v60 = vsel %vm1068_vm12, %v2067_v5, %v4303_v44  ;;  %v4346_v20 = vsel %vm1124_vm9, %v2135_v6, %v2139_v59 }
 0x5d4   : > { %2048 = vrot.lane.b32.xlu2 %v4310_v17, %s4954_s24  ;;  %2144 = vrot.lane.b32.xlu0 %v4310_v17, %s4950_s27 }
 0x5d5   : > { %2016 = vrot.lane.b32.xlu1 %v4310_v17, %s4955_s30 }
 0x5d6   : > { %v2103_v36 = vpop.permute.xlu0 %2102  ;;  %v2079_v40 = vpop.permute.xlu2 %2078 }
 0x5d7   : > { %v4354_v45 = vpop.permute.xlu1 %2006  ;;  %v4358_v39 = vsel %vm1096_vm10, %v2099_v4, %v2103_v36  ;;  %v4362_v16 = vsel %vm1068_vm12, %v2079_v40, %v2067_v5 }
 0x5dc   : > { %2240 = vrot.lane.b32.xlu2 %v4310_v17, %s4951_s1  ;;  %2108 = vrot.lane.b32.xlu0 %v4295_v58, %s4952_s19  ;;  %s584_s19 = sand.u32 1, %s2971_s26  }
 0x5dd   : > { %2076 = vrot.lane.b32.xlu1 %v4295_v58, %s4953_s22  ;;  %s2656_s22 = sshll.u32 %s584_s19, 5 }
 0x5de   : > { %v4370_v6 = vpop.permute.xlu0 %2038  ;;  %v2143_v10 = vpop.permute.xlu2 %2142 }
 0x5df   : > { %v2171_v54 = vpop.permute.xlu1 %2170  ;;  %v4374_v33 = vsel %vm1124_vm9, %v2139_v59, %v2143_v10  ;;  %v4378_v5 = vsel %vm1124_vm9, %v2143_v10, %v2131_v18 }
 0x5e0   : > { %4964 = vst [vmem:[#allocation33_spill] sm:$0xff] %v4374_v33  ;;  %v4383_v21 = vsel %vm1152_vm8, %v4266_v32, %v2171_v54 }
 0x5e1   : > { %4965 = vst [vmem:[#allocation34_spill] sm:$0xff] %v4378_v5 }
 0x5e4   : > { %2042 = vrot.lane.b32.xlu2 %v4183_v49, %s4954_s24  ;;  %2044 = vrot.lane.b32.xlu0 %v4295_v58, %s4954_s24  ;;  %s4799_s24 = scalar_lea.vmem [#allocation2], %s2656_s22 }
 0x5e5   : > { %2010 = vrot.lane.b32.xlu1 %v4183_v49, %s4955_s30  ;;  %s2575_s7 = sshll.u32 %s4799_s24, 4  ;;  %s2576_s7 = int_to_ptr.vmem [resolvable:$true] %s2575_s7 }
 0x5e6   : > { %v2111_v59 = vpop.permute.xlu0 %2110  ;;  %v2107_v57 = vpop.permute.xlu2 %2106 }
 0x5e7   : > { %v4391_v38 = vpop.permute.xlu1 %2206  ;;  %v4395_v18 = vsel %vm1096_vm10, %v2111_v59, %v2099_v4  ;;  %v4399_v32 = vsel %vm1096_vm10, %v2107_v57, %v2111_v59  ;;  %v4403_v10 = vsel %vm1096_vm10, %v2103_v36, %v2107_v57  ;;  %v2297_v4 = vld [vmem:[%s4854_s15 + $0x8] sm:$0xff] }
 0x5e8   : > { %4966 = vst [vmem:[#allocation35_spill] sm:$0xff] %v4399_v32  ;;  %v4408_v17 = vsel %vm1180_vm7, %v2203_v8, %v4391_v38 }
 0x5e9   : > { %4967 = vst [vmem:[#allocation36_spill] sm:$0xff] %v4403_v10 }
 0x5ec   : > { %2012 = vrot.lane.b32.xlu2 %v4295_v58, %s4955_s30  ;;  %2300 = vperm.xlu0 %2813, %v2296_v42   ;;  %v2434_v42 = vld [vmem:[%s4856_s17] sm:$0xff]  ;;  %s2762_s30 = sshll.u32 %s3108_s29, 5  ;;  %s2562_s29 = scalar_lea.sflag [#allocation3], %s584_s19 }
 0x5ed   : > { %2305 = vperm.xlu1 %2814, %v2297_v4   ;;  %v2435_v4 = vld [vmem:[%s4856_s17 + $0x8] sm:$0xff]  ;;  %s2574_s20 = scalar_lea.hbm %s4857_s18, %s2762_s30  ;;  %s2937_s30 = scalar_lea.hbm %s4857_s18, 64 }
 0x5ee   : > { %v2235_v57 = vpop.permute.xlu0 %2234  ;;  %v4418_v36 = vpop.permute.xlu2 %2200  ;;  %s2577_s25 = sshll.u32 %s2574_s20, 4  ;;  %s2578_s25 = int_to_ptr.hbm [resolvable:$true] %s2577_s25 }
 0x5ef   : > { %v2175_v59 = vpop.permute.xlu1 %2174  ;;  %v4423_v8 = vsel %vm1208_vm5, %v4274_v56, %v2235_v57  ;;  %s2931_s2 = sshra.s32 %s2578_s25, 4  ;;  %s2932_s2 = int_to_ptr.hbm [resolvable:$true] %s2931_s2 }
 0x5f0   : > { %v4427_v32 = vsel %vm1152_vm8, %v2171_v54, %v2175_v59  ;;  %v4432_v14 = vsel %vm1152_vm8, %v2175_v59, %v4282_v11  ;;  %s2933_s27 = scalar_lea.hbm %s2932_s2, 32  ;;  %p2938_p1 = scmp.lt.s32.totalorder %s2932_s2, %s4857_s18 }
 0x5f1   : > { %4968 = vst [vmem:[#allocation37_spill] sm:$0xff] %v4427_v32  ;;  %p2934_p12 = scmp.ne.s32.totalorder %s2932_s2, %s2933_s27  ;;  %p2939_p2 = scmp.lt.s32.totalorder %s2937_s30, %s2933_s27 }
 0x5f3   : > { %p2935_p13 = pnand %p2934_p12, %p3125_p5  ;;  %p2940_p3 = por %p2939_p2, %p2938_p1 }
 0x5f4   : > { %2438 = vperm.xlu2 %2815, %v2434_v42   ;;  %2443 = vperm.xlu0 %2813, %v2435_v4  }
 0x5f5   : > { %p2936_p0 = pneg %p2935_p13 }
 0x5f6   : > { %v4440_v56 = vpop.permute.xlu0 %2014  ;;  %v4442_v27 = vpop.permute.xlu2 %2132 }
 0x5f7   : > { %v4444_v54 = vpop.permute.xlu1 %2046  ;;  %p2941_p4 = pnand %p2940_p3, %p2936_p0 }
 0x5fe   : > { %v2075_v10 = vpop.permute.xlu0 %2074  ;;  %v4446_v58 = vpop.permute.xlu2 %2100 }
 0x5ff   : > { %v2239_v11 = vpop.permute.xlu1 %2238  ;;  %v4450_v59 = vsel %vm1068_vm12, %v2075_v10, %v2079_v40  ;;  %v4455_v49 = vsel %vm1068_vm12, %v4303_v44, %v2075_v10  ;;  %v2214_v40 = vsel %vm1180_vm7, %v4258_v51, %v4286_v53 }
 0x600   : > { %4969 = vst [vmem:[#allocation38_spill] sm:$0xff] %v4450_v59  ;;  %v4459_v42 = vsel %vm1208_vm5, %v2235_v57, %v2239_v11  ;;  %v4464_v4 = vsel %vm1208_vm5, %v2239_v11, %v4318_v19  ;;  %v2218_v10 = vmul.f32 %v2214_v40, %v3593_v31 }
 0x601   : > { %4970 = vst [vmem:[#allocation39_spill] sm:$0xff] %v4455_v49 }
 0x606   : > { %v4470_v59 = vpop.permute.xlu2 %2004  ;;  %v2197_v43 = vpop.permute.xlu0 %2196 }
 0x607   : > { %v2165_v5 = vpop.permute.xlu1 %2164  ;;  %v2215_v44 = vsel %vm1180_vm7, %v2197_v43, %v4418_v36 }
 0x608   : > { %v2222_v57 = vmul.f32 %v2215_v44, %v3593_v31 }
 0x60a   : > { %v2286_v49 = vpack.c.bf16 %v2222_v57, %v2218_v10 }
 0x60c   : > { %2320 = vmatpush.bf16.msrb.mxu0 %v2286_v49  ;;  %v2154_v49 = vmul.f32 %v4307_v37, %v3698_v25  ;;  %v2759_v37 = vld [vmem:[%s4853_s14 + $0x4] sm:$0xf] }
 0x60e   : > { %v4477_v19 = vpop.permute.xlu2 %2008  ;;  %v2169_v11 = vpop.permute.xlu0 %2168 }
 0x60f   : > { %v2137_v33 = vpop.permute.xlu1 %2136  ;;  %v2183_v53 = vsel %vm1152_vm8, %v2165_v5, %v2169_v11 }
 0x610   : > { %v2151_v32 = vsel %vm1124_vm9, %v4442_v27, %v2137_v33  ;;  %v2190_v40 = vmul.f32 %v2183_v53, %v3596_v34  ;;  %v2250_v34 = vmul.f32 %v4324_v2, %v3570_v15 }
 0x611   : > { %v2158_v31 = vmul.f32 %v2151_v32, %v3698_v25  ;;  %v2274_v25 = vpack.c.bf16 %v4240_v22, %v4137_v0  ;;  %v2732_v32 = vld [vmem:[%s4853_s14 + $0x8] sm:$0xf0] }
 0x612   : > { %v2282_v44 = vpack.c.bf16 %v2190_v40, %v2186_v26  ;;  %v4508_v40 = vor.u32 %v2759_v37, %v2732_v32 }
 0x613   : > { %v2278_v63 = vpack.c.bf16 %v2158_v31, %v2154_v49 }
 0x614   : > { %2321 = vmatpush.bf16.msrb.mxu0 %v2282_v44 }
 0x616   : > { %v4490_v10 = vpop.permute.xlu2 %2172  ;;  %v4492_v57 = vpop.permute.xlu0 %2232 }
 0x617   : > { %v2229_v47 = vpop.permute.xlu1 %2228  ;;  %v2181_v37 = vsel %vm1152_vm8, %v2169_v11, %v4490_v10 }
 0x618   : > { %v2247_v52 = vsel %vm1208_vm5, %v2229_v47, %v4492_v57  ;;  %2322 = vmatpush.bf16.msrb.mxu0 %v2278_v63 }
 0x619   : > { %v2254_v26 = vmul.f32 %v2247_v52, %v3570_v15  ;;  %v2216_v15 = vsel %vm1180_vm7, %v4391_v38, %v4258_v51 }
 0x61a   : > { %v4522_v31 = vmul.f32 %v2216_v15, %v3660_v55  ;;  %v2191_v15 = vmul.f32 %v2181_v37, %v3657_v30 }
 0x61b   : > { %v2290_v53 = vpack.c.bf16 %v2254_v26, %v2250_v34 }
 0x61c   : > { %2323 = vmatpush.bf16.msrb.mxu0 %v2274_v25 }
 0x61d   : > { %2341 = vmatpush.bf16.msrb.mxu1 %v2290_v53 }
 0x61e   : > { %v4514_v63 = vpop.permute.xlu2 %2208  ;;  %v4516_v0 = vpop.permute.xlu0 %2036 }
 0x61f   : > { %v2217_v22 = vsel %vm1180_vm7, %v4514_v63, %v2197_v43  ;;  %v2069_v2 = vpop.permute.xlu1 %2068 }
 0x620   : > { %v4525_v44 = vmul.f32 %v2217_v22, %v3660_v55  ;;  %2736 = vmatmul.msk.bf16.vlgmr.msrb.gmra.mxu1 %vm1563_vm15, %v4508_v40  ;;  %v4542_v55 = vmul.f32 %v4432_v14, %v3640_v46  ;;  %v2219_v14 = vmul.f32 %v4329_v28, %v3676_v13 }
 0x626   : > { %v4531_v51 = vpop.permute.xlu2 %2176  ;;  %v4533_v49 = vpop.permute.xlu0 %2072 }
 0x627   : > { %v2185_v43 = vsel %vm1152_vm8, %v4531_v51, %v2165_v5  ;;  %v4538_v52 = vpop.permute.xlu1 %2104 }
 0x628   : > { %v4545_v34 = vmul.f32 %v2185_v43, %v3640_v46  ;;  %v2187_v43 = vmul.f32 %v4383_v21, %v3657_v30  ;;  %v2122_v21 = vmul.f32 %v4395_v18, %v3838_v62 }
 0x62a   : > { %v2283_v26 = vpack.c.bf16 %v2191_v15, %v2187_v43  ;;  %v2090_v15 = vmul.f32 %v4362_v16, %v3835_v50  ;;  %v4972_v43 = vld [vmem:[#allocation15_spill] sm:$0xff] }
 0x62e   : > { %v2205_v25 = vpop.permute.xlu0 %2204  ;;  %v4559_v53 = vpop.permute.xlu2 %2048 }
 0x62f   : > { %v4552_v32 = vpop.permute.xlu1 %2040  ;;  %v2213_v5 = vsel %vm1180_vm7, %v4418_v36, %v2205_v25  ;;  %v2155_v36 = vmul.f32 %v4346_v20, %v3700_v41 }
 0x630   : > { %v2223_v46 = vmul.f32 %v2213_v5, %v3676_v13 }
 0x632   : > { %v2287_v22 = vpack.c.bf16 %v2223_v46, %v2219_v14 }
 0x634   : > { %2348 = vmatpush.bf16.msrb.mxu2 %v2287_v22 }
 0x636   : > { %v4565_v11 = vpop.permute.xlu0 %2140  ;;  %v2241_v5 = vpop.permute.xlu2 %2240 }
 0x637   : > { %v4567_v38 = vpop.permute.xlu1 %2112  ;;  %v2149_v28 = vsel %vm1124_vm9, %v2137_v33, %v4565_v11  ;;  %v2119_v33 = vsel %vm1096_vm10, %v4446_v58, %v4538_v52  ;;  %v2249_v46 = vsel %vm1208_vm5, %v2241_v5, %v2229_v47  ;;  %v2252_v47 = vmul.f32 %v4459_v42, %v4972_v43 }
 0x638   : > { %v2121_v13 = vsel %vm1096_vm10, %v4567_v38, %v4446_v58  ;;  %v2159_v30 = vmul.f32 %v2149_v28, %v3700_v41  ;;  %2349 = vmatpush.bf16.msrb.mxu2 %v2283_v26  ;;  %v2123_v41 = vmul.f32 %v4358_v39, %v3841_v35  ;;  %v2127_v18 = vmul.f32 %v2119_v33, %v3841_v35  ;;  %v4971_v58 = vld [vmem:[#allocation14_spill] sm:$0xff] }
 0x639   : > { %v2126_v37 = vmul.f32 %v2121_v13, %v3838_v62  ;;  %v2275_v62 = vpack.c.bf16 %v4243_v1, %v4140_v61  ;;  %v2251_v22 = vmul.f32 %v4423_v8, %v4971_v58  ;;  %v2057_v35 = vsel %vm1040_vm13, %v4559_v53, %v4516_v0  ;;  %v4973_v61 = vld [vmem:[#allocation16_spill] sm:$0xff] }
 0x63a   : > { %v2279_v14 = vpack.c.bf16 %v2159_v30, %v2155_v36  ;;  %v2257_v1 = vmul.f32 %v2249_v46, %v4973_v61  ;;  %v2087_v42 = vsel %vm1068_vm12, %v2069_v2, %v4533_v49 }
 0x63b   : > { %v2270_v20 = vpack.c.bf16 %v2126_v37, %v2122_v21  ;;  %v2056_v21 = vsel %vm1040_vm13, %v4444_v54, %v4284_v7  ;;  %v2253_v37 = vmul.f32 %v4464_v4, %v4973_v61  ;;  %v2211_v4 = vsel %vm1180_vm7, %v2205_v25, %v4514_v63 }
 0x63c   : > { %2350 = vmatpush.bf16.msrb.mxu2 %v2279_v14  ;;  %v2220_v61 = vmul.f32 %v4408_v17, %v3684_v23 }
 0x63d   : > { %2324 = vmatpush.bf16.msrb.mxu0 %v2270_v20  ;;  %v2095_v20 = vmul.f32 %v2087_v42, %v3829_v9  ;;  %v2293_v46 = vpack.c.bf16 %v2257_v1, %v2253_v37  ;;  %v4982_v42 = vld [vmem:[#allocation17_spill] sm:$0xff]  ;;  %v4984_v37 = vld [vmem:[#allocation19_spill] sm:$0xff] }
 0x63e   : > { %v4591_v26 = vpop.permute.xlu0 %2080 }
 0x63f   : > { %v2237_v28 = vpop.permute.xlu1 %2236  ;;  %v2089_v39 = vsel %vm1068_vm12, %v4591_v26, %v2069_v2 }
 0x640   : > { %v2243_v16 = vsel %vm1208_vm5, %v2237_v28, %v2241_v5  ;;  %v2245_v8 = vsel %vm1208_vm5, %v4492_v57, %v2237_v28  ;;  %2351 = vmatpush.bf16.msrb.mxu2 %v2275_v62  ;;  %v2094_v30 = vmul.f32 %v2089_v39, %v3835_v50  ;;  %v2271_v57 = vpack.c.bf16 %v2127_v18, %v2123_v41  ;;  %v2760_v39 = vld [vmem:[%s4853_s14 + $0x4] sm:$0xf0] }
 0x641   : > { %v2255_v36 = vmul.f32 %v2245_v8, %v4971_v58  ;;  %v2256_v13 = vmul.f32 %v2243_v16, %v4972_v43  ;;  %v2062_v5 = vmul.f32 %v2057_v35, %v3847_v12  ;;  %v2058_v50 = vmul.f32 %v2056_v21, %v3847_v12  ;;  %v4981_v8 = vld [vmem:[#allocation11_spill] sm:$0xff] }
 0x642   : > { %v2266_v2 = vpack.c.bf16 %v2094_v30, %v2090_v15  ;;  %v2055_v62 = vsel %vm1040_vm13, %v4516_v0, %v4552_v32  ;;  %v2091_v41 = vmul.f32 %v4342_v60, %v3829_v9  ;;  %vm4974_vm5 = vcmp.lt.s32.totalorder %v3564_v3, 17  ;;  %v4976_v60 = vld [vmem:[#allocation12_spill] sm:$0xff] }
 0x643   : > { %v2291_v14 = vpack.c.bf16 %v2255_v36, %v2251_v22  ;;  %v2292_v33 = vpack.c.bf16 %v2256_v13, %v2252_v47  ;;  %v2024_v18 = vsel %vm4974_vm5, %v4440_v56, %v4337_v48  ;;  %v2054_v0 = vsel %vm1040_vm13, %v4284_v7, %v4370_v6  ;;  %vm4975_vm7 = vmmov %vm4974_vm5 }
 0x644   : > { %2352 = vmatpush.bf16.msrb.mxu2 %v2271_v57  ;;  %2325 = vmatpush.bf16.msrb.mxu0 %v2266_v2  ;;  %v2023_v63 = vsel %vm4975_vm7, %v4470_v59, %v4477_v19  ;;  %v2262_v9 = vpack.c.bf16 %v2062_v5, %v2058_v50  ;;  %v2063_v15 = vmul.f32 %v2055_v62, %v3856_v29  ;;  %vm4977_vm3 = vmmov %vm4974_vm5  ;;  %v4985_v2 = vld [vmem:[#allocation33_spill] sm:$0xff] }
 0x645   : > { %2369 = vmatpush.bf16.msrb.mxu3 %v2291_v14  ;;  %2397 = vmatpush.bf16.msra.mxu1 %v2292_v33  ;;  %v2224_v58 = vmul.f32 %v2211_v4, %v3684_v23  ;;  %v2267_v7 = vpack.c.bf16 %v2095_v20, %v2091_v41  ;;  %v2026_v43 = vmul.f32 %v2024_v18, %v3875_v24  ;;  %v4987_v4 = vld [vmem:[#allocation18_spill] sm:$0xff]  ;;  %vm5009_vm11 = vmmov %vm4977_vm3 }
 0x646   : > { %v2145_v12 = vpop.permute.xlu0 %2144  ;;  %v2179_v47 = vsel %vm1152_vm8, %v4490_v10, %v4531_v51  ;;  %v2059_v35 = vmul.f32 %v2054_v0, %v3856_v29  ;;  %v4978_v10 = vld [vmem:[#allocation13_spill] sm:$0xff]  ;;  %vm4979_vm8 = vmmov %vm4977_vm3  ;;  %v4980_v51 = vld [vmem:[#allocation28_spill] sm:$0xff]  ;;  %v2156_v20 = vmul.f32 %v4985_v2, %v4984_v37  ;;  %v2043_v0 = vpop.permute.xlu2 %2042 }
 0x647   : > { %v4650_v25 = vpop.permute.xlu1 %2016  ;;  %v2031_v1 = vmul.f32 %v2023_v63, %v4980_v51  ;;  %v2192_v36 = vmul.f32 %v2179_v47, %v4982_v42  ;;  %v2288_v13 = vpack.c.bf16 %v2224_v58, %v2220_v61  ;;  %v2147_v23 = vsel %vm1124_vm9, %v4565_v11, %v2145_v12  ;;  %v4990_v63 = vld [vmem:[#allocation20_spill] sm:$0xff]  ;;  %vm5010_vm4 = vmmov %vm4977_vm3 }
 0x648   : > { %v2025_v22 = vsel %vm4977_vm3, %v4650_v25, %v4470_v59  ;;  %2737 = vmatmul.msk.bf16.vlgmr.msrb.gmra.mxu3 %vm1563_vm15, %v4508_v40  ;;  %2738 = vmatmul.msk.bf16.vlgmr.msra.gmra.mxu1 %vm1563_vm15, %v4508_v40  ;;  %v2730_v59 = vld [vmem:[%s4853_s14] sm:$0xf]  ;;  %v2263_v29 = vpack.c.bf16 %v2063_v15, %v2059_v35  ;;  %v2160_v57 = vmul.f32 %v2147_v23, %v4984_v37  ;;  %v4998_v61 = vld [vmem:[#allocation32_spill] sm:$0xff] }
 0x649   : > { %2425 = vmatpush.bf16.msra.mxu3 %v2293_v46  ;;  %2467 = vmatpush.msrb.mxu1 %v4976_v60  ;;  %v2030_v28 = vmul.f32 %v2025_v22, %v3875_v24  ;;  %v2022_v24 = vsel %vm4979_vm8, %v4337_v48, %v4354_v45  ;;  %v4686_v30 = vor.u32 %v2760_v39, %v2730_v59  ;;  %v4983_v48 = vld [vmem:[#allocation37_spill] sm:$0xff]  ;;  %v4992_v60 = vld [vmem:[#allocation31_spill] sm:$0xff]  ;;  %v4996_v59 = vld [vmem:[#allocation24_spill] sm:$0xff] }
 0x64a   : > { %2326 = vmatpush.bf16.msrb.mxu0 %v2262_v9  ;;  %2353 = vmatpush.bf16.msrb.mxu2 %v2267_v7  ;;  %v2027_v17 = vmul.f32 %v2022_v24, %v4980_v51  ;;  %v2188_v21 = vmul.f32 %v4983_v48, %v4982_v42  ;;  %v2153_v11 = vsel %vm1124_vm9, %v2145_v12, %v4442_v27  ;;  %v4712_v27 = vld [vmem:[%s4855_s16] sm:$0xff]  ;;  %vm4993_vm9 = vcmask 64512   ;;  %v4994_v7 = vld [vmem:[#allocation36_spill] sm:$0xff]  ;;  %v4999_v24 = vld [vmem:[#allocation39_spill] sm:$0xff] }
 0x64b   : > { %v2258_v16 = vpack.c.bf16 %v2030_v28, %v2026_v43  ;;  %2536 = vmatpush.msra.mxu1 %v4981_v8  ;;  %v4986_v46 = vpack.c.bf16 %v4525_v44, %v4522_v31  ;;  %v2280_v62 = vpack.c.bf16 %v2160_v57, %v2156_v20  ;;  %v2161_v41 = vmul.f32 %v2153_v11, %v4987_v4  ;;  %v4988_v31 = vld [vmem:[#allocation34_spill] sm:$0xff]  ;;  %v5000_v8 = vld [vmem:[#allocation35_spill] sm:$0xff]  ;;  %vm5013_vm6 = vmmov %vm4993_vm9 }
 0x64c   : > { %v2259_v14 = vpack.c.bf16 %v2031_v1, %v2027_v17  ;;  %v2284_v33 = vpack.c.bf16 %v2192_v36, %v2188_v21  ;;  %v2157_v44 = vmul.f32 %v4988_v31, %v4987_v4  ;;  %v4989_v12 = vpack.c.bf16 %v4545_v34, %v4542_v55  ;;  %v4997_v35 = vld [vmem:[#allocation30_spill] sm:$0xff]  ;;  %v5002_v17 = vld [vmem:[#allocation25_spill] sm:$0xff]  ;;  %v5008_v11 = vld [vmem:[#allocation27_spill] sm:$0xff] }
 0x64d   : > { %2490 = vmatpush.msrb.mxu3 %v4978_v10  ;;  %v2124_v55 = vmul.f32 %v4994_v7, %v4990_v63  ;;  %v2277_v10 = vpack.c.bf16 %v4998_v61, %v4997_v35  ;;  %v2125_v42 = vmul.f32 %v5000_v8, %v4996_v59  ;;  %v5005_v57 = vld [vmem:[#allocation38_spill] sm:$0xff]  ;;  %vm5015_vm14 = vmmov %vm5013_vm6 }
 0x64e   : > { %2327 = vmatpush.bf16.msrb.mxu0 %v2258_v16  ;;  %2354 = vmatpush.bf16.msrb.mxu2 %v2263_v29  ;;  %v2109_v5 = vpop.permute.xlu0 %2108  ;;  %v2281_v22 = vpack.c.bf16 %v2161_v41, %v2157_v44  ;;  %v2433_v16 = vld [vmem:[%s4855_s16 + $0x8] sm:$0xff]  ;;  %v2013_v36 = vpop.permute.xlu2 %2012  ;;  %v5012_v41 = vld [vmem:[#allocation26_spill] sm:$0xff]  ;;  %vm5016_vm0 = vmmov %vm5013_vm6 }
 0x64f   : > { %v2077_v50 = vpop.permute.xlu1 %2076  ;;  %v2117_v18 = vsel %vm1096_vm10, %v4538_v52, %v2109_v5  ;;  %v4991_v52 = vld [vmem:[#allocation29_spill] sm:$0xff]  ;;  %v2115_v34 = vsel %vm1096_vm10, %v2109_v5, %v4567_v38  ;;  %vm5003_vm10 = vmmov %vm4977_vm3  ;;  %v2093_v5 = vmul.f32 %v5005_v57, %v5002_v17  ;;  %v5014_v31 = vld [vmem:[#allocation10_spill] sm:$0xff] }
 0x650   : > { %v2128_v9 = vmul.f32 %v2117_v18, %v4990_v63  ;;  %v2276_v15 = vpack.c.bf16 %v4992_v60, %v4991_v52  ;;  %v2085_v58 = vsel %vm1068_vm12, %v4533_v49, %v2077_v50  ;;  %v2129_v39 = vmul.f32 %v2115_v34, %v4996_v59  ;;  %vm5017_vm1 = vmmov %vm5016_vm0 }
 0x651   : > { %2328 = vmatmul.bf16.vlgmr.msrb.gmra.mxu0 %v4686_v30  ;;  %v2083_v38 = vsel %vm1068_vm12, %v2077_v50, %v4591_v26  ;;  %vm5004_vm12 = vmmov %vm4993_vm9 }
 0x652   : > { %2376 = vmatpush.bf16.msra.mxu0 %v2288_v13  ;;  %2355 = vmatpush.bf16.msrb.mxu2 %v2259_v14  ;;  %v2272_v28 = vpack.c.bf16 %v2128_v9, %v2124_v55  ;;  %v5001_v13 = vld [vmem:[#allocation23_spill] sm:$0xff]  ;;  %v2097_v26 = vmul.f32 %v2083_v38, %v5002_v17  ;;  %v2273_v21 = vpack.c.bf16 %v2129_v39, %v2125_v42  ;;  %vm5018_vm2 = vmmov %vm5016_vm0 }
 0x654   : > { %v2269_v50 = vpack.c.bf16 %v2097_v26, %v2093_v5 }
 0x655   : > { %2356 = vmatmul.bf16.vlgmr.msrb.gmra.mxu2 %v4686_v30 }
 0x656   : > { %2377 = vmatpush.bf16.msra.mxu0 %v2284_v33  ;;  %2404 = vmatpush.bf16.msra.mxu2 %v4986_v46  ;;  %v2045_v43 = vpop.permute.xlu0 %2044  ;;  %v5007_v33 = vld [vmem:[#allocation22_spill] sm:$0xff] }
 0x657   : > { %v2053_v49 = vsel %vm1040_vm13, %v4552_v32, %v2045_v43  ;;  %v2011_v1 = vpop.permute.xlu1 %2010  ;;  %v2052_v32 = vsel %vm1040_vm13, %v4370_v6, %v2043_v0  ;;  %v2051_v6 = vsel %vm1040_vm13, %v2045_v43, %v4559_v53 }
 0x658   : > { %2739 = vmatmul.msk.bf16.vlgmr.msra.gmra.mxu3 %vm1563_vm15, %v4508_v40  ;;  %2740 = vmatmul.msk.f32.vlgmr.msrb.gmra.mxu1 %vm4993_vm9, %v4712_v27  ;;  %v4995_v40 = vld [vmem:[#allocation21_spill] sm:$0xff]  ;;  %v2064_v29 = vmul.f32 %v2053_v49, %v5001_v13  ;;  %v2020_v48 = vsel %vm5003_vm10, %v4354_v45, %v2011_v1  ;;  %v2060_v37 = vmul.f32 %v2052_v32, %v5001_v13  ;;  %vm5006_vm15 = vmmov %vm4977_vm3 }
 0x659   : > { %v2096_v47 = vmul.f32 %v2085_v58, %v4995_v40  ;;  %v2092_v51 = vmul.f32 %v4999_v24, %v4995_v40  ;;  %v2021_v14 = vsel %vm5006_vm15, %v4477_v19, %v2013_v36  ;;  %v2050_v45 = vsel %vm1040_vm13, %v2043_v0, %v4444_v54  ;;  %vm5011_vm13 = vmmov %vm4993_vm9 }
 0x65a   : > { %2378 = vmatpush.bf16.msra.mxu0 %v2280_v62  ;;  %2405 = vmatpush.bf16.msra.mxu2 %v4989_v12  ;;  %v2028_v2 = vmul.f32 %v2020_v48, %v5007_v33  ;;  %v2264_v20 = vpack.c.bf16 %v2064_v29, %v2060_v37  ;;  %v2065_v46 = vmul.f32 %v2051_v6, %v5008_v11 }
 0x65b   : > { %v2268_v23 = vpack.c.bf16 %v2096_v47, %v2092_v51  ;;  %v2032_v53 = vmul.f32 %v2021_v14, %v5007_v33  ;;  %v2018_v62 = vsel %vm5009_vm11, %v2011_v1, %v4440_v56  ;;  %v2061_v19 = vmul.f32 %v2050_v45, %v5008_v11 }
 0x65c   : > { %v2019_v54 = vsel %vm5010_vm4, %v2013_v36, %v4650_v25  ;;  %v2029_v18 = vmul.f32 %v2018_v62, %v5012_v41 }
 0x65d   : > { %v2260_v4 = vpack.c.bf16 %v2032_v53, %v2028_v2  ;;  %v2265_v0 = vpack.c.bf16 %v2065_v46, %v2061_v19  ;;  %v2033_v56 = vmul.f32 %v2019_v54, %v5012_v41 }
 0x65e   : > { %2379 = vmatpush.bf16.msra.mxu0 %v2276_v15  ;;  %2406 = vmatpush.bf16.msra.mxu2 %v2281_v22 }
 0x65f   : > { %v2261_v3 = vpack.c.bf16 %v2033_v56, %v2029_v18  ;;  %v2306_v51 = vpop.permute.xlu1 %2305 }
 0x660   : > { %2741 = vmatmul.msk.f32.gmra.mxu1 %vm5004_vm12, %v2433_v16 }
 0x662   : > { %2380 = vmatpush.bf16.msra.mxu0 %v2272_v28  ;;  %2407 = vmatpush.bf16.msra.mxu2 %v2277_v10 }
 0x666   : > { %2381 = vmatpush.bf16.msra.mxu0 %v2268_v23  ;;  %2408 = vmatpush.bf16.msra.mxu2 %v2273_v21 }
 0x668   : > { %2742 = vmatmul.msk.f32.vlgmr.msrb.gmra.mxu3 %vm5011_vm13, %v4712_v27  ;;  %2746 = vmatmul.msk.f32.vlgmr.msra.gmra.mxu1 %vm5013_vm6, %v4712_v27 }
 0x66a   : > { %2382 = vmatpush.bf16.msra.mxu0 %v2264_v20  ;;  %2409 = vmatpush.bf16.msra.mxu2 %v2269_v50 }
 0x66e   : > { %2383 = vmatpush.bf16.msra.mxu0 %v2260_v4  ;;  %2410 = vmatpush.bf16.msra.mxu2 %v2265_v0 }
 0x670   : > { %2743 = vmatmul.msk.f32.gmra.mxu3 %vm5015_vm14, %v2433_v16  ;;  %2747 = vmatmul.msk.f32.gmra.mxu1 %vm5016_vm0, %v2433_v16 }
 0x671   : > { %2384 = vmatmul.bf16.vlgmr.msra.gmra.mxu0 %v4686_v30 }
 0x672   : > { %2513 = vmatpush.msrb.mxu0 %v5014_v31  ;;  %2411 = vmatpush.bf16.msra.mxu2 %v2261_v3 }
 0x675   : > { %2412 = vmatmul.bf16.vlgmr.msra.gmra.mxu2 %v4686_v30  ;;  %v2301_v30 = vpop.permute.xlu0 %2300 }
 0x67d   : > { %v2444_v8 = vpop.permute.xlu0 %2443 }
 0x681   : > { %2744 = vmatmul.msk.f32.vlgmr.msrb.gmra.mxu0 %vm5017_vm1, %v4712_v27  ;;  %v2439_v27 = vpop.permute.xlu2 %2438 }
 0x689   : > { %2745 = vmatmul.msk.f32.gmra.mxu0 %vm5018_vm2, %v2433_v16 }
 0x69d   : > { %v2343_v25 = vpop.f32.mrf.mxu1 }
 0x6a5   : > { %v2345_v44 = vpop.f32.mrf.mxu1 }
 0x6c5   : > { %v2399_v63 = vpop.f32.mrf.mxu1 }
 0x6cb   : > { %v2371_v12 = vpop.f32.mrf.mxu3 }
 0x6cd   : > { %v2401_v60 = vpop.f32.mrf.mxu1 }
 0x6ce   : > { %v2329_v52 = vpop.f32.mrf.mxu0 }
 0x6cf   : > { %v2330_v34 = vadd.f32 %v2329_v52, %v2301_v30 }
 0x6d1   : > { %v2344_v59 = vadd.f32 %v2343_v25, %v2330_v34 }
 0x6d3   : > { %v2373_v9 = vpop.f32.mrf.mxu3 }
 0x6d5   : > { %v2469_v22 = vpop.f32.mrf.mxu1 }
 0x6d6   : > { %v2331_v58 = vpop.f32.mrf.mxu0  ;;  %v2470_v40 = vadd.f32 %v2469_v22, %v2439_v27 }
 0x6d7   : > { %v2332_v38 = vadd.f32 %v2331_v58, %v2306_v51 }
 0x6d8   : > { %v2357_v7 = vpop.f32.mrf.mxu2  ;;  %v2544_v10 = vadd.f32 %v2470_v40, %v2344_v59 }
 0x6d9   : > { %v2358_v43 = vadd.f32 %v2357_v7, %v2301_v30  ;;  %v2346_v13 = vadd.f32 %v2345_v44, %v2332_v38 }
 0x6db   : > { %v2427_v15 = vpop.f32.mrf.mxu3  ;;  %v2372_v39 = vadd.f32 %v2371_v12, %v2358_v43 }
 0x6dd   : > { %v2472_v49 = vpop.f32.mrf.mxu1 }
 0x6de   : > { %v2473_v42 = vadd.f32 %v2472_v49, %v2444_v8 }
 0x6e0   : > { %v2359_v61 = vpop.f32.mrf.mxu2  ;;  %v2548_v26 = vadd.f32 %v2473_v42, %v2346_v13 }
 0x6e1   : > { %v2360_v1 = vadd.f32 %v2359_v61, %v2306_v51 }
 0x6e3   : > { %v2429_v55 = vpop.f32.mrf.mxu3  ;;  %v2374_v29 = vadd.f32 %v2373_v9, %v2360_v1 }
 0x6e5   : > { %v2538_v48 = vpop.f32.mrf.mxu1 }
 0x6e6   : > { %v2539_v45 = vadd.f32 %v2538_v48, %v2439_v27 }
 0x6eb   : > { %v2492_v28 = vpop.f32.mrf.mxu3 }
 0x6ec   : > { %v2493_v35 = vadd.f32 %v2492_v28, %v2439_v27 }
 0x6ed   : > { %v2541_v19 = vpop.f32.mrf.mxu1 }
 0x6ee   : > { %v2385_v47 = vpop.f32.mrf.mxu0  ;;  %v2545_v24 = vadd.f32 %v2493_v35, %v2372_v39  ;;  %v2542_v41 = vadd.f32 %v2541_v19, %v2444_v8 }
 0x6ef   : > { %v2386_v6 = vadd.f32 %v2385_v47, %v2301_v30 }
 0x6f0   : > { %v2552_v16 = vpack.c.bf16 %v2545_v24, %v2544_v10 }
 0x6f1   : > { %v2400_v33 = vadd.f32 %v2399_v63, %v2386_v6 }
 0x6f2   : > { %2556 = vst [vmem:[%s4799_s24] sm:$0xff] %v2552_v16 }
 0x6f3   : > { %v2495_v36 = vpop.f32.mrf.mxu3 }
 0x6f4   : > { %v2496_v23 = vadd.f32 %v2495_v36, %v2444_v8 }
 0x6f6   : > { %v2387_v32 = vpop.f32.mrf.mxu0  ;;  %v2549_v21 = vadd.f32 %v2496_v23, %v2374_v29 }
 0x6f7   : > { %v2388_v53 = vadd.f32 %v2387_v32, %v2306_v51 }
 0x6f8   : > { %v2413_v17 = vpop.f32.mrf.mxu2  ;;  %v2554_v57 = vpack.c.bf16 %v2549_v21, %v2548_v26 }
 0x6f9   : > { %v2414_v37 = vadd.f32 %v2413_v17, %v2301_v30  ;;  %v2402_v18 = vadd.f32 %v2401_v60, %v2388_v53 }
 0x6fa   : > { %2557 = vst [vmem:[%s4799_s24 + $0x8] sm:$0xff] %v2554_v57 }
 0x6fb   : > { %v2428_v5 = vadd.f32 %v2427_v15, %v2414_v37 }
 0x6fd   : > { %v2547_v20 = vadd.f32 %v2539_v45, %v2428_v5 }
 0x6fe   : > { %v2515_v14 = vpop.f32.mrf.mxu0 }
 0x6ff   : > { %v2516_v2 = vadd.f32 %v2515_v14, %v2439_v27 }
 0x700   : > { %v2415_v46 = vpop.f32.mrf.mxu2 }
 0x701   : > { %v2546_v11 = vadd.f32 %v2516_v2, %v2400_v33  ;;  %v2416_v50 = vadd.f32 %v2415_v46, %v2306_v51 }
 0x703   : > { %v2553_v62 = vpack.c.bf16 %v2547_v20, %v2546_v11  ;;  %v2430_v54 = vadd.f32 %v2429_v55, %v2416_v50 }
 0x705   : > { %2748 = vst [vmem:[%s4799_s24 + $0x10] sm:$0xff] %v2553_v62  ;;  %v2551_v56 = vadd.f32 %v2542_v41, %v2430_v54 }
 0x706   : > { %v2518_v4 = vpop.f32.mrf.mxu0 }
 0x707   : > { %v2519_v0 = vadd.f32 %v2518_v4, %v2444_v8 }
 0x709   : > { %v2550_v31 = vadd.f32 %v2519_v0, %v2402_v18 }
 0x70b   : > { %v2555_v3 = vpack.c.bf16 %v2551_v56, %v2550_v31 }
 0x70d   : > { %2749 = vst [vmem:[%s4799_s24 + $0x18] sm:$0xff] %v2555_v3 }
 0x70e   : > { %2944 = shalt.err (!%p2941_p4)
}
 0x70f   : > { %s2990_s19 = smov 128   ;;  %s2991_s24 = smov 8  }
 0x710   : > { %2763 = dma.vmem_to_hbm [thread:$0]  (%p3125_p5), %s2576_s7, 512, %s2578_s25, %s2562_s29, %s2990_s19, %s2990_s19, %s2991_s24  }
 0x711 PF: > { %s5019_s20 = sld [smem:[#allocation5_spill]]  ;;  %p2769_p7 = scmp.ge.s32.totalorder %s2979_s28, 2 }
 0x713   : > { %p2766_p8 = pnand %p2769_p7, %p3129_p6 }
 0x715   : > { %p2767_p9 = pneg %p2766_p8 }
 0x717   : > { %s2592_s1 = sand.u32 1, %s5019_s20  }
 0x718   : > { %s2593_s22 = scalar_lea.sflag [#allocation3], %s2592_s1 }
 0x719   : > { %2962 = dma.done.wait (%p2767_p9), %s2593_s22, 512  }
 0x71a   : > { %2964 = vsyncadd (%p2767_p9), %s2593_s22, 4294966784  ;;  %s5021_s28 = sld [smem:[#allocation7_spill]]  ;;  %s5024_s25 = smov %s2971_s26 }
 0x71b   : > { %s5022_s2 = sld [smem:[#allocation6_spill]] }
 0x71c   : > { %s5023_s27 = sld [smem:[#allocation8_spill]] }
 0x720   : > { %p28_p10 = scmp.ge.s32.totalorder %s5021_s28, 4  }
 0x721   : > { %s5025_s26 = smov %s5022_s2 }
 0x722   :  { %30 = sbr.rel (!%p28_p10) target bundleno = 7 (0x7), region = 139 }
 0x727   :  { %2599 = vsyncpa [#allocation3], 1 }
 0x728   :  { %2601 = vsyncpa [#allocation3 + $0x1], 1 }

// kernel: tpu_custom_call.1
= control target key start
LH: loop header
LB: loop body
LE: loop exit
PB: predicated region body
PF: predicated region fallthrough
CT: control target
= control target key end

     0   :  { %s4839_s0 = inlined_call_operand.vmem [shape: bf16[4,8,256], index: 0, kind: input, shape index: {}]   ;;  %s4840_s1 = inlined_call_operand.vmem [shape: f32[2,16,8], index: 1, kind: input, shape index: {}]   ;;  %s4841_s2 = inlined_call_operand.vmem [shape: f32[9,512], index: 2, kind: input, shape index: {}]   ;;  %s4842_s3 = inlined_call_operand.vmem [shape: f32[512,8], index: 3, kind: input, shape index: {}]   ;;  %s4843_s4 = inlined_call_operand.vmem [shape: f32[8,512], index: 4, kind: input, shape index: {}]   ;;  %s4844_s5 = inlined_call_operand.vmem [shape: f32[8,1], index: 5, kind: input, shape index: {}]   ;;  %s4845_s6 = inlined_call_operand.vmem [shape: f32[8,1], index: 6, kind: input, shape index: {}]   ;;  %s4846_s7 = inlined_call_operand.vmem [shape: f32[4,8], index: 7, kind: input, shape index: {}]   ;;  %s4847_s8 = inlined_call_operand.vmem [shape: f32[8,4], index: 8, kind: input, shape index: {}]   ;;  %s4848_s9 = inlined_call_operand.vmem [shape: bf16[16,72], index: 9, kind: input, shape index: {}]   ;;  %s4849_s10 = inlined_call_operand.vmem [shape: f32[16,1], index: 10, kind: input, shape index: {}]   ;;  %s4850_s11 = inlined_call_operand.vmem [shape: f32[16,1], index: 11, kind: input, shape index: {}]   ;;  %s4851_s12 = inlined_call_operand.vmem [shape: f32[8,16], index: 12, kind: input, shape index: {}]   ;;  %s4852_s13 = inlined_call_operand.vmem [shape: f32[16,8], index: 13, kind: input, shape index: {}]   ;;  %s4853_s14 = inlined_call_operand.vmem [shape: bf16[16,144], index: 14, kind: input, shape index: {}]   ;;  %s4854_s15 = inlined_call_operand.vmem [shape: f32[16,1], index: 15, kind: input, shape index: {}]   ;;  %s4855_s16 = inlined_call_operand.vmem [shape: f32[16,8], index: 16, kind: input, shape index: {}]   ;;  %s4856_s17 = inlined_call_operand.vmem [shape: f32[16,1], index: 17, kind: input, shape index: {}]   ;;  %s4857_s18 = inlined_call_operand.hbm [shape: bf16[4,16,256], index: 18, kind: output, shape index: {}]  }
   0x1   :  { %4917 = sst [smem:[#allocation40_spill]] %s4839_s0 }
   0x2   :  { %4918 = sst [smem:[#allocation41_spill]] %s4840_s1 }
   0x3   :  { %4919 = sst [smem:[#allocation42_spill]] %s4841_s2 }
   0x4   :  { %23 = vsyncpa [#allocation3], 0 }
   0x5   :  { %25 = vsyncpa [#allocation3 + $0x1], 0  ;;  %s3087_s25 = smov 0   ;;  %s3089_s26 = smov 0  }
   0x6   :  { %s3091_s27 = smov 0   ;;  %s3093_s28 = smov 0  }
   0x7 LB: > { %4920 = sst [smem:[#allocation5_spill]] %s2967_s25  ;;  %s3108_s29 = sadd.s32 4294967295, %s2979_s28   ;;  %s2979_s28 = sphi %s3093_s28, %s5021_s28   ;;  %s2975_s27 = sphi %s3091_s27, %s5023_s27   ;;  %s2971_s26 = sphi %s3089_s26, %s5025_s26   ;;  %s2967_s25 = sphi %s3087_s25, %s5024_s25  }
   0x8   : > { %4921 = sst [smem:[#allocation6_spill]] %s2975_s27  ;;  %s2652_s30 = sadd.s32 4294967294, %s2979_s28  }
   0x9   : > { %s3112_s0 = sadd.s32 1, %s2979_s28   ;;  %s426_s19 = sadd.s32 1, %s2975_s27 }
   0xa   : > { %4922 = sst [smem:[#allocation7_spill]] %s3112_s0  ;;  %s423_s1 = ssub.s32 %s2979_s28, %s3112_s0 }
   0xb   : > { %p436_p0 = scmp.ne.s32.totalorder %s2975_s27, %s2971_s26  ;;  %p424_p1 = scmp.eq.s32.totalorder %s423_s1, 0 }
   0xc   : > { %p437_p2 = scmp.eq.s32.totalorder %s3108_s29, 1  ;;  %p442_p3 = scmp.ne.s32.totalorder %s2971_s26, %s2967_s25 }
   0xd   : > { %p443_p4 = scmp.eq.s32.totalorder %s2652_s30, 1  ;;  %p2655_p7 = scmp.ge.s32.totalorder %s2979_s28, 1 }
   0xe   : > { %s3123_s7 = scalar_select %p424_p1, %s2975_s27, %s426_s19  }
   0xf   : > { %p3125_p5 = por %p437_p2, %p436_p0  ;;  %p3129_p6 = por %p443_p4, %p442_p3 }
  0x10   : > { %4923 = sst [smem:[#allocation8_spill]] %s3123_s7  ;;  %p527_p8 = scmp.lt.s32.totalorder %s2979_s28, 3 }
  0x11   : > { %s4925_s20 = scalar_select %p3129_p6, 1, 0 }
  0x12   : > { %p528_p9 = pnand %p2655_p7, %p527_p8 }
  0x13   : > { %4926 = sst [smem:[#allocation9_spill]] %s4925_s20 }
  0x14   : > { %531 = sbr.rel (%p528_p9) target bundleno = 1809 (0x711), region = 92 }
  0x19   : > { %v675_v0 = vld [vmem:[%s4842_s3 + $0x178] sm:$0xff]  ;;  %v674_v1 = vld [vmem:[%s4842_s3 + $0x170] sm:$0xff]  ;;  %v673_v5 = vld [vmem:[%s4842_s3 + $0x168] sm:$0xff]  ;;  %s2657_s27 = sshll.u32 %s3108_s29, 1  ;;  %s4928_s20 = sld [smem:[#allocation40_spill]]  ;;  %vm4888_vm3 = vcmask 64512  }
  0x1a   : > { %v691_v2 = vld [vmem:[%s4842_s3 + $0x1f8] sm:$0xff]  ;;  %738 = vmatpush.msra.mxu2 %v675_v0  ;;  %v690_v6 = vld [vmem:[%s4842_s3 + $0x1f0] sm:$0xff]  ;;  %v689_v9 = vld [vmem:[%s4842_s3 + $0x1e8] sm:$0xff]  ;;  %p3186_p10 = scmp.lt.s32.totalorder %s2657_s27, 3  ;;  %s2982_s23 = smov 112  }
  0x1b   : > { %761 = vmatpush.msra.mxu3 %v691_v2  ;;  %v643_v3 = vld [vmem:[%s4842_s3 + $0x78] sm:$0xff]  ;;  %v642_v7 = vld [vmem:[%s4842_s3 + $0x70] sm:$0xff]  ;;  %v641_v10 = vld [vmem:[%s4842_s3 + $0x68] sm:$0xff]  ;;  %s4884_s24 = smov 111   ;;  %s4886_s30 = smov 127  }
  0x1c   : > { %v659_v4 = vld [vmem:[%s4842_s3 + $0xf8] sm:$0xff]  ;;  %692 = vmatpush.msra.mxu0 %v643_v3  ;;  %v658_v8 = vld [vmem:[%s4842_s3 + $0xf0] sm:$0xff]  ;;  %739 = vmatpush.msra.mxu2 %v674_v1  ;;  %v672_v11 = vld [vmem:[%s4842_s3 + $0x160] sm:$0xff]  ;;  %s5027_s27 = smov (!%p3186_p10, %s2657_s27), 3  ;;  %s4882_s19 = smov 1  }
  0x1d   : > { %715 = vmatpush.msra.mxu1 %v659_v4  ;;  %762 = vmatpush.msra.mxu3 %v690_v6  ;;  %v657_v12 = vld [vmem:[%s4842_s3 + $0xe8] sm:$0xff]  ;;  %v688_v13 = vld [vmem:[%s4842_s3 + $0x1e0] sm:$0xff]  ;;  %v3193_v16 = vld [vmem:[%s4842_s3 + $0x158] sm:$0xff]  ;;  %s2756_s22 = sshll.u32 %s5027_s27, 3  ;;  %s4880_s27 = smov 15  }
  0x1e   : > { %693 = vmatpush.msra.mxu0 %v642_v7  ;;  %740 = vmatpush.msra.mxu2 %v673_v5  ;;  %v640_v14 = vld [vmem:[%s4842_s3 + $0x60] sm:$0xff]  ;;  %v687_v17 = vld [vmem:[%s4842_s3 + $0x1d8] sm:$0xff]  ;;  %v3207_v20 = vld [vmem:[%s4842_s3 + $0x150] sm:$0xff]  ;;  %s4866_s1 = smov 16   ;;  %s4933_s0 = sld [smem:[#allocation42_spill]] }
  0x1f   : > { %716 = vmatpush.msra.mxu1 %v658_v8  ;;  %763 = vmatpush.msra.mxu3 %v689_v9  ;;  %v656_v15 = vld [vmem:[%s4842_s3 + $0xe0] sm:$0xff]  ;;  %v639_v18 = vld [vmem:[%s4842_s3 + $0x58] sm:$0xff]  ;;  %v686_v21 = vld [vmem:[%s4842_s3 + $0x1d0] sm:$0xff]  ;;  %s592_s21 = scalar_lea.vmem %s4928_s20, %s2756_s22  ;;  %s4864_s20 = smov 17  }
  0x20   : > { %694 = vmatpush.msra.mxu0 %v641_v10  ;;  %741 = vmatpush.msra.mxu2 %v672_v11  ;;  %v655_v19 = vld [vmem:[%s4842_s3 + $0xd8] sm:$0xff]  ;;  %v638_v22 = vld [vmem:[%s4842_s3 + $0x50] sm:$0xff]  ;;  %v3228_v24 = vld [vmem:[%s4842_s3 + $0x148] sm:$0xff]  ;;  %p594_p11 = scmp.lt.s32.totalorder %s3108_s29, 1  ;;  %s4934_s25 = sld [smem:[#allocation41_spill]] }
  0x21   : > { %717 = vmatpush.msra.mxu1 %v657_v12  ;;  %764 = vmatpush.msra.mxu3 %v688_v13  ;;  %v654_v23 = vld [vmem:[%s4842_s3 + $0xd0] sm:$0xff]  ;;  %v685_v25 = vld [vmem:[%s4842_s3 + $0x1c8] sm:$0xff]  ;;  %v3243_v28 = vld [vmem:[%s4842_s3 + $0x140] sm:$0xff] }
  0x22   : > { %695 = vmatpush.msra.mxu0 %v640_v14  ;;  %742 = vmatpush.msra.mxu2 %v3193_v16  ;;  %v637_v26 = vld [vmem:[%s4842_s3 + $0x48] sm:$0xff]  ;;  %v684_v29 = vld [vmem:[%s4842_s3 + $0x1c0] sm:$0xff]  ;;  %v3259_v32 = vld [vmem:[%s4842_s3 + $0x138] sm:$0xff]  ;;  %s595_s22 = scalar_select %p594_p11, %s3108_s29, 1 }
  0x23   : > { %718 = vmatpush.msra.mxu1 %v656_v15  ;;  %765 = vmatpush.msra.mxu3 %v687_v17  ;;  %v653_v27 = vld [vmem:[%s4842_s3 + $0xc8] sm:$0xff]  ;;  %v636_v30 = vld [vmem:[%s4842_s3 + $0x40] sm:$0xff]  ;;  %v683_v33 = vld [vmem:[%s4842_s3 + $0x1b8] sm:$0xff]  ;;  %v2981_v15 = vmov 0  }
  0x24   : > { %696 = vmatpush.msra.mxu0 %v639_v18  ;;  %743 = vmatpush.msra.mxu2 %v3207_v20  ;;  %v652_v31 = vld [vmem:[%s4842_s3 + $0xc0] sm:$0xff]  ;;  %v635_v34 = vld [vmem:[%s4842_s3 + $0x38] sm:$0xff]  ;;  %v3274_v36 = vld [vmem:[%s4842_s3 + $0x130] sm:$0xff] }
  0x25   : > { %719 = vmatpush.msra.mxu1 %v655_v19  ;;  %766 = vmatpush.msra.mxu3 %v686_v21  ;;  %v651_v35 = vld [vmem:[%s4842_s3 + $0xb8] sm:$0xff]  ;;  %v682_v37 = vld [vmem:[%s4842_s3 + $0x1b0] sm:$0xff]  ;;  %v3292_v40 = vld [vmem:[%s4842_s3 + $0x128] sm:$0xff] }
  0x26   : > { %697 = vmatpush.msra.mxu0 %v638_v22  ;;  %744 = vmatpush.msra.mxu2 %v3228_v24  ;;  %v634_v38 = vld [vmem:[%s4842_s3 + $0x30] sm:$0xff]  ;;  %v681_v41 = vld [vmem:[%s4842_s3 + $0x1a8] sm:$0xff]  ;;  %v3307_v45 = vld [vmem:[%s4842_s3 + $0x120] sm:$0xff] }
  0x27   : > { %720 = vmatpush.msra.mxu1 %v654_v23  ;;  %767 = vmatpush.msra.mxu3 %v685_v25  ;;  %v650_v39 = vld [vmem:[%s4842_s3 + $0xb0] sm:$0xff]  ;;  %v633_v42 = vld [vmem:[%s4842_s3 + $0x28] sm:$0xff]  ;;  %v680_v46 = vld [vmem:[%s4842_s3 + $0x1a0] sm:$0xff] }
  0x28   : > { %698 = vmatpush.msra.mxu0 %v637_v26  ;;  %745 = vmatpush.msra.mxu2 %v3243_v28  ;;  %v649_v43 = vld [vmem:[%s4842_s3 + $0xa8] sm:$0xff]  ;;  %v632_v49 = vld [vmem:[%s4842_s3 + $0x20] sm:$0xff]  ;;  %v3322_v52 = vld [vmem:[%s4842_s3 + $0x118] sm:$0xff] }
  0x29   : > { %721 = vmatpush.msra.mxu1 %v653_v27  ;;  %768 = vmatpush.msra.mxu3 %v684_v29  ;;  %v2662_v44 = vld [vmem:[%s592_s21 + $0x8] sm:$0xff]  ;;  %v648_v50 = vld [vmem:[%s4842_s3 + $0xa0] sm:$0xff]  ;;  %v679_v53 = vld [vmem:[%s4842_s3 + $0x198] sm:$0xff] }
  0x2a   : > { %699 = vmatpush.msra.mxu0 %v636_v30  ;;  %746 = vmatpush.msra.mxu2 %v3259_v32  ;;  %v612_v47 = vunpack.c.l.b16 %v2662_v44  ;;  %v613_v48 = vunpack.c.h.b16 %v2662_v44  ;;  %v601_v51 = vld [vmem:[%s592_s21] sm:$0xff]  ;;  %v631_v56 = vld [vmem:[%s4842_s3 + $0x18] sm:$0xff]  ;;  %v3337_v58 = vld [vmem:[%s4842_s3 + $0x110] sm:$0xff]  ;;  %s2983_s21 = smov 113  }
  0x2b   : > { %722 = vmatpush.msra.mxu1 %v652_v31  ;;  %769 = vmatpush.msra.mxu3 %v683_v33  ;;  %v605_v54 = vunpack.c.l.b16 %v601_v51  ;;  %v606_v55 = vunpack.c.h.b16 %v601_v51  ;;  %v647_v57 = vld [vmem:[%s4842_s3 + $0x98] sm:$0xff]  ;;  %v3342_v59 = vld [vmem:[%s4842_s3 + $0x190] sm:$0xff]  ;;  %v3354_v0 = vld [vmem:[%s4842_s3 + $0x108] sm:$0xff] }
  0x2c   : > { %700 = vmatpush.msra.mxu0 %v635_v34  ;;  %747 = vmatpush.msra.mxu2 %v3274_v36  ;;  %v614_v60 = vpack.c.b16 %v612_v47, %v612_v47  ;;  %v615_v61 = vpack.c.b16 %v613_v48, %v613_v48  ;;  %v630_v62 = vld [vmem:[%s4842_s3 + $0x10] sm:$0xff]  ;;  %v3359_v1 = vld [vmem:[%s4842_s3 + $0x188] sm:$0xff]  ;;  %v3376_v6 = vld [vmem:[%s4842_s3 + $0x100] sm:$0xff] }
  0x2d   : > { %723 = vmatpush.msra.mxu1 %v651_v35  ;;  %770 = vmatpush.msra.mxu3 %v682_v37  ;;  %v646_v63 = vld [vmem:[%s4842_s3 + $0x90] sm:$0xff]  ;;  %v607_v2 = vpack.c.b16 %v605_v54, %v605_v54  ;;  %v608_v3 = vpack.c.b16 %v606_v55, %v606_v55  ;;  %v3366_v4 = vld [vmem:[%s4842_s3 + $0x8] sm:$0xff]  ;;  %v3383_v8 = vld [vmem:[%s4842_s3 + $0x180] sm:$0xff] }
  0x2e   : > { %701 = vmatpush.msra.mxu0 %v634_v38  ;;  %748 = vmatpush.msra.mxu2 %v3292_v40  ;;  %v3371_v5 = vld [vmem:[%s4842_s3 + $0x88] sm:$0xff]  ;;  %v3378_v7 = vunpack.c.l.bf16 %v614_v60  ;;  %v3385_v9 = vunpack.c.l.bf16 %v615_v61  ;;  %v3394_v10 = vld [vmem:[%s4842_s3] sm:$0xff] }
  0x2f   : > { %724 = vmatpush.msra.mxu1 %v650_v39  ;;  %771 = vmatpush.msra.mxu3 %v681_v41  ;;  %v3399_v11 = vld [vmem:[%s4842_s3 + $0x80] sm:$0xff]  ;;  %v3401_v12 = vunpack.c.l.bf16 %v607_v2  ;;  %v3403_v13 = vunpack.c.l.bf16 %v608_v3  ;;  %v813_v38 = vld [vmem:[%s4843_s4 + $0x8] sm:$0xff]  ;;  %v814_v39 = vld [vmem:[%s4843_s4 + $0x10] sm:$0xff] }
  0x30   : > { %702 = vmatpush.msra.mxu0 %v633_v42  ;;  %749 = vmatpush.msra.mxu2 %v3307_v45  ;;  %4929 = vst [vmem:[#allocation10_spill] sm:$0xff] %v3378_v7  ;;  %v622_v14 = vld [vmem:[%s4844_s5] sm:$0xff]  ;;  %v626_v17 = vmul.f32 %v3378_v7, %v3378_v7  ;;  %v627_v18 = vmul.f32 %v3385_v9, %v3385_v9  ;;  %v815_v41 = vld [vmem:[%s4843_s4 + $0x18] sm:$0xff] }
  0x31   : > { %725 = vmatpush.msra.mxu1 %v649_v43  ;;  %772 = vmatpush.msra.mxu3 %v680_v46  ;;  %4930 = vst [vmem:[#allocation11_spill] sm:$0xff] %v3385_v9  ;;  %v624_v19 = vmul.f32 %v3401_v12, %v3401_v12  ;;  %v625_v21 = vmul.f32 %v3403_v13, %v3403_v13  ;;  %v623_v22 = vld [vmem:[%s4845_s6] sm:$0xff] }
  0x32   : > { %703 = vmatpush.msra.mxu0 %v632_v49  ;;  %750 = vmatpush.msra.mxu2 %v3322_v52  ;;  %4931 = vst [vmem:[#allocation12_spill] sm:$0xff] %v3401_v12  ;;  %v812_v37 = vld [vmem:[%s4843_s4] sm:$0xff] }
  0x33   : > { %726 = vmatpush.msra.mxu1 %v648_v50  ;;  %773 = vmatpush.msra.mxu3 %v679_v53  ;;  %4932 = vst [vmem:[#allocation13_spill] sm:$0xff] %v3403_v13 }
  0x34   : > { %704 = vmatpush.msra.mxu0 %v631_v56  ;;  %751 = vmatpush.msra.mxu2 %v3337_v58 }
  0x35   : > { %727 = vmatpush.msra.mxu1 %v647_v57  ;;  %774 = vmatpush.msra.mxu3 %v3342_v59 }
  0x36   : > { %705 = vmatpush.msra.mxu0 %v630_v62  ;;  %752 = vmatpush.msra.mxu2 %v3354_v0 }
  0x37   : > { %728 = vmatpush.msra.mxu1 %v646_v63  ;;  %775 = vmatpush.msra.mxu3 %v3359_v1 }
  0x38   : > { %706 = vmatpush.msra.mxu0 %v3366_v4  ;;  %753 = vmatpush.msra.mxu2 %v3376_v6 }
  0x39   : > { %729 = vmatpush.msra.mxu1 %v3371_v5  ;;  %776 = vmatpush.msra.mxu3 %v3383_v8 }
  0x3a   : > { %754 = vmatmul.f32.vlgmr.msra.gmra.mxu2 %v3378_v7  ;;  %777 = vmatmul.f32.vlgmr.msra.gmra.mxu3 %v3385_v9 }
  0x3b   : > { %707 = vmatpush.msra.mxu0 %v3394_v10  ;;  %730 = vmatpush.msra.mxu1 %v3399_v11 }
  0x3c   : > { %708 = vmatmul.f32.vlgmr.msra.gmra.mxu0 %v3401_v12  ;;  %731 = vmatmul.f32.vlgmr.msra.gmra.mxu1 %v3403_v13 }
  0x3d   : > { %2813 = vset.pattern.permute.xlu0 %v2981_v15  ;;  %2814 = vset.pattern.permute.xlu1 %v2981_v15 }
  0x3e   : > { %801 = vperm.xlu0 %2813, %v622_v14   ;;  %2815 = vset.pattern.permute.xlu2 %v2981_v15 }
  0x3f   : > { %838 = vmatpush.msrb.mxu0 %v812_v37  ;;  %861 = vmatpush.msrb.mxu1 %v813_v38 }
  0x40   : > { %884 = vmatpush.msrb.mxu2 %v814_v39  ;;  %907 = vmatpush.msrb.mxu3 %v815_v41 }
  0x41   : > { %1273 = vmatpush.msra.mxu0 %v812_v37  ;;  %1296 = vmatpush.msra.mxu1 %v813_v38 }
  0x42   : > { %757 = vmatmul.f32.gmra.mxu2 %v626_v17  ;;  %780 = vmatmul.f32.gmra.mxu3 %v627_v18 }
  0x43   : > { %1319 = vmatpush.msra.mxu2 %v814_v39  ;;  %1342 = vmatpush.msra.mxu3 %v815_v41 }
  0x44   : > { %711 = vmatmul.f32.gmra.mxu0 %v624_v19  ;;  %734 = vmatmul.f32.gmra.mxu1 %v625_v21 }
  0x46   : > { %808 = vperm.xlu0 %2813, %v623_v22  }
  0xb0   : > { %v802_v60 = vpop.permute.xlu0 %801 }
  0xb8   : > { %v809_v3 = vpop.permute.xlu0 %808 }
  0xb9   : > { %v709_v23 = vpop.f32.mrf.mxu0  ;;  %v732_v25 = vpop.f32.mrf.mxu1 }
  0xba   : > { %v733_v26 = vadd.f32 %v732_v25, %v709_v23 }
  0xbd   : > { %v755_v27 = vpop.f32.mrf.mxu2  ;;  %v778_v29 = vpop.f32.mrf.mxu3 }
  0xbe   : > { %v756_v30 = vadd.f32 %v755_v27, %v733_v26 }
  0xc0   : > { %v779_v34 = vadd.f32 %v778_v29, %v756_v30 }
  0xc1   : > { %v712_v31 = vpop.f32.mrf.mxu0  ;;  %v735_v33 = vpop.f32.mrf.mxu1 }
  0xc2   : > { %v736_v35 = vadd.f32 %v735_v33, %v712_v31  ;;  %v784_v44 = vmul.f32 0.00390625, %v779_v34 }
  0xc4   : > { %v786_v48 = vmul.f32 %v784_v44, %v784_v44 }
  0xc5   : > { %v758_v42 = vpop.f32.mrf.mxu2  ;;  %v781_v43 = vpop.f32.mrf.mxu3 }
  0xc6   : > { %v759_v46 = vadd.f32 %v758_v42, %v736_v35 }
  0xc8   : > { %v782_v47 = vadd.f32 %v781_v43, %v759_v46 }
  0xca   : > { %v785_v49 = vmul.f32 0.00390625, %v782_v47 }
  0xcc   : > { %v787_v50 = vsub.f32 %v785_v49, %v786_v48 }
  0xce   : > { %v788_v51 = vadd.f32 1e-05, %v787_v50 }
  0xd0   : > { %2816 = vrsqrt.f32 %v788_v51  ;;  %vm795_vm1 = vweird.f32 %v788_v51 }
  0xd6   : > { %v2817_v53 = vpop.eup %2816 }
  0xd7   : > { %v790_v54 = vmul.f32 %v2817_v53, %v788_v51  ;;  %vm796_vm0 = vweird.f32 %v2817_v53 }
  0xd8   : > { %vm797_vm2 = vmor %vm795_vm1, %vm796_vm0 }
  0xd9   : > { %v791_v55 = vmul.f32 %v2817_v53, %v790_v54 }
  0xdb   : > { %v792_v56 = vmul.f32 0.5, %v791_v55 }
  0xdd   : > { %v793_v57 = vsub.f32 1.5, %v792_v56 }
  0xdf   : > { %v794_v61 = vmul.f32 %v2817_v53, %v793_v57 }
  0xe1   : > { %v798_v62 = vsel %vm797_vm2, %v2817_v53, %v794_v61 }
  0xe2   : > { %v804_v63 = vmul.f32 %v802_v60, %v798_v62 }
  0xe4   : > { %2663 = vmatmul.msk.f32.vlgmr.msrb.gmra.mxu0 %vm4888_vm3, %v804_v63  ;;  %2665 = vmatmul.msk.f32.vlgmr.msrb.gmra.mxu1 %vm4888_vm3, %v804_v63  ;;  %v805_v2 = vmul.f32 %v804_v63, %v784_v44 }
  0xe5   : > { %2667 = vmatmul.msk.f32.vlgmr.msrb.gmra.mxu2 %vm4888_vm3, %v804_v63  ;;  %2669 = vmatmul.msk.f32.vlgmr.msrb.gmra.mxu3 %vm4888_vm3, %v804_v63 }
  0xe6   : > { %v811_v14 = vsub.f32 %v809_v3, %v805_v2 }
  0xec   : > { %2664 = vmatmul.msk.f32.gmra.mxu0 %vm4888_vm3, %v811_v14  ;;  %2666 = vmatmul.msk.f32.gmra.mxu1 %vm4888_vm3, %v811_v14 }
  0xed   : > { %2668 = vmatmul.msk.f32.gmra.mxu2 %vm4888_vm3, %v811_v14  ;;  %2670 = vmatmul.msk.f32.gmra.mxu3 %vm4888_vm3, %v811_v14 }
 0x161   : > { %v840_v15 = vpop.f32.mrf.mxu0  ;;  %v863_v17 = vpop.f32.mrf.mxu1 }
 0x162   : > { %v915_v18 = vmul.f32 %v840_v15, %v3401_v12  ;;  %v916_v19 = vmul.f32 %v863_v17, %v3403_v13 }
 0x168   : > { %v886_v21 = vpop.f32.mrf.mxu2  ;;  %v909_v22 = vpop.f32.mrf.mxu3 }
 0x169   : > { %v843_v23 = vpop.f32.mrf.mxu0  ;;  %v866_v25 = vpop.f32.mrf.mxu1  ;;  %v918_v31 = vmul.f32 %v909_v22, %v3385_v9  ;;  %v917_v37 = vmul.f32 %v886_v21, %v3378_v7 }
 0x16a   : > { %v919_v26 = vadd.f32 %v915_v18, %v843_v23  ;;  %v3449_v27 = vadd.f32 %v916_v19, %v866_v25 }
 0x16c   : > { %v2671_v29 = vmul.f32 -1.442695, %v919_v26  ;;  %v2672_v30 = vmul.f32 -1.442695, %v3449_v27 }
 0x16e   : > { %2818 = vpow2.f32 %v2671_v29 }
 0x16f   : > { %2820 = vpow2.f32 %v2672_v30 }
 0x170   : > { %v912_v33 = vpop.f32.mrf.mxu3  ;;  %v889_v34 = vpop.f32.mrf.mxu2 }
 0x171   : > { %v3453_v35 = vadd.f32 %v918_v31, %v912_v33  ;;  %v3457_v41 = vadd.f32 %v917_v37, %v889_v34 }
 0x173   : > { %v2674_v38 = vmul.f32 -1.442695, %v3453_v35  ;;  %v2673_v46 = vmul.f32 -1.442695, %v3457_v41 }
 0x174   : > { %v2819_v39 = vpop.eup %2818 }
 0x175   : > { %v2821_v42 = vpop.eup %2820  ;;  %v935_v43 = vadd.f32 1.0, %v2819_v39  ;;  %2822 = vpow2.f32 %v2674_v38 }
 0x176   : > { %v936_v44 = vadd.f32 1.0, %v2821_v42 }
 0x177   : > { %2824 = vrcp.f32 %v935_v43  ;;  %v950_v55 = vand.u32 2147483648, %v935_v43  ;;  %v948_v61 = vand.u32 2147483647, %v935_v43  ;;  %vm944_vm5 = vweird.f32 %v935_v43 }
 0x178   : > { %2826 = vrcp.f32 %v936_v44  ;;  %v965_v19 = vand.u32 2147483648, %v936_v44  ;;  %vm959_vm9 = vweird.f32 %v936_v44  ;;  %v963_v22 = vand.u32 2147483647, %v936_v44 }
 0x179   : > { %2828 = vpow2.f32 %v2673_v46  ;;  %v951_v2 = vor.u32 1.1754944e-38, %v950_v55  ;;  %vm949_vm7 = vcmp.eq.f32.partialorder %v948_v61, 8.507059e+37  ;;  %v1011_v61 = vlaneseq }
 0x17a   : > { %v966_v29 = vor.u32 1.1754944e-38, %v965_v19  ;;  %vm964_vm11 = vcmp.eq.f32.partialorder %v963_v22, 8.507059e+37 }
 0x17b   : > { %v2823_v47 = vpop.eup %2822 }
 0x17c   : > { %v3460_v49 = vadd.f32 1.0, %v2823_v47 }
 0x17d   : > { %v2825_v48 = vpop.eup %2824 }
 0x17e   : > { %v2827_v50 = vpop.eup %2826  ;;  %v940_v51 = vmul.f32 %v2825_v48, %v935_v43  ;;  %2830 = vrcp.f32 %v3460_v49  ;;  %vm945_vm4 = vweird.f32 %v2825_v48  ;;  %vm989_vm13 = vweird.f32 %v3460_v49 }
 0x17f   : > { %v955_v53 = vmul.f32 %v2827_v50, %v936_v44  ;;  %v2829_v57 = vpop.eup %2828  ;;  %vm946_vm6 = vmor %vm944_vm5, %vm945_vm4  ;;  %vm960_vm8 = vweird.f32 %v2827_v50  ;;  %v993_v42 = vand.u32 2147483647, %v3460_v49 }
 0x180   : > { %v941_v54 = vsub.f32 1.0, %v940_v51  ;;  %v3463_v3 = vadd.f32 1.0, %v2829_v57  ;;  %vm961_vm10 = vmor %vm959_vm9, %vm960_vm8 }
 0x181   : > { %v956_v56 = vsub.f32 1.0, %v955_v53  ;;  %vm994_vm15 = vcmp.eq.f32.partialorder %v993_v42, 8.507059e+37 }
 0x182   : > { %v942_v60 = vmul.f32 %v2825_v48, %v941_v54  ;;  %2832 = vrcp.f32 %v3463_v3  ;;  %vm974_vm1 = vweird.f32 %v3463_v3 }
 0x183   : > { %v957_v62 = vmul.f32 %v2827_v50, %v956_v56 }
 0x184   : > { %v943_v63 = vadd.f32 %v2825_v48, %v942_v60  ;;  %v2831_v17 = vpop.eup %2830 }
 0x185   : > { %v958_v15 = vadd.f32 %v2827_v50, %v957_v62  ;;  %v985_v25 = vmul.f32 %v2831_v17, %v3460_v49  ;;  %vm990_vm12 = vweird.f32 %v2831_v17 }
 0x186   : > { %v947_v14 = vsel %vm946_vm6, %v2825_v48, %v943_v63  ;;  %vm991_vm14 = vmor %vm989_vm13, %vm990_vm12  ;;  %vm1359_vm6 = vcmask 1043456  }
 0x187   : > { %v952_v18 = vsel %vm949_vm7, %v951_v2, %v947_v14  ;;  %v962_v23 = vsel %vm961_vm10, %v2827_v50, %v958_v15  ;;  %v986_v30 = vsub.f32 1.0, %v985_v25  ;;  %v978_v50 = vand.u32 2147483647, %v3463_v3  ;;  %v2681_v14 = vld [vmem:[%s4933_s0 + $0x20] ss:$8 sm:$0xf] }
 0x188   : > { %v3465_v21 = vmul.f32 %v952_v18, %v919_v26  ;;  %v967_v26 = vsel %vm964_vm11, %v966_v29, %v962_v23  ;;  %v2833_v31 = vpop.eup %2832  ;;  %v3570_v15 = vperm.slane %v2681_v14, 0  ;;  %v3585_v25 = vld [vmem:[%s4933_s0 + $0x7] ss:$8 sm:$0xf] }
 0x189   : > { %v3476_v33 = vmul.f32 %v967_v26, %v3449_v27  ;;  %v970_v34 = vmul.f32 %v2833_v31, %v3463_v3  ;;  %v987_v37 = vmul.f32 %v2831_v17, %v986_v30  ;;  %v995_v27 = vand.u32 2147483648, %v3460_v49  ;;  %v2679_v29 = vld [vmem:[%s4933_s0 + $0x6] ss:$8 sm:$0xf] }
 0x18a   : > { %1172 = vrot.lane.b32.xlu1 %v3465_v21, %s2982_s23  ;;  %1144 = vrot.lane.b32.xlu0 %v3465_v21, %s2983_s21  ;;  %vm975_vm0 = vweird.f32 %v2833_v31  ;;  %v980_v49 = vand.u32 2147483648, %v3463_v3  ;;  %vm979_vm4 = vcmp.eq.f32.partialorder %v978_v50, 8.507059e+37  ;;  %v3564_v3 = vand.u32 127, %v1011_v61 }
 0x18b   : > { %1200 = vrot.lane.b32.xlu2 %v3465_v21, %s4884_s24  ;;  %v971_v38 = vsub.f32 1.0, %v970_v34  ;;  %v988_v39 = vadd.f32 %v2831_v17, %v987_v37  ;;  %v996_v46 = vor.u32 1.1754944e-38, %v995_v27  ;;  %vm976_vm2 = vmor %vm974_vm1, %vm975_vm0  ;;  %v3596_v34 = vperm.slane %v2679_v29, 0 }
 0x18c   : > { %v981_v54 = vor.u32 1.1754944e-38, %v980_v49  ;;  %vm1208_vm5 = vcmp.lt.s32.totalorder %v3564_v3, 111  ;;  %vm1180_vm7 = vcmp.lt.s32.totalorder %v3564_v3, 112  ;;  %vm1152_vm8 = vcmp.lt.s32.totalorder %v3564_v3, 113 }
 0x18d   : > { %v972_v43 = vmul.f32 %v2833_v31, %v971_v38  ;;  %v992_v44 = vsel %vm991_vm14, %v2831_v17, %v988_v39  ;;  %vm1124_vm9 = vcmp.lt.s32.totalorder %v3564_v3, 127  ;;  %v3676_v13 = vperm.slane %v3585_v25, 1 }
 0x18e   : > { %v997_v47 = vsel %vm994_vm15, %v996_v46, %v992_v44  ;;  %vm1096_vm10 = vcmp.lt.s32.totalorder %v3564_v3, 1  ;;  %vm4889_vm11 = vcmp.lt.s32.totalorder %v3564_v3, 17  ;;  %vm1068_vm12 = vcmp.lt.s32.totalorder %v3564_v3, 15 }
 0x18f   : > { %v973_v48 = vadd.f32 %v2833_v31, %v972_v43  ;;  %v3498_v51 = vmul.f32 %v997_v47, %v3453_v35  ;;  %v1430_v35 = vld [vmem:[%s4850_s11] sm:$0xff]  ;;  %vm1040_vm13 = vcmp.lt.s32.totalorder %v3564_v3, 16  ;;  %vm1355_vm14 = vcmask 588800  }
 0x190   : > { %vm1563_vm15 = vcmask 130048  }
 0x191   : > { %v977_v53 = vsel %vm976_vm2, %v2833_v31, %v973_v48  ;;  %v3593_v31 = vperm.slane %v3585_v25, 0 }
 0x192   : > { %1202 = vrot.lane.b32.xlu1 %v3476_v33, %s4884_s24  ;;  %1062 = vrot.lane.b32.xlu0 %v3476_v33, %s4880_s27  ;;  %v982_v55 = vsel %vm979_vm4, %v981_v54, %v977_v53  ;;  %v3624_v54 = vperm.slane %v2681_v14, 1 }
 0x193   : > { %1116 = vrot.lane.b32.xlu2 %v3465_v21, %s4886_s30  ;;  %v3507_v56 = vmul.f32 %v982_v55, %v3457_v41 }
 0x194   : > { %4935 = vst [vmem:[#allocation14_spill] sm:$0xff] %v3624_v54 }
 0x19a   : > { %1174 = vrot.lane.b32.xlu1 %v3476_v33, %s2982_s23  ;;  %1146 = vrot.lane.b32.xlu0 %v3476_v33, %s2983_s21 }
 0x19b   : > { %1090 = vrot.lane.b32.xlu2 %v3476_v33, %s4882_s19 }
 0x1a2   : > { %1034 = vrot.lane.b32.xlu1 %v3476_v33, %s4866_s1  ;;  %1150 = vrot.lane.b32.xlu0 %v3498_v51, %s2983_s21 }
 0x1a3   : > { %1005 = vrot.lane.b32.xlu2 %v3476_v33, %s4864_s20 }
 0x1aa   : > { %1204 = vrot.lane.b32.xlu1 %v3507_v56, %s4884_s24  ;;  %1122 = vrot.lane.b32.xlu0 %v3498_v51, %s4886_s30 }
 0x1ab   : > { %1148 = vrot.lane.b32.xlu2 %v3507_v56, %s2983_s21 }
 0x1b2   : > { %1206 = vrot.lane.b32.xlu1 %v3498_v51, %s4884_s24  ;;  %1092 = vrot.lane.b32.xlu0 %v3507_v56, %s4882_s19  ;;  %s4954_s24 = smov 16  }
 0x1b3   : > { %1178 = vrot.lane.b32.xlu2 %v3498_v51, %s2982_s23 }
 0x1ba   : > { %1176 = vrot.lane.b32.xlu1 %v3507_v56, %s2982_s23  ;;  %1007 = vrot.lane.b32.xlu0 %v3507_v56, %s4864_s20 }
 0x1bb   : > { %1120 = vrot.lane.b32.xlu2 %v3507_v56, %s4886_s30 }
 0x1c2   : > { %1064 = vrot.lane.b32.xlu1 %v3507_v56, %s4880_s27  ;;  %1060 = vrot.lane.b32.xlu0 %v3465_v21, %s4880_s27 }
 0x1c3   : > { %1094 = vrot.lane.b32.xlu2 %v3498_v51, %s4882_s19 }
 0x1ca   : > { %1066 = vrot.lane.b32.xlu1 %v3498_v51, %s4880_s27  ;;  %1009 = vrot.lane.b32.xlu0 %v3498_v51, %s4864_s20  ;;  %s4950_s27 = smov 127  }
 0x1cb   : > { %1036 = vrot.lane.b32.xlu2 %v3507_v56, %s4866_s1 }
 0x1d2   : > { %1038 = vrot.lane.b32.xlu1 %v3498_v51, %s4866_s1  ;;  %1032 = vrot.lane.b32.xlu0 %v3465_v21, %s4866_s1  ;;  %s2757_s1 = sshll.u32 %s595_s22, 4  ;;  %s4953_s22 = smov 15  }
 0x1d3   : > { %1118 = vrot.lane.b32.xlu2 %v3476_v33, %s4886_s30  ;;  %s598_s2 = scalar_lea.vmem %s4934_s25, %s2757_s1  ;;  %s4951_s1 = smov 111  }
 0x1d4   : > { %v1250_v47 = vld [vmem:[%s598_s2] sm:$0xff]  ;;  %v1251_v53 = vld [vmem:[%s598_s2 + $0x8] sm:$0xff]  ;;  %s4955_s30 = smov 17  }
 0x1d5   : > { %2686 = vmatmul.msk.f32.vlgmr.msra.gmra.mxu2 %vm4888_vm3, %v1250_v47  ;;  %2688 = vmatmul.msk.f32.vlgmr.msra.gmra.mxu3 %vm4888_vm3, %v1250_v47 }
 0x1d6   : > { %2684 = vmatmul.msk.f32.vlgmr.msra.gmra.mxu1 %vm4888_vm3, %v1250_v47  ;;  %2682 = vmatmul.msk.f32.vlgmr.msra.gmra.mxu0 %vm4888_vm3, %v1250_v47 }
 0x1da   : > { %1088 = vrot.lane.b32.xlu1 %v3465_v21, %s4882_s19  ;;  %1688 = vperm.xlu0 %2813, %v1430_v35   ;;  %s4952_s19 = smov 1  }
 0x1db   : > { %1003 = vrot.lane.b32.xlu2 %v3465_v21, %s4864_s20 }
 0x1dd   : > { %2687 = vmatmul.msk.f32.gmra.mxu2 %vm4888_vm3, %v1251_v53  ;;  %2689 = vmatmul.msk.f32.gmra.mxu3 %vm4888_vm3, %v1251_v53 }
 0x1de   : > { %2685 = vmatmul.msk.f32.gmra.mxu1 %vm4888_vm3, %v1251_v53  ;;  %2683 = vmatmul.msk.f32.gmra.mxu0 %vm4888_vm3, %v1251_v53 }
 0x1e5   : > { %v3552_v41 = vpop.permute.xlu2 %1200 }
 0x1ed   : > { %v3554_v57 = vpop.permute.xlu2 %1116 }
 0x1f5   : > { %v3556_v60 = vpop.permute.xlu2 %1090 }
 0x1fc   : > { %v3558_v62 = vpop.permute.xlu1 %1172  ;;  %v3560_v63 = vpop.permute.xlu0 %1144 }
 0x1fd   : > { %v3562_v2 = vpop.permute.xlu2 %1005 }
 0x204   : > { %v1203_v17 = vpop.permute.xlu1 %1202  ;;  %v3573_v18 = vpop.permute.xlu0 %1062 }
 0x205   : > { %v1211_v19 = vsel %vm1208_vm5, %v3552_v41, %v1203_v17  ;;  %v3578_v22 = vpop.permute.xlu2 %1148 }
 0x206   : > { %v1224_v23 = vmul.f32 %v3570_v15, %v1211_v19 }
 0x208   : > { %v1244_v26 = vpack.c.bf16 %v1224_v23, %v1224_v23 }
 0x20a   : > { %v1361_v30 = vsel %vm1359_vm6, %v1244_v26, 0 }
 0x20b   : > { %1375 = vmatpush.bf16.msrb.mxu0 %v1361_v30 }
 0x20c   : > { %v3598_v37 = vpop.permute.xlu1 %1174  ;;  %v1147_v38 = vpop.permute.xlu0 %1146 }
 0x20d   : > { %v1183_v39 = vsel %vm1180_vm7, %v3558_v62, %v3598_v37  ;;  %v1155_v27 = vsel %vm1152_vm8, %v3560_v63, %v1147_v38  ;;  %v3607_v42 = vpop.permute.xlu2 %1178 }
 0x20e   : > { %v1196_v43 = vmul.f32 %v3593_v31, %v1183_v39  ;;  %v1168_v44 = vmul.f32 %v3596_v34, %v1155_v27  ;;  %v3634_v39 = vperm.slane %v2681_v14, 2  ;;  %v3636_v27 = vperm.slane %v2681_v14, 3 }
 0x210   : > { %v1240_v46 = vpack.c.bf16 %v1196_v43, %v1168_v44  ;;  %4936 = vst [vmem:[#allocation15_spill] sm:$0xff] %v3634_v39 }
 0x211   : > { %4937 = vst [vmem:[#allocation16_spill] sm:$0xff] %v3636_v27 }
 0x212   : > { %1376 = vmatpush.bf16.msrb.mxu0 %v1240_v46  ;;  %v3640_v46 = vperm.slane %v2679_v29, 3 }
 0x214   : > { %v3618_v48 = vpop.permute.xlu1 %1034  ;;  %v1151_v49 = vpop.permute.xlu0 %1150 }
 0x215   : > { %v3620_v50 = vpop.permute.xlu2 %1120  ;;  %v1156_v14 = vsel %vm1152_vm8, %v1151_v49, %v3560_v63  ;;  %v3667_v63 = vperm.slane %v2679_v29, 2 }
 0x217   : > { %4938 = vst [vmem:[#allocation17_spill] sm:$0xff] %v3667_v63 }
 0x21c   : > { %v1205_v55 = vpop.permute.xlu1 %1204  ;;  %v1123_v35 = vpop.permute.xlu0 %1122 }
 0x21d   : > { %v1210_v61 = vsel %vm1208_vm5, %v1203_v17, %v1205_v55  ;;  %v3630_v19 = vpop.permute.xlu2 %1094  ;;  %v1128_v12 = vsel %vm1124_vm9, %v1123_v35, %v3554_v57 }
 0x21e   : > { %v1225_v23 = vmul.f32 %v3624_v54, %v1210_v61  ;;  %v2678_v61 = vld [vmem:[%s4933_s0 + $0x5] ss:$8 sm:$0xf] }
 0x21f   : > { %v3673_v9 = vperm.slane %v2678_v61, 3 }
 0x220   : > { %v1245_v26 = vpack.c.bf16 %v1225_v23, %v1225_v23 }
 0x221   : > { %4939 = vst [vmem:[#allocation18_spill] sm:$0xff] %v3673_v9  ;;  %v1143_v54 = vmul.f32 %v3673_v9, %v1128_v12 }
 0x222   : > { %v1364_v30 = vsel %vm1359_vm6, %v1245_v26, 0 }
 0x223   : > { %1389 = vmatpush.bf16.msrb.mxu1 %v1364_v30  ;;  %v3657_v30 = vperm.slane %v2679_v29, 1 }
 0x224   : > { %v1207_v43 = vpop.permute.xlu1 %1206  ;;  %v3638_v44 = vpop.permute.xlu0 %1092 }
 0x225   : > { %v1209_v17 = vsel %vm1208_vm5, %v1205_v55, %v1207_v43  ;;  %v1212_v47 = vsel %vm1208_vm5, %v1207_v43, %v3552_v41  ;;  %v3647_v53 = vpop.permute.xlu2 %1036  ;;  %v3660_v55 = vperm.slane %v3585_v25, 3  ;;  %v1184_v41 = vsel %vm1180_vm7, %v3607_v42, %v3558_v62 }
 0x226   : > { %v1226_v23 = vmul.f32 %v3634_v39, %v1209_v17  ;;  %v1227_v26 = vmul.f32 %v3636_v27, %v1212_v47  ;;  %v1154_v17 = vsel %vm1152_vm8, %v1147_v38, %v3578_v22  ;;  %v1171_v47 = vmul.f32 %v3640_v46, %v1156_v14 }
 0x227   : > { %v1199_v38 = vmul.f32 %v3660_v55, %v1184_v41  ;;  %v1153_v14 = vsel %vm1152_vm8, %v3578_v22, %v1151_v49  ;;  %v1169_v27 = vmul.f32 %v3657_v30, %v1154_v17  ;;  %v3700_v41 = vperm.slane %v2678_v61, 1 }
 0x228   : > { %v1246_v43 = vpack.c.bf16 %v1226_v23, %v1226_v23  ;;  %v1247_v7 = vpack.c.bf16 %v1227_v26, %v1227_v26  ;;  %v3684_v23 = vperm.slane %v3585_v25, 2  ;;  %v3690_v26 = vperm.slane %v2678_v61, 2 }
 0x229   : > { %v3698_v25 = vperm.slane %v2678_v61, 0 }
 0x22a   : > { %v1367_v62 = vsel %vm1359_vm6, %v1246_v43, 0  ;;  %v1370_v29 = vsel %vm1359_vm6, %v1247_v7, 0  ;;  %4940 = vst [vmem:[#allocation19_spill] sm:$0xff] %v3690_v26  ;;  %v1125_v43 = vsel %vm1124_vm9, %v3620_v50, %v1123_v35  ;;  %v1170_v35 = vmul.f32 %v3667_v63, %v1153_v14 }
 0x22b   : > { %1403 = vmatpush.bf16.msrb.mxu2 %v1367_v62  ;;  %1417 = vmatpush.bf16.msrb.mxu3 %v1370_v29  ;;  %v1243_v62 = vpack.c.bf16 %v1199_v38, %v1171_v47  ;;  %v3713_v29 = vld [vmem:[%s4933_s0 + $0x3] ss:$8 sm:$0xf]  ;;  %v1142_v9 = vmul.f32 %v3690_v26, %v1125_v43  ;;  %v3728_v47 = vld [vmem:[%s4933_s0 + $0x2] ss:$8 sm:$0xf] }
 0x22c   : > { %v1177_v7 = vpop.permute.xlu1 %1176  ;;  %v3696_v39 = vpop.permute.xlu0 %1007  ;;  %v3733_v43 = vperm.slane %v3713_v29, 2 }
 0x22d   : > { %v1181_v22 = vsel %vm1180_vm7, %v1177_v7, %v3607_v42  ;;  %v1182_v49 = vsel %vm1180_vm7, %v3598_v37, %v1177_v7  ;;  %v1119_v17 = vpop.permute.xlu2 %1118 }
 0x22e   : > { %v1197_v61 = vmul.f32 %v3676_v13, %v1182_v49  ;;  %v1198_v12 = vmul.f32 %v3684_v23, %v1181_v22  ;;  %v1126_v42 = vsel %vm1124_vm9, %v1119_v17, %v3620_v50  ;;  %v1127_v37 = vsel %vm1124_vm9, %v3554_v57, %v1119_v17  ;;  %4941 = vst [vmem:[#allocation20_spill] sm:$0xff] %v3733_v43  ;;  %v3738_v22 = vld [vmem:[%s4933_s0] ss:$8 sm:$0xf] }
 0x22f   : > { %1418 = vmatpush.bf16.msrb.mxu3 %v1243_v62  ;;  %v1140_v38 = vmul.f32 %v3698_v25, %v1127_v37  ;;  %v1141_v14 = vmul.f32 %v3700_v41, %v1126_v42  ;;  %v1239_v57 = vpack.c.bf16 %v1143_v54, %v3498_v51  ;;  %v1098_v17 = vsel %vm1096_vm10, %v3556_v60, %v3638_v44  ;;  %v3754_v51 = vld [vmem:[%s4933_s0 + $0x1] ss:$8 sm:$0xf] }
 0x230   : > { %v1241_v7 = vpack.c.bf16 %v1197_v61, %v1169_v27  ;;  %v1242_v50 = vpack.c.bf16 %v1198_v12, %v1170_v35  ;;  %v3745_v27 = vperm.slane %v3728_v47, 2  ;;  %v1238_v35 = vpack.c.bf16 %v1142_v9, %v3507_v56 }
 0x231   : > { %v1236_v49 = vpack.c.bf16 %v1140_v38, %v3465_v21  ;;  %v3758_v21 = vperm.slane %v3738_v22, 2  ;;  %v1237_v62 = vpack.c.bf16 %v1141_v14, %v3476_v33  ;;  %v1015_v61 = vsel %vm4889_vm11, %v3562_v2, %v3696_v39 }
 0x232   : > { %1390 = vmatpush.bf16.msrb.mxu1 %v1241_v7  ;;  %1404 = vmatpush.bf16.msrb.mxu2 %v1242_v50  ;;  %4942 = vst [vmem:[#allocation21_spill] sm:$0xff] %v3745_v27  ;;  %v1114_v37 = vmul.f32 %v3733_v43, %v1098_v17  ;;  %v3771_v38 = vperm.slane %v3754_v51, 2  ;;  %v1042_v9 = vsel %vm1040_vm13, %v3618_v48, %v3647_v53  ;;  %v3780_v14 = vperm.slane %v3713_v29, 3 }
 0x233   : > { %1419 = vmatpush.bf16.msrb.mxu3 %v1239_v57  ;;  %4943 = vst [vmem:[#allocation22_spill] sm:$0xff] %v3758_v21  ;;  %1377 = vmatpush.bf16.msrb.mxu0 %v1236_v49  ;;  %v1030_v33 = vmul.f32 %v3758_v21, %v1015_v61  ;;  %v3784_v57 = vperm.slane %v3728_v47, 3  ;;  %v1097_v49 = vsel %vm1096_vm10, %v3638_v44, %v3630_v19  ;;  %v3795_v61 = vld [vmem:[%s4848_s9] sm:$0xff]  ;;  %v2868_v44 = vld [vmem:[%s4842_s3 + $0x178] sm:$0xff] }
 0x234   : > { %v1065_v54 = vpop.permute.xlu1 %1064  ;;  %v1061_v42 = vpop.permute.xlu0 %1060  ;;  %4944 = vst [vmem:[#allocation23_spill] sm:$0xff] %v3771_v38  ;;  %v1058_v50 = vmul.f32 %v3771_v38, %v1042_v9 }
 0x235   : > { %v1070_v12 = vsel %vm1068_vm12, %v3573_v18, %v1065_v54  ;;  %4945 = vst [vmem:[#allocation24_spill] sm:$0xff] %v3780_v14 }
 0x236   : > { %v1086_v7 = vmul.f32 %v3745_v27, %v1070_v12  ;;  %1391 = vmatpush.bf16.msrb.mxu1 %v1237_v62  ;;  %1405 = vmatpush.bf16.msrb.mxu2 %v1238_v35  ;;  %4946 = vst [vmem:[#allocation25_spill] sm:$0xff] %v3784_v57  ;;  %v1230_v62 = vpack.c.bf16 %v1058_v50, %v1030_v33  ;;  %v3808_v33 = vperm.slane %v3754_v51, 3 }
 0x237   : > { %v1115_v12 = vmul.f32 %v3780_v14, %v1097_v49 }
 0x238   : > { %v1234_v56 = vpack.c.bf16 %v1114_v37, %v1086_v7  ;;  %4948 = vst [vmem:[#allocation27_spill] sm:$0xff] %v3808_v33 }
 0x23a   : > { %1406 = vmatpush.bf16.msrb.mxu2 %v1234_v56  ;;  %v2869_v56 = vld [vmem:[%s4842_s3 + $0x170] sm:$0xff] }
 0x23c   : > { %v1067_v17 = vpop.permute.xlu1 %1066  ;;  %v1010_v7 = vpop.permute.xlu0 %1009 }
 0x23d   : > { %v1069_v35 = vsel %vm1068_vm12, %v1065_v54, %v1067_v17  ;;  %v3805_v54 = vperm.slane %v3738_v22, 3  ;;  %v1014_v50 = vsel %vm4889_vm11, %v3696_v39, %v1010_v7 }
 0x23e   : > { %v1087_v37 = vmul.f32 %v3784_v57, %v1069_v35  ;;  %1407 = vmatpush.bf16.msrb.mxu2 %v1230_v62  ;;  %v2870_v62 = vld [vmem:[%s4842_s3 + $0x168] sm:$0xff] }
 0x23f   : > { %4947 = vst [vmem:[#allocation26_spill] sm:$0xff] %v3805_v54 }
 0x240   : > { %v1235_v9 = vpack.c.bf16 %v1115_v12, %v1087_v37  ;;  %v1031_v12 = vmul.f32 %v3805_v54, %v1014_v50  ;;  %v3835_v50 = vperm.slane %v3728_v47, 0 }
 0x241   : > { %2696 = vmatmul.msk.bf16.vlgmr.msrb.gmra.mxu2 %vm1355_vm14, %v3795_v61 }
 0x242   : > { %1501 = vmatpush.msra.mxu2 %v2868_v44  ;;  %1420 = vmatpush.bf16.msrb.mxu3 %v1235_v9  ;;  %v2871_v44 = vld [vmem:[%s4842_s3 + $0x160] sm:$0xff]  ;;  %v3829_v9 = vperm.slane %v3728_v47, 1  ;;  %v3853_v47 = vperm.slane %v3738_v22, 1 }
 0x244   : > { %1502 = vmatpush.msra.mxu2 %v2869_v56  ;;  %v1039_v49 = vpop.permute.xlu1 %1038  ;;  %v1033_v56 = vpop.permute.xlu0 %1032  ;;  %4949 = vst [vmem:[#allocation28_spill] sm:$0xff] %v3853_v47 }
 0x245   : > { %v1041_v35 = vsel %vm1040_vm13, %v3647_v53, %v1039_v49  ;;  %v1071_v53 = vsel %vm1068_vm12, %v1061_v42, %v3573_v18  ;;  %v2872_v18 = vld [vmem:[%s4842_s3 + $0x1f8] sm:$0xff] }
 0x246   : > { %1503 = vmatpush.msra.mxu2 %v2870_v62  ;;  %v1059_v37 = vmul.f32 %v3808_v33, %v1041_v35  ;;  %v3838_v62 = vperm.slane %v3713_v29, 0  ;;  %v3841_v35 = vperm.slane %v3713_v29, 1  ;;  %v3856_v29 = vperm.slane %v3754_v51, 1 }
 0x248   : > { %1504 = vmatpush.msra.mxu2 %v2871_v44  ;;  %v1231_v39 = vpack.c.bf16 %v1059_v37, %v1031_v12  ;;  %v3847_v12 = vperm.slane %v3754_v51, 0  ;;  %v1004_v37 = vpop.permute.xlu2 %1003 }
 0x24a   : > { %1505 = vmatpush.msra.mxu2 %v3193_v16  ;;  %1421 = vmatpush.bf16.msrb.mxu3 %v1231_v39  ;;  %v1072_v16 = vsel %vm1068_vm12, %v1067_v17, %v1061_v42  ;;  %v1085_v42 = vmul.f32 %v3829_v9, %v1071_v53  ;;  %v1043_v17 = vsel %vm1040_vm13, %v1033_v56, %v3618_v48 }
 0x24c   : > { %1506 = vmatpush.msra.mxu2 %v3207_v20  ;;  %v1044_v20 = vsel %vm1040_vm13, %v1039_v49, %v1033_v56  ;;  %v1089_v44 = vpop.permute.xlu1 %1088  ;;  %v1084_v49 = vmul.f32 %v3835_v50, %v1072_v16  ;;  %v1017_v56 = vsel %vm4889_vm11, %v1010_v7, %v1004_v37  ;;  %v1057_v16 = vmul.f32 %v3856_v29, %v1043_v17  ;;  %v2875_v7 = vld [vmem:[%s4842_s3 + $0x1e0] sm:$0xff]  ;;  %v2880_v17 = vld [vmem:[%s4842_s3 + $0x70] sm:$0xff] }
 0x24d   : > { %v1099_v39 = vsel %vm1096_vm10, %v1089_v44, %v3556_v60  ;;  %v1100_v51 = vsel %vm1096_vm10, %v3630_v19, %v1089_v44  ;;  %2697 = vmatmul.msk.bf16.vlgmr.msrb.gmra.mxu3 %vm1355_vm14, %v3795_v61  ;;  %v2873_v60 = vld [vmem:[%s4842_s3 + $0x1f0] sm:$0xff]  ;;  %v1016_v19 = vsel %vm4889_vm11, %v1004_v37, %v3562_v2 }
 0x24e   : > { %1530 = vmatpush.msra.mxu3 %v2872_v18  ;;  %1507 = vmatpush.msra.mxu2 %v3228_v24  ;;  %v3875_v24 = vperm.slane %v3738_v22, 0  ;;  %v1112_v53 = vmul.f32 %v3838_v62, %v1100_v51  ;;  %v1113_v48 = vmul.f32 %v3841_v35, %v1099_v39  ;;  %v1056_v22 = vmul.f32 %v3847_v12, %v1044_v20  ;;  %v2876_v20 = vld [vmem:[%s4842_s3 + $0x1d8] sm:$0xff]  ;;  %v2882_v51 = vld [vmem:[%s4842_s3 + $0x1c8] sm:$0xff] }
 0x24f   : > { %v1029_v39 = vmul.f32 %v3853_v47, %v1016_v19  ;;  %v2890_v19 = vld [vmem:[%s4842_s3 + $0xd8] sm:$0xff] }
 0x250   : > { %1508 = vmatpush.msra.mxu2 %v3243_v28  ;;  %1531 = vmatpush.msra.mxu3 %v2873_v60  ;;  %v1232_v18 = vpack.c.bf16 %v1112_v53, %v1084_v49  ;;  %v1233_v44 = vpack.c.bf16 %v1113_v48, %v1085_v42  ;;  %v2874_v28 = vld [vmem:[%s4842_s3 + $0x1e8] sm:$0xff]  ;;  %v1028_v2 = vmul.f32 %v3875_v24, %v1017_v56  ;;  %v2878_v42 = vld [vmem:[%s4842_s3 + $0xf8] sm:$0xff]  ;;  %v2886_v53 = vld [vmem:[%s4842_s3 + $0x60] sm:$0xff] }
 0x251   : > { %v2884_v49 = vld [vmem:[%s4842_s3 + $0xe8] sm:$0xff]  ;;  %v2887_v48 = vld [vmem:[%s4842_s3 + $0xe0] sm:$0xff]  ;;  %v2889_v60 = vld [vmem:[%s4842_s3 + $0x58] sm:$0xff] }
 0x252   : > { %1509 = vmatpush.msra.mxu2 %v3259_v32  ;;  %1532 = vmatpush.msra.mxu3 %v2874_v28  ;;  %v1228_v37 = vpack.c.bf16 %v1056_v22, %v1028_v2  ;;  %v1229_v32 = vpack.c.bf16 %v1057_v16, %v1029_v39  ;;  %v2892_v56 = vld [vmem:[%s4842_s3 + $0x50] sm:$0xff]  ;;  %v2894_v16 = vld [vmem:[%s4842_s3 + $0x1a8] sm:$0xff]  ;;  %v2898_v28 = vld [vmem:[%s4842_s3 + $0x40] sm:$0xff] }
 0x253   : > { %1378 = vmatpush.bf16.msrb.mxu0 %v1232_v18  ;;  %1392 = vmatpush.bf16.msrb.mxu1 %v1233_v44  ;;  %v2893_v22 = vld [vmem:[%s4842_s3 + $0xd0] sm:$0xff]  ;;  %v2896_v18 = vld [vmem:[%s4842_s3 + $0xc8] sm:$0xff]  ;;  %v2897_v44 = vld [vmem:[%s4842_s3 + $0x1a0] sm:$0xff] }
 0x254   : > { %1510 = vmatpush.msra.mxu2 %v3274_v36  ;;  %1533 = vmatpush.msra.mxu3 %v2875_v7  ;;  %v2877_v36 = vld [vmem:[%s4842_s3 + $0x78] sm:$0xff]  ;;  %v2899_v39 = vld [vmem:[%s4842_s3 + $0xc0] sm:$0xff] }
 0x255   : > { %v2900_v2 = vld [vmem:[%s4842_s3 + $0x198] sm:$0xff] }
 0x256   : > { %1511 = vmatpush.msra.mxu2 %v3292_v40  ;;  %1534 = vmatpush.msra.mxu3 %v2876_v20  ;;  %v2879_v40 = vld [vmem:[%s4842_s3 + $0x1d0] sm:$0xff]  ;;  %v2901_v7 = vld [vmem:[%s4842_s3 + $0x38] sm:$0xff] }
 0x257   : > { %1379 = vmatpush.bf16.msrb.mxu0 %v1228_v37  ;;  %1393 = vmatpush.bf16.msrb.mxu1 %v1229_v32  ;;  %v2902_v37 = vld [vmem:[%s4842_s3 + $0xb8] sm:$0xff]  ;;  %v2903_v32 = vld [vmem:[%s4842_s3 + $0x30] sm:$0xff] }
 0x258   : > { %1512 = vmatpush.msra.mxu2 %v3307_v45  ;;  %1535 = vmatpush.msra.mxu3 %v2879_v40  ;;  %v2881_v45 = vld [vmem:[%s4842_s3 + $0xf0] sm:$0xff]  ;;  %v2909_v40 = vld [vmem:[%s4842_s3 + $0x18] sm:$0xff] }
 0x259   : > { %v2904_v20 = vld [vmem:[%s4842_s3 + $0xb0] sm:$0xff] }
 0x25a   : > { %2694 = vmatmul.msk.bf16.vlgmr.msrb.gmra.mxu0 %vm1355_vm14, %v3795_v61  ;;  %2695 = vmatmul.msk.bf16.vlgmr.msrb.gmra.mxu1 %vm1355_vm14, %v3795_v61  ;;  %v2883_v61 = vld [vmem:[%s4842_s3 + $0x68] sm:$0xff] }
 0x25b   : > { %1443 = vmatpush.msra.mxu0 %v2877_v36  ;;  %1472 = vmatpush.msra.mxu1 %v2878_v42  ;;  %v2905_v36 = vld [vmem:[%s4842_s3 + $0x28] sm:$0xff]  ;;  %v2907_v42 = vld [vmem:[%s4842_s3 + $0x20] sm:$0xff] }
 0x25c   : > { %1513 = vmatpush.msra.mxu2 %v3322_v52  ;;  %1536 = vmatpush.msra.mxu3 %v2882_v51  ;;  %v2885_v52 = vld [vmem:[%s4842_s3 + $0x1c0] sm:$0xff]  ;;  %v1321_v51 = vpop.f32.mrf.mxu2 }
 0x25d   : > { %1444 = vmatpush.msra.mxu0 %v2880_v17  ;;  %1473 = vmatpush.msra.mxu1 %v2881_v45  ;;  %v2910_v17 = vld [vmem:[%s4842_s3 + $0x98] sm:$0xff]  ;;  %v2912_v45 = vld [vmem:[%s4842_s3 + $0x90] sm:$0xff] }
 0x25e   : > { %1514 = vmatpush.msra.mxu2 %v3337_v58  ;;  %1537 = vmatpush.msra.mxu3 %v2885_v52  ;;  %v2888_v58 = vld [vmem:[%s4842_s3 + $0x1b8] sm:$0xff]  ;;  %v1275_v52 = vpop.f32.mrf.mxu0 }
 0x25f   : > { %1445 = vmatpush.msra.mxu0 %v2883_v61  ;;  %1474 = vmatpush.msra.mxu1 %v2884_v49  ;;  %v1344_v49 = vpop.f32.mrf.mxu3 }
 0x260   : > { %1515 = vmatpush.msra.mxu2 %v3354_v0  ;;  %1538 = vmatpush.msra.mxu3 %v2888_v58  ;;  %v2891_v0 = vld [vmem:[%s4842_s3 + $0x1b0] sm:$0xff] }
 0x261   : > { %1446 = vmatpush.msra.mxu0 %v2886_v53  ;;  %1475 = vmatpush.msra.mxu1 %v2887_v48  ;;  %v1298_v53 = vpop.f32.mrf.mxu1 }
 0x262   : > { %1516 = vmatpush.msra.mxu2 %v3376_v6  ;;  %1539 = vmatpush.msra.mxu3 %v2891_v0  ;;  %v2895_v6 = vld [vmem:[%s4842_s3 + $0x48] sm:$0xff] }
 0x263   : > { %1447 = vmatpush.msra.mxu0 %v2889_v60  ;;  %1476 = vmatpush.msra.mxu1 %v2890_v19 }
 0x264   : > { %1540 = vmatpush.msra.mxu3 %v2894_v16  ;;  %v1324_v61 = vpop.f32.mrf.mxu2 }
 0x265   : > { %1448 = vmatpush.msra.mxu0 %v2892_v56  ;;  %1477 = vmatpush.msra.mxu1 %v2893_v22 }
 0x266   : > { %1541 = vmatpush.msra.mxu3 %v2897_v44  ;;  %v1278_v19 = vpop.f32.mrf.mxu0 }
 0x267   : > { %1449 = vmatpush.msra.mxu0 %v2895_v6  ;;  %1478 = vmatpush.msra.mxu1 %v2896_v18  ;;  %v1347_v60 = vpop.f32.mrf.mxu3 }
 0x268   : > { %1542 = vmatpush.msra.mxu3 %v2900_v2 }
 0x269   : > { %1450 = vmatpush.msra.mxu0 %v2898_v28  ;;  %1479 = vmatpush.msra.mxu1 %v2899_v39 }
 0x26a   : > { %1543 = vmatpush.msra.mxu3 %v3342_v59  ;;  %v2906_v59 = vld [vmem:[%s4842_s3 + $0xa8] sm:$0xff] }
 0x26b   : > { %1451 = vmatpush.msra.mxu0 %v2901_v7  ;;  %1480 = vmatpush.msra.mxu1 %v2902_v37 }
 0x26c   : > { %1544 = vmatpush.msra.mxu3 %v3359_v1  ;;  %v2908_v1 = vld [vmem:[%s4842_s3 + $0xa0] sm:$0xff] }
 0x26d   : > { %1452 = vmatpush.msra.mxu0 %v2903_v32  ;;  %1481 = vmatpush.msra.mxu1 %v2904_v20 }
 0x26e   : > { %1545 = vmatpush.msra.mxu3 %v3383_v8  ;;  %v2911_v8 = vld [vmem:[%s4842_s3 + $0x10] sm:$0xff] }
 0x26f   : > { %1453 = vmatpush.msra.mxu0 %v2905_v36  ;;  %1482 = vmatpush.msra.mxu1 %v2906_v59 }
 0x271   : > { %1454 = vmatpush.msra.mxu0 %v2907_v42  ;;  %1483 = vmatpush.msra.mxu1 %v2908_v1 }
 0x273   : > { %1455 = vmatpush.msra.mxu0 %v2909_v40  ;;  %1484 = vmatpush.msra.mxu1 %v2910_v17 }
 0x275   : > { %1456 = vmatpush.msra.mxu0 %v2911_v8  ;;  %1485 = vmatpush.msra.mxu1 %v2912_v45 }
 0x277   : > { %1457 = vmatpush.msra.mxu0 %v3366_v4  ;;  %1486 = vmatpush.msra.mxu1 %v3371_v5  ;;  %v1301_v4 = vpop.f32.mrf.mxu1 }
 0x279   : > { %1458 = vmatpush.msra.mxu0 %v3394_v10  ;;  %1487 = vmatpush.msra.mxu1 %v3399_v11 }
 0x2c4   : > { %v1409_v48 = vpop.f32.mrf.mxu2 }
 0x2c5   : > { %v4028_v58 = vadd.f32 %v1409_v48, %v1321_v51 }
 0x2c7   : > { %1517 = vmatmul.f32.vlgmr.msra.gmra.mxu2 %v4028_v58  ;;  %v1437_v11 = vmul.f32 %v4028_v58, %v4028_v58 }
 0x2cc   : > { %v1411_v0 = vpop.f32.mrf.mxu2 }
 0x2cd   : > { %v4031_v56 = vadd.f32 %v1411_v0, %v1324_v61 }
 0x2cf   : > { %1520 = vmatmul.f32.gmra.mxu2 %v4031_v56  ;;  %v1441_v39 = vmul.f32 %v4031_v56, %v4031_v56 }
 0x2d0   : > { %v1423_v5 = vpop.f32.mrf.mxu3 }
 0x2d1   : > { %v4034_v10 = vadd.f32 %v1423_v5, %v1344_v49 }
 0x2d3   : > { %1546 = vmatmul.f32.vlgmr.msra.gmra.mxu3 %v4034_v10  ;;  %v1438_v20 = vmul.f32 %v4034_v10, %v4034_v10 }
 0x2d7   : > { %v1381_v22 = vpop.f32.mrf.mxu0  ;;  %v1395_v16 = vpop.f32.mrf.mxu1  ;;  %1523 = vmatmul.f32.gmra.mxu2 %v1437_v11 }
 0x2d8   : > { %v4039_v6 = vadd.f32 %v1381_v22, %v1275_v52  ;;  %v4041_v18 = vadd.f32 %v1395_v16, %v1298_v53  ;;  %v1425_v44 = vpop.f32.mrf.mxu3 }
 0x2d9   : > { %v4043_v28 = vadd.f32 %v1425_v44, %v1347_v60 }
 0x2da   : > { %1459 = vmatmul.f32.vlgmr.msra.gmra.mxu0 %v4039_v6  ;;  %1488 = vmatmul.f32.vlgmr.msra.gmra.mxu1 %v4041_v18  ;;  %v1435_v36 = vmul.f32 %v4039_v6, %v4039_v6  ;;  %v1436_v59 = vmul.f32 %v4041_v18, %v4041_v18 }
 0x2db   : > { %1549 = vmatmul.f32.gmra.mxu3 %v4043_v28  ;;  %v1442_v42 = vmul.f32 %v4043_v28, %v4043_v28 }
 0x2df   : > { %v1383_v2 = vpop.f32.mrf.mxu0  ;;  %v1397_v7 = vpop.f32.mrf.mxu1  ;;  %1526 = vmatmul.f32.gmra.mxu2 %v1441_v39 }
 0x2e0   : > { %v4050_v37 = vadd.f32 %v1383_v2, %v1278_v19  ;;  %v4052_v32 = vadd.f32 %v1397_v7, %v1301_v4  ;;  %v1432_v2 = vld [vmem:[%s4851_s12] sm:$0xff] }
 0x2e2   : > { %1462 = vmatmul.f32.gmra.mxu0 %v4050_v37  ;;  %1491 = vmatmul.f32.gmra.mxu1 %v4052_v32  ;;  %v1439_v1 = vmul.f32 %v4050_v37, %v4050_v37  ;;  %v1440_v40 = vmul.f32 %v4052_v32, %v4052_v32 }
 0x2e3   : > { %1552 = vmatmul.f32.gmra.mxu3 %v1438_v20 }
 0x2ea   : > { %1465 = vmatmul.f32.gmra.mxu0 %v1435_v36  ;;  %1494 = vmatmul.f32.gmra.mxu1 %v1436_v59  ;;  %v2913_v36 = vld [vmem:[%s4843_s4] sm:$0xff] }
 0x2eb   : > { %1555 = vmatmul.f32.gmra.mxu3 %v1442_v42 }
 0x2f2   : > { %1468 = vmatmul.f32.gmra.mxu0 %v1439_v1  ;;  %1497 = vmatmul.f32.gmra.mxu1 %v1440_v40 }
 0x34a   : > { %v1518_v17 = vpop.f32.mrf.mxu2 }
 0x352   : > { %v1521_v61 = vpop.f32.mrf.mxu2 }
 0x356   : > { %v1547_v51 = vpop.f32.mrf.mxu3 }
 0x357   : > { %v1460_v8 = vpop.f32.mrf.mxu0  ;;  %v1489_v45 = vpop.f32.mrf.mxu1 }
 0x358   : > { %v1490_v49 = vadd.f32 %v1489_v45, %v1460_v8 }
 0x35a   : > { %v1519_v48 = vadd.f32 %v1518_v17, %v1490_v49  ;;  %v1524_v11 = vpop.f32.mrf.mxu2 }
 0x35c   : > { %v1548_v4 = vadd.f32 %v1547_v51, %v1519_v48 }
 0x35e   : > { %v1550_v19 = vpop.f32.mrf.mxu3  ;;  %v1559_v39 = vmul.f32 0.001953125, %v1548_v4  ;;  %v1434_v4 = vld [vmem:[%s4852_s13 + $0x8] sm:$0xff] }
 0x35f   : > { %v1463_v52 = vpop.f32.mrf.mxu0  ;;  %v1492_v53 = vpop.f32.mrf.mxu1 }
 0x360   : > { %v1493_v60 = vadd.f32 %v1492_v53, %v1463_v52  ;;  %v2914_v53 = vld [vmem:[%s4843_s4 + $0x8] sm:$0xff] }
 0x362   : > { %v1522_v0 = vadd.f32 %v1521_v61, %v1493_v60  ;;  %v1527_v17 = vpop.f32.mrf.mxu2  ;;  %v2915_v60 = vld [vmem:[%s4843_s4 + $0x10] sm:$0xff] }
 0x364   : > { %v1551_v5 = vadd.f32 %v1550_v19, %v1522_v0  ;;  %v1433_v19 = vld [vmem:[%s4852_s13] sm:$0xff] }
 0x366   : > { %v1560_v22 = vmul.f32 0.001953125, %v1551_v5  ;;  %v1553_v7 = vpop.f32.mrf.mxu3 }
 0x367   : > { %v1466_v16 = vpop.f32.mrf.mxu0  ;;  %v1495_v44 = vpop.f32.mrf.mxu1 }
 0x368   : > { %1581 = vmatpush.msrb.mxu0 %v1560_v22  ;;  %v1496_v20 = vadd.f32 %v1495_v44, %v1466_v16  ;;  %v1429_v22 = vld [vmem:[%s4849_s10 + $0x8] sm:$0xff] }
 0x369   : > { %1679 = vperm.xlu2 %2815, %v1429_v22  }
 0x36a   : > { %1582 = vmatpush.msrb.mxu0 %v1559_v39  ;;  %v1525_v1 = vadd.f32 %v1524_v11, %v1496_v20  ;;  %v1428_v11 = vld [vmem:[%s4849_s10] sm:$0xff]  ;;  %v1431_v39 = vld [vmem:[%s4850_s11 + $0x8] sm:$0xff] }
 0x36b   : > { %2698 = vmatmul.msk.f32.vlgmr.msrb.gmra.mxu0 %vm1563_vm15, %v1432_v2  ;;  %1674 = vperm.xlu1 %2814, %v1428_v11  }
 0x36c   : > { %1725 = vmatpush.msra.mxu0 %v2913_v36  ;;  %v1554_v51 = vadd.f32 %v1553_v7, %v1525_v1 }
 0x36e   : > { %v1556_v45 = vpop.f32.mrf.mxu3  ;;  %v1561_v52 = vmul.f32 0.001953125, %v1554_v51 }
 0x36f   : > { %v1469_v59 = vpop.f32.mrf.mxu0  ;;  %v1498_v42 = vpop.f32.mrf.mxu1 }
 0x370   : > { %v1499_v40 = vadd.f32 %v1498_v42, %v1469_v59 }
 0x372   : > { %v1528_v8 = vadd.f32 %v1527_v17, %v1499_v40  ;;  %v2916_v40 = vld [vmem:[%s4843_s4 + $0x18] sm:$0xff] }
 0x373   : > { %1693 = vperm.xlu1 %2814, %v1431_v39  }
 0x374   : > { %v1557_v61 = vadd.f32 %v1556_v45, %v1528_v8 }
 0x376   : > { %v1562_v49 = vmul.f32 0.001953125, %v1557_v61 }
 0x378   : > { %1601 = vmatpush.msrb.mxu1 %v1562_v49 }
 0x37a   : > { %1602 = vmatpush.msrb.mxu1 %v1561_v52 }
 0x37b   : > { %2699 = vmatmul.msk.f32.vlgmr.msrb.gmra.mxu1 %vm1563_vm15, %v1432_v2 }
 0x37c   : > { %1754 = vmatpush.msra.mxu1 %v2914_v53 }
 0x3c3   : > { %v1680_v51 = vpop.permute.xlu2 %1679 }
 0x3dd   : > { %v1675_v17 = vpop.permute.xlu1 %1674 }
 0x3e8   : > { %v1584_v48 = vpop.f32.mrf.mxu0 }
 0x3e9   : > { %1641 = vmatpush.msrb.mxu2 %v1584_v48  ;;  %v1607_v0 = vmul.f32 %v1584_v48, %v1584_v48  ;;  %v1689_v48 = vpop.permute.xlu0 %1688 }
 0x3ea   : > { %2700 = vmatmul.msk.f32.vlgmr.msrb.gmra.mxu2 %vm4888_vm3, %v1433_v19 }
 0x3eb   : > { %1783 = vmatpush.msra.mxu2 %v2915_v60 }
 0x3f2   : > { %2701 = vmatmul.msk.f32.gmra.mxu2 %vm4888_vm3, %v1434_v4 }
 0x3f8   : > { %v1604_v5 = vpop.f32.mrf.mxu1 }
 0x3f9   : > { %v1608_v16 = vsub.f32 %v1604_v5, %v1607_v0 }
 0x3fb   : > { %v1609_v44 = vadd.f32 1e-05, %v1608_v16 }
 0x3fd   : > { %2834 = vrsqrt.f32 %v1609_v44  ;;  %vm1616_vm1 = vweird.f32 %v1609_v44 }
 0x403   : > { %v2835_v2 = vpop.eup %2834 }
 0x404   : > { %v1611_v7 = vmul.f32 %v2835_v2, %v1609_v44  ;;  %vm1617_vm0 = vweird.f32 %v2835_v2 }
 0x405   : > { %vm1618_vm2 = vmor %vm1616_vm1, %vm1617_vm0 }
 0x406   : > { %v1612_v20 = vmul.f32 %v2835_v2, %v1611_v7 }
 0x408   : > { %v1613_v36 = vmul.f32 0.5, %v1612_v20 }
 0x40a   : > { %v1614_v59 = vsub.f32 1.5, %v1613_v36 }
 0x40c   : > { %v1615_v42 = vmul.f32 %v2835_v2, %v1614_v59 }
 0x40e   : > { %v1619_v1 = vsel %vm1618_vm2, %v2835_v2, %v1615_v42 }
 0x40f   : > { %1664 = vmatpush.msrb.mxu3 %v1619_v1 }
 0x410   : > { %2702 = vmatmul.msk.f32.vlgmr.msrb.gmra.mxu3 %vm4888_vm3, %v1433_v19 }
 0x411   : > { %1812 = vmatpush.msra.mxu3 %v2916_v40 }
 0x418   : > { %2703 = vmatmul.msk.f32.gmra.mxu3 %vm4888_vm3, %v1434_v4  ;;  %v1694_v4 = vpop.permute.xlu1 %1693 }
 0x46d   : > { %v1643_v61 = vpop.f32.mrf.mxu2 }
 0x475   : > { %v1646_v19 = vpop.f32.mrf.mxu2 }
 0x493   : > { %v1666_v8 = vpop.f32.mrf.mxu3 }
 0x494   : > { %v1682_v45 = vmul.f32 %v1675_v17, %v1666_v8 }
 0x496   : > { %2704 = vmatmul.msk.f32.vlgmr.msra.gmra.mxu0 %vm4888_vm3, %v1682_v45  ;;  %2708 = vmatmul.msk.f32.vlgmr.msra.gmra.mxu1 %vm4888_vm3, %v1682_v45  ;;  %v1684_v53 = vmul.f32 %v1682_v45, %v1643_v61 }
 0x497   : > { %2712 = vmatmul.msk.f32.vlgmr.msra.gmra.mxu2 %vm4888_vm3, %v1682_v45  ;;  %2716 = vmatmul.msk.f32.vlgmr.msra.gmra.mxu3 %vm4888_vm3, %v1682_v45 }
 0x498   : > { %v1696_v60 = vsub.f32 %v1689_v48, %v1684_v53 }
 0x49b   : > { %v1669_v49 = vpop.f32.mrf.mxu3 }
 0x49c   : > { %v1683_v52 = vmul.f32 %v1680_v51, %v1669_v49 }
 0x49e   : > { %2705 = vmatmul.msk.f32.gmra.mxu0 %vm4888_vm3, %v1683_v52  ;;  %2709 = vmatmul.msk.f32.gmra.mxu1 %vm4888_vm3, %v1683_v52  ;;  %v1685_v0 = vmul.f32 %v1683_v52, %v1646_v19 }
 0x49f   : > { %2713 = vmatmul.msk.f32.gmra.mxu2 %vm4888_vm3, %v1683_v52  ;;  %2717 = vmatmul.msk.f32.gmra.mxu3 %vm4888_vm3, %v1683_v52 }
 0x4a0   : > { %v1697_v5 = vsub.f32 %v1694_v4, %v1685_v0 }
 0x4a6   : > { %2706 = vmatmul.msk.f32.gmra.mxu0 %vm4888_vm3, %v1696_v60  ;;  %2710 = vmatmul.msk.f32.gmra.mxu1 %vm4888_vm3, %v1696_v60 }
 0x4a7   : > { %2714 = vmatmul.msk.f32.gmra.mxu2 %vm4888_vm3, %v1696_v60  ;;  %2718 = vmatmul.msk.f32.gmra.mxu3 %vm4888_vm3, %v1696_v60 }
 0x4ae   : > { %2707 = vmatmul.msk.f32.gmra.mxu0 %vm4888_vm3, %v1697_v5  ;;  %2711 = vmatmul.msk.f32.gmra.mxu1 %vm4888_vm3, %v1697_v5 }
 0x4af   : > { %2715 = vmatmul.msk.f32.gmra.mxu2 %vm4888_vm3, %v1697_v5  ;;  %2719 = vmatmul.msk.f32.gmra.mxu3 %vm4888_vm3, %v1697_v5 }
 0x513   : > { %v1727_v11 = vpop.f32.mrf.mxu0  ;;  %v1756_v22 = vpop.f32.mrf.mxu1 }
 0x514   : > { %v1826_v2 = vmul.f32 %v1727_v11, %v4039_v6  ;;  %v1827_v7 = vmul.f32 %v1756_v22, %v4041_v18 }
 0x51a   : > { %v1785_v39 = vpop.f32.mrf.mxu2  ;;  %v1814_v17 = vpop.f32.mrf.mxu3 }
 0x51b   : > { %v4120_v16 = vpop.f32.mrf.mxu0  ;;  %v4122_v44 = vpop.f32.mrf.mxu1  ;;  %v1828_v18 = vmul.f32 %v1785_v39, %v4028_v58  ;;  %v1829_v11 = vmul.f32 %v1814_v17, %v4034_v10 }
 0x522   : > { %v4126_v8 = vpop.f32.mrf.mxu2  ;;  %v4128_v52 = vpop.f32.mrf.mxu3 }
 0x523   : > { %v1733_v20 = vpop.f32.mrf.mxu0  ;;  %v1762_v36 = vpop.f32.mrf.mxu1 }
 0x524   : > { %v1834_v59 = vadd.f32 %v1826_v2, %v1733_v20  ;;  %v1835_v42 = vadd.f32 %v1827_v7, %v1762_v36 }
 0x526   : > { %v2720_v1 = vmul.f32 -1.442695, %v1834_v59  ;;  %v2721_v40 = vmul.f32 -1.442695, %v1835_v42 }
 0x528   : > { %2836 = vpow2.f32 %v2720_v1 }
 0x529   : > { %2838 = vpow2.f32 %v2721_v40 }
 0x52a   : > { %v1791_v6 = vpop.f32.mrf.mxu2  ;;  %v1820_v7 = vpop.f32.mrf.mxu3 }
 0x52b   : > { %v4131_v53 = vadd.f32 %v1828_v18, %v1791_v6 }
 0x52d   : > { %v2722_v5 = vmul.f32 -1.442695, %v4131_v53 }
 0x52e   : > { %v2837_v45 = vpop.eup %2836 }
 0x52f   : > { %v2839_v51 = vpop.eup %2838  ;;  %v1866_v61 = vadd.f32 1.0, %v2837_v45  ;;  %v4135_v45 = vadd.f32 %v1829_v11, %v1820_v7  ;;  %v1736_v7 = vpop.f32.mrf.mxu0 }
 0x530   : > { %v1867_v49 = vadd.f32 1.0, %v2839_v51 }
 0x531   : > { %2840 = vrcp.f32 %v1866_v61  ;;  %v1885_v22 = vand.u32 2147483648, %v1866_v61  ;;  %v1883_v36 = vand.u32 2147483647, %v1866_v61  ;;  %vm1879_vm14 = vweird.f32 %v1866_v61 }
 0x532   : > { %2842 = vrcp.f32 %v1867_v49  ;;  %v1900_v1 = vand.u32 2147483648, %v1867_v49  ;;  %v1898_v58 = vand.u32 2147483647, %v1867_v49  ;;  %vm1894_vm1 = vweird.f32 %v1867_v49 }
 0x533   : > { %2844 = vpow2.f32 %v2722_v5  ;;  %v1886_v51 = vor.u32 1.1754944e-38, %v1885_v22  ;;  %vm1884_vm2 = vcmp.eq.f32.partialorder %v1883_v36, 8.507059e+37  ;;  %v1765_v36 = vpop.f32.mrf.mxu1 }
 0x534   : > { %v1901_v17 = vor.u32 1.1754944e-38, %v1900_v1  ;;  %vm1899_vm11 = vcmp.eq.f32.partialorder %v1898_v58, 8.507059e+37  ;;  %v1831_v1 = vmul.f32 %v4122_v44, %v4052_v32 }
 0x537   : > { %v2841_v48 = vpop.eup %2840 }
 0x538   : > { %v2843_v60 = vpop.eup %2842  ;;  %v1875_v19 = vmul.f32 %v2841_v48, %v1866_v61  ;;  %vm1880_vm4 = vweird.f32 %v2841_v48 }
 0x539   : > { %v1890_v0 = vmul.f32 %v2843_v60, %v1867_v49  ;;  %vm1895_vm6 = vweird.f32 %v2843_v60  ;;  %vm1881_vm0 = vmor %vm1879_vm14, %vm1880_vm4  ;;  %v2845_v5 = vpop.eup %2844 }
 0x53a   : > { %v1876_v4 = vsub.f32 1.0, %v1875_v19  ;;  %vm1896_vm3 = vmor %vm1894_vm1, %vm1895_vm6  ;;  %v1868_v49 = vadd.f32 1.0, %v2845_v5 }
 0x53b   : > { %v1891_v2 = vsub.f32 1.0, %v1890_v0 }
 0x53c   : > { %v1877_v20 = vmul.f32 %v2841_v48, %v1876_v4  ;;  %v1913_v44 = vand.u32 2147483647, %v1868_v49 }
 0x53d   : > { %v1892_v40 = vmul.f32 %v2843_v60, %v1891_v2  ;;  %v2723_v2 = vmul.f32 -1.442695, %v4135_v45 }
 0x53e   : > { %v1878_v39 = vadd.f32 %v2841_v48, %v1877_v20  ;;  %v1830_v20 = vmul.f32 %v4120_v16, %v4050_v37  ;;  %vm1914_vm6 = vcmp.eq.f32.partialorder %v1913_v44, 8.507059e+37 }
 0x53f   : > { %v1893_v6 = vadd.f32 %v2843_v60, %v1892_v40  ;;  %2846 = vpow2.f32 %v2723_v2 }
 0x540   : > { %v1882_v10 = vsel %vm1881_vm0, %v2841_v48, %v1878_v39  ;;  %2848 = vrcp.f32 %v1868_v49  ;;  %v4168_v39 = vadd.f32 %v1830_v20, %v1736_v7 }
 0x541   : > { %v1887_v18 = vsel %vm1884_vm2, %v1886_v51, %v1882_v10  ;;  %v1897_v19 = vsel %vm1896_vm3, %v2843_v60, %v1893_v6  ;;  %v4172_v51 = vadd.f32 %v1831_v1, %v1765_v36  ;;  %v1915_v6 = vand.u32 2147483648, %v1868_v49 }
 0x542   : > { %v4137_v0 = vmul.f32 %v1887_v18, %v1834_v59  ;;  %v1902_v4 = vsel %vm1899_vm11, %v1901_v17, %v1897_v19  ;;  %v2724_v32 = vmul.f32 -1.442695, %v4168_v39  ;;  %vm1909_vm11 = vweird.f32 %v1868_v49 }
 0x543   : > { %v4140_v61 = vmul.f32 %v1902_v4, %v1835_v42  ;;  %v2725_v10 = vmul.f32 -1.442695, %v4172_v51  ;;  %v1916_v19 = vor.u32 1.1754944e-38, %v1915_v6  ;;  %v1832_v6 = vmul.f32 %v4126_v8, %v4031_v56 }
 0x544   : > { %2162 = vrot.lane.b32.xlu0 %v4137_v0, %s2983_s21  ;;  %2194 = vrot.lane.b32.xlu2 %v4137_v0, %s2982_s23 }
 0x545   : > { %2198 = vrot.lane.b32.xlu1 %v4140_v61, %s2982_s23  ;;  %v2847_v59 = vpop.eup %2846 }
 0x546   : > { %v1869_v42 = vadd.f32 1.0, %v2847_v59  ;;  %v2849_v48 = vpop.eup %2848 }
 0x547   : > { %v1905_v60 = vmul.f32 %v2849_v48, %v1868_v49  ;;  %vm1910_vm3 = vweird.f32 %v2849_v48 }
 0x548   : > { %2850 = vrcp.f32 %v1869_v42  ;;  %vm1911_vm4 = vmor %vm1909_vm11, %vm1910_vm3  ;;  %v1930_v5 = vand.u32 2147483648, %v1869_v42  ;;  %vm1924_vm0 = vweird.f32 %v1869_v42  ;;  %v1928_v59 = vand.u32 2147483647, %v1869_v42 }
 0x549   : > { %v1906_v11 = vsub.f32 1.0, %v1905_v60  ;;  %2852 = vpow2.f32 %v2724_v32 }
 0x54a   : > { %2854 = vpow2.f32 %v2725_v10  ;;  %v1931_v7 = vor.u32 1.1754944e-38, %v1930_v5  ;;  %vm1929_vm2 = vcmp.eq.f32.partialorder %v1928_v59, 8.507059e+37 }
 0x54b   : > { %v1907_v40 = vmul.f32 %v2849_v48, %v1906_v11 }
 0x54c   : > { %2134 = vrot.lane.b32.xlu0 %v4140_v61, %s4950_s27  ;;  %2166 = vrot.lane.b32.xlu2 %v4140_v61, %s2983_s21 }
 0x54d   : > { %2130 = vrot.lane.b32.xlu1 %v4137_v0, %s4950_s27  ;;  %v1908_v37 = vadd.f32 %v2849_v48, %v1907_v40 }
 0x54e   : > { %v2851_v22 = vpop.eup %2850 }
 0x54f   : > { %v1920_v58 = vmul.f32 %v2851_v22, %v1869_v42  ;;  %v1912_v17 = vsel %vm1911_vm4, %v2849_v48, %v1908_v37  ;;  %vm1925_vm14 = vweird.f32 %v2851_v22  ;;  %v2853_v48 = vpop.eup %2852 }
 0x550   : > { %v1917_v4 = vsel %vm1914_vm6, %v1916_v19, %v1912_v17  ;;  %vm1926_vm1 = vmor %vm1924_vm0, %vm1925_vm14  ;;  %v2855_v60 = vpop.eup %2854  ;;  %v1870_v20 = vadd.f32 1.0, %v2853_v48  ;;  %v1823_v48 = vpop.f32.mrf.mxu3 }
 0x551   : > { %v1921_v16 = vsub.f32 1.0, %v1920_v58  ;;  %v4183_v49 = vmul.f32 %v1917_v4, %v4131_v53  ;;  %v1871_v36 = vadd.f32 1.0, %v2855_v60  ;;  %v1833_v60 = vmul.f32 %v4128_v52, %v4043_v28 }
 0x552   : > { %2856 = vrcp.f32 %v1870_v20  ;;  %vm1939_vm4 = vweird.f32 %v1870_v20  ;;  %v1945_v19 = vand.u32 2147483648, %v1870_v20  ;;  %v1943_v4 = vand.u32 2147483647, %v1870_v20 }
 0x553   : > { %v1922_v18 = vmul.f32 %v2851_v22, %v1921_v16  ;;  %4956 = vst [vmem:[#allocation29_spill] sm:$0xff] %v4183_v49  ;;  %2858 = vrcp.f32 %v1871_v36  ;;  %v1794_v16 = vpop.f32.mrf.mxu2  ;;  %v1960_v56 = vand.u32 2147483648, %v1871_v36  ;;  %vm1954_vm14 = vweird.f32 %v1871_v36 }
 0x554   : > { %2226 = vrot.lane.b32.xlu0 %v4137_v0, %s4951_s1  ;;  %2230 = vrot.lane.b32.xlu2 %v4140_v61, %s4951_s1  ;;  %v4214_v10 = vadd.f32 %v1832_v6, %v1794_v16  ;;  %v4237_v28 = vadd.f32 %v1833_v60, %v1823_v48 }
 0x555   : > { %2098 = vrot.lane.b32.xlu1 %v4137_v0, %s4952_s19  ;;  %v1923_v2 = vadd.f32 %v2851_v22, %v1922_v18 }
 0x556   : > { %v2726_v5 = vmul.f32 -1.442695, %v4214_v10 }
 0x557   : > { %v1927_v11 = vsel %vm1926_vm1, %v2851_v22, %v1923_v2  ;;  %v1958_v2 = vand.u32 2147483647, %v1871_v36  ;;  %vm1944_vm1 = vcmp.eq.f32.partialorder %v1943_v4, 8.507059e+37 }
 0x558   : > { %v1932_v53 = vsel %vm1929_vm2, %v1931_v7, %v1927_v11  ;;  %v2857_v22 = vpop.eup %2856  ;;  %2860 = vpow2.f32 %v2726_v5 }
 0x559   : > { %v4192_v42 = vmul.f32 %v1932_v53, %v4135_v45  ;;  %v2859_v1 = vpop.eup %2858  ;;  %v1935_v40 = vmul.f32 %v2857_v22, %v1870_v20  ;;  %vm1940_vm3 = vweird.f32 %v2857_v22  ;;  %v1946_v20 = vor.u32 1.1754944e-38, %v1945_v19 }
 0x55a   : > { %v1950_v58 = vmul.f32 %v2859_v1, %v1871_v36  ;;  %vm1955_vm11 = vweird.f32 %v2859_v1  ;;  %vm4216_vm6 = vmor %vm1939_vm4, %vm1940_vm3  ;;  %v1961_v53 = vor.u32 1.1754944e-38, %v1960_v56  ;;  %vm1959_vm2 = vcmp.eq.f32.partialorder %v1958_v2, 8.507059e+37 }
 0x55b   : > { %4957 = vst [vmem:[#allocation30_spill] sm:$0xff] %v4192_v42  ;;  %v1936_v45 = vsub.f32 1.0, %v1935_v40  ;;  %vm4221_vm0 = vmor %vm1954_vm14, %vm1955_vm11  ;;  %v2727_v40 = vmul.f32 -1.442695, %v4237_v28 }
 0x55c   : > { %2066 = vrot.lane.b32.xlu0 %v4137_v0, %s4953_s22  ;;  %2034 = vrot.lane.b32.xlu2 %v4137_v0, %s4954_s24  ;;  %v1951_v37 = vsub.f32 1.0, %v1950_v58 }
 0x55d   : > { %2002 = vrot.lane.b32.xlu1 %v4137_v0, %s4955_s30  ;;  %v1937_v32 = vmul.f32 %v2857_v22, %v1936_v45  ;;  %2862 = vpow2.f32 %v2727_v40 }
 0x55e   : > { %v1952_v44 = vmul.f32 %v2859_v1, %v1951_v37  ;;  %v2861_v58 = vpop.eup %2860 }
 0x55f   : > { %v1938_v17 = vadd.f32 %v2857_v22, %v1937_v32  ;;  %v1872_v45 = vadd.f32 1.0, %v2861_v58 }
 0x560   : > { %v1953_v18 = vadd.f32 %v2859_v1, %v1952_v44 }
 0x561   : > { %v1942_v11 = vsel %vm4216_vm6, %v2857_v22, %v1938_v17  ;;  %2864 = vrcp.f32 %v1872_v45  ;;  %v1975_v2 = vand.u32 2147483648, %v1872_v45  ;;  %vm1969_vm11 = vweird.f32 %v1872_v45 }
 0x562   : > { %v1957_v7 = vsel %vm4221_vm0, %v2859_v1, %v1953_v18  ;;  %v1947_v52 = vsel %vm1944_vm1, %v1946_v20, %v1942_v11  ;;  %v1973_v5 = vand.u32 2147483647, %v1872_v45 }
 0x563   : > { %v1962_v36 = vsel %vm1959_vm2, %v1961_v53, %v1957_v7  ;;  %v4240_v22 = vmul.f32 %v1947_v52, %v4168_v39  ;;  %v2863_v39 = vpop.eup %2862  ;;  %v1976_v60 = vor.u32 1.1754944e-38, %v1975_v2 }
 0x564   : > { %2102 = vrot.lane.b32.xlu0 %v4140_v61, %s4952_s19  ;;  %2070 = vrot.lane.b32.xlu2 %v4140_v61, %s4953_s22  ;;  %v4243_v1 = vmul.f32 %v1962_v36, %v4172_v51  ;;  %v1873_v37 = vadd.f32 1.0, %v2863_v39  ;;  %vm1974_vm6 = vcmp.eq.f32.partialorder %v1973_v5, 8.507059e+37 }
 0x565   : > { %2006 = vrot.lane.b32.xlu1 %v4140_v61, %s4955_s30 }
 0x566   : > { %2866 = vrcp.f32 %v1873_v37  ;;  %v1990_v40 = vand.u32 2147483648, %v1873_v37  ;;  %vm1984_vm0 = vweird.f32 %v1873_v37 }
 0x567   : > { %v2865_v16 = vpop.eup %2864 }
 0x568   : > { %v1965_v6 = vmul.f32 %v2865_v16, %v1872_v45  ;;  %vm1970_vm3 = vweird.f32 %v2865_v16  ;;  %v1988_v45 = vand.u32 2147483647, %v1873_v37 }
 0x569   : > { %vm1971_vm4 = vmor %vm1969_vm11, %vm1970_vm3 }
 0x56a   : > { %v1966_v44 = vsub.f32 1.0, %v1965_v6  ;;  %vm1989_vm2 = vcmp.eq.f32.partialorder %v1988_v45, 8.507059e+37 }
 0x56c   : > { %2038 = vrot.lane.b32.xlu0 %v4140_v61, %s4954_s24  ;;  %2202 = vrot.lane.b32.xlu2 %v4183_v49, %s2982_s23  ;;  %v2867_v17 = vpop.eup %2866  ;;  %v1967_v18 = vmul.f32 %v2865_v16, %v1966_v44 }
 0x56d   : > { %2170 = vrot.lane.b32.xlu1 %v4183_v49, %s2983_s21  ;;  %v1980_v19 = vmul.f32 %v2867_v17, %v1873_v37  ;;  %vm1985_vm14 = vweird.f32 %v2867_v17 }
 0x56e   : > { %v1968_v8 = vadd.f32 %v2865_v16, %v1967_v18  ;;  %vm1986_vm1 = vmor %vm1984_vm0, %vm1985_vm14 }
 0x56f   : > { %v1981_v4 = vsub.f32 1.0, %v1980_v19 }
 0x570   : > { %v1972_v59 = vsel %vm1971_vm4, %v2865_v16, %v1968_v8  ;;  %v1991_v16 = vor.u32 1.1754944e-38, %v1990_v40 }
 0x571   : > { %v1982_v48 = vmul.f32 %v2867_v17, %v1981_v4  ;;  %v1977_v20 = vsel %vm1974_vm6, %v1976_v60, %v1972_v59 }
 0x572   : > { %v4295_v58 = vmul.f32 %v1977_v20, %v4214_v10 }
 0x573   : > { %v1983_v36 = vadd.f32 %v2867_v17, %v1982_v48 }
 0x574   : > { %2110 = vrot.lane.b32.xlu0 %v4192_v42, %s4952_s19  ;;  %2138 = vrot.lane.b32.xlu2 %v4183_v49, %s4950_s27  ;;  %4962 = vst [vmem:[#allocation31_spill] sm:$0xff] %v4295_v58 }
 0x575   : > { %2206 = vrot.lane.b32.xlu1 %v4192_v42, %s2982_s23  ;;  %v1987_v39 = vsel %vm1986_vm1, %v2867_v17, %v1983_v36 }
 0x576   : > { %v1992_v10 = vsel %vm1989_vm2, %v1991_v16, %v1987_v39 }
 0x577   : > { %v4310_v17 = vmul.f32 %v1992_v10, %v4237_v28 }
 0x579   : > { %4963 = vst [vmem:[#allocation32_spill] sm:$0xff] %v4310_v17 }
 0x57c   : > { %2234 = vrot.lane.b32.xlu0 %v4183_v49, %s4951_s1  ;;  %2078 = vrot.lane.b32.xlu2 %v4192_v42, %s4953_s22 }
 0x57d   : > { %2174 = vrot.lane.b32.xlu1 %v4192_v42, %s2983_s21 }
 0x584   : > { %2014 = vrot.lane.b32.xlu0 %v4192_v42, %s4955_s30  ;;  %2142 = vrot.lane.b32.xlu2 %v4192_v42, %s4950_s27 }
 0x585   : > { %2046 = vrot.lane.b32.xlu1 %v4192_v42, %s4954_s24 }
 0x58c   : > { %2074 = vrot.lane.b32.xlu0 %v4183_v49, %s4953_s22  ;;  %2106 = vrot.lane.b32.xlu2 %v4183_v49, %s4952_s19 }
 0x58d   : > { %2238 = vrot.lane.b32.xlu1 %v4192_v42, %s4951_s1  ;;  %v2296_v42 = vld [vmem:[%s4854_s15] sm:$0xff] }
 0x594   : > { %2200 = vrot.lane.b32.xlu2 %v4243_v1, %s2982_s23  ;;  %2196 = vrot.lane.b32.xlu0 %v4240_v22, %s2982_s23 }
 0x595   : > { %2164 = vrot.lane.b32.xlu1 %v4240_v22, %s2983_s21 }
 0x59c   : > { %2132 = vrot.lane.b32.xlu2 %v4240_v22, %s4950_s27  ;;  %2168 = vrot.lane.b32.xlu0 %v4243_v1, %s2983_s21 }
 0x59d   : > { %2136 = vrot.lane.b32.xlu1 %v4243_v1, %s4950_s27 }
 0x59e   : > { %v4258_v51 = vpop.permute.xlu2 %2194 }
 0x5a4   : > { %2100 = vrot.lane.b32.xlu2 %v4240_v22, %s4952_s19  ;;  %2232 = vrot.lane.b32.xlu0 %v4243_v1, %s4951_s1 }
 0x5a5   : > { %2228 = vrot.lane.b32.xlu1 %v4240_v22, %s4951_s1 }
 0x5a6   : > { %v4266_v32 = vpop.permute.xlu2 %2166 }
 0x5ac   : > { %2004 = vrot.lane.b32.xlu2 %v4240_v22, %s4955_s30  ;;  %2036 = vrot.lane.b32.xlu0 %v4240_v22, %s4954_s24 }
 0x5ad   : > { %2068 = vrot.lane.b32.xlu1 %v4240_v22, %s4953_s22 }
 0x5ae   : > { %v4274_v56 = vpop.permute.xlu2 %2230 }
 0x5b4   : > { %2008 = vrot.lane.b32.xlu2 %v4243_v1, %s4955_s30  ;;  %2072 = vrot.lane.b32.xlu0 %v4243_v1, %s4953_s22 }
 0x5b5   : > { %2104 = vrot.lane.b32.xlu1 %v4243_v1, %s4952_s19 }
 0x5b6   : > { %v4282_v11 = vpop.permute.xlu0 %2162  ;;  %v4284_v7 = vpop.permute.xlu2 %2034 }
 0x5b7   : > { %v4286_v53 = vpop.permute.xlu1 %2198  ;;  %v4292_v52 = vsel %vm1152_vm8, %v4282_v11, %v4266_v32 }
 0x5b8   : > { %v2186_v26 = vmul.f32 %v4292_v52, %v3596_v34 }
 0x5bc   : > { %2172 = vrot.lane.b32.xlu2 %v4295_v58, %s2983_s21  ;;  %2204 = vrot.lane.b32.xlu0 %v4295_v58, %s2982_s23 }
 0x5bd   : > { %2040 = vrot.lane.b32.xlu1 %v4243_v1, %s4954_s24 }
 0x5be   : > { %v2135_v6 = vpop.permute.xlu0 %2134  ;;  %v4303_v44 = vpop.permute.xlu2 %2070 }
 0x5bf   : > { %v2131_v18 = vpop.permute.xlu1 %2130 }
 0x5c0   : > { %v4307_v37 = vsel %vm1124_vm9, %v2131_v18, %v2135_v6 }
 0x5c4   : > { %2208 = vrot.lane.b32.xlu2 %v4310_v17, %s2982_s23  ;;  %2140 = vrot.lane.b32.xlu0 %v4295_v58, %s4950_s27 }
 0x5c5   : > { %2112 = vrot.lane.b32.xlu1 %v4310_v17, %s4952_s19 }
 0x5c6   : > { %v4318_v19 = vpop.permute.xlu0 %2226  ;;  %v2203_v8 = vpop.permute.xlu2 %2202 }
 0x5c7   : > { %v2099_v4 = vpop.permute.xlu1 %2098  ;;  %v4324_v2 = vsel %vm1208_vm5, %v4318_v19, %v4274_v56  ;;  %v4329_v28 = vsel %vm1180_vm7, %v4286_v53, %v2203_v8 }
 0x5cc   : > { %2176 = vrot.lane.b32.xlu2 %v4310_v17, %s2983_s21  ;;  %2080 = vrot.lane.b32.xlu0 %v4310_v17, %s4953_s22 }
 0x5cd   : > { %2236 = vrot.lane.b32.xlu1 %v4295_v58, %s4951_s1 }
 0x5ce   : > { %v2067_v5 = vpop.permute.xlu0 %2066  ;;  %v2139_v59 = vpop.permute.xlu2 %2138 }
 0x5cf   : > { %v4337_v48 = vpop.permute.xlu1 %2002  ;;  %v4342_v60 = vsel %vm1068_vm12, %v2067_v5, %v4303_v44  ;;  %v4346_v20 = vsel %vm1124_vm9, %v2135_v6, %v2139_v59 }
 0x5d4   : > { %2048 = vrot.lane.b32.xlu2 %v4310_v17, %s4954_s24  ;;  %2144 = vrot.lane.b32.xlu0 %v4310_v17, %s4950_s27 }
 0x5d5   : > { %2016 = vrot.lane.b32.xlu1 %v4310_v17, %s4955_s30 }
 0x5d6   : > { %v2103_v36 = vpop.permute.xlu0 %2102  ;;  %v2079_v40 = vpop.permute.xlu2 %2078 }
 0x5d7   : > { %v4354_v45 = vpop.permute.xlu1 %2006  ;;  %v4358_v39 = vsel %vm1096_vm10, %v2099_v4, %v2103_v36  ;;  %v4362_v16 = vsel %vm1068_vm12, %v2079_v40, %v2067_v5 }
 0x5dc   : > { %2240 = vrot.lane.b32.xlu2 %v4310_v17, %s4951_s1  ;;  %2108 = vrot.lane.b32.xlu0 %v4295_v58, %s4952_s19  ;;  %s584_s19 = sand.u32 1, %s2971_s26  }
 0x5dd   : > { %2076 = vrot.lane.b32.xlu1 %v4295_v58, %s4953_s22  ;;  %s2656_s22 = sshll.u32 %s584_s19, 5 }
 0x5de   : > { %v4370_v6 = vpop.permute.xlu0 %2038  ;;  %v2143_v10 = vpop.permute.xlu2 %2142 }
 0x5df   : > { %v2171_v54 = vpop.permute.xlu1 %2170  ;;  %v4374_v33 = vsel %vm1124_vm9, %v2139_v59, %v2143_v10  ;;  %v4378_v5 = vsel %vm1124_vm9, %v2143_v10, %v2131_v18 }
 0x5e0   : > { %4964 = vst [vmem:[#allocation33_spill] sm:$0xff] %v4374_v33  ;;  %v4383_v21 = vsel %vm1152_vm8, %v4266_v32, %v2171_v54 }
 0x5e1   : > { %4965 = vst [vmem:[#allocation34_spill] sm:$0xff] %v4378_v5 }
 0x5e4   : > { %2042 = vrot.lane.b32.xlu2 %v4183_v49, %s4954_s24  ;;  %2044 = vrot.lane.b32.xlu0 %v4295_v58, %s4954_s24  ;;  %s4799_s24 = scalar_lea.vmem [#allocation2], %s2656_s22 }
 0x5e5   : > { %2010 = vrot.lane.b32.xlu1 %v4183_v49, %s4955_s30  ;;  %s2575_s7 = sshll.u32 %s4799_s24, 4  ;;  %s2576_s7 = int_to_ptr.vmem [resolvable:$true] %s2575_s7 }
 0x5e6   : > { %v2111_v59 = vpop.permute.xlu0 %2110  ;;  %v2107_v57 = vpop.permute.xlu2 %2106 }
 0x5e7   : > { %v4391_v38 = vpop.permute.xlu1 %2206  ;;  %v4395_v18 = vsel %vm1096_vm10, %v2111_v59, %v2099_v4  ;;  %v4399_v32 = vsel %vm1096_vm10, %v2107_v57, %v2111_v59  ;;  %v4403_v10 = vsel %vm1096_vm10, %v2103_v36, %v2107_v57  ;;  %v2297_v4 = vld [vmem:[%s4854_s15 + $0x8] sm:$0xff] }
 0x5e8   : > { %4966 = vst [vmem:[#allocation35_spill] sm:$0xff] %v4399_v32  ;;  %v4408_v17 = vsel %vm1180_vm7, %v2203_v8, %v4391_v38 }
 0x5e9   : > { %4967 = vst [vmem:[#allocation36_spill] sm:$0xff] %v4403_v10 }
 0x5ec   : > { %2012 = vrot.lane.b32.xlu2 %v4295_v58, %s4955_s30  ;;  %2300 = vperm.xlu0 %2813, %v2296_v42   ;;  %v2434_v42 = vld [vmem:[%s4856_s17] sm:$0xff]  ;;  %s2762_s30 = sshll.u32 %s3108_s29, 5  ;;  %s2562_s29 = scalar_lea.sflag [#allocation3], %s584_s19 }
 0x5ed   : > { %2305 = vperm.xlu1 %2814, %v2297_v4   ;;  %v2435_v4 = vld [vmem:[%s4856_s17 + $0x8] sm:$0xff]  ;;  %s2574_s20 = scalar_lea.hbm %s4857_s18, %s2762_s30  ;;  %s2937_s30 = scalar_lea.hbm %s4857_s18, 64 }
 0x5ee   : > { %v2235_v57 = vpop.permute.xlu0 %2234  ;;  %v4418_v36 = vpop.permute.xlu2 %2200  ;;  %s2577_s25 = sshll.u32 %s2574_s20, 4  ;;  %s2578_s25 = int_to_ptr.hbm [resolvable:$true] %s2577_s25 }
 0x5ef   : > { %v2175_v59 = vpop.permute.xlu1 %2174  ;;  %v4423_v8 = vsel %vm1208_vm5, %v4274_v56, %v2235_v57  ;;  %s2931_s2 = sshra.s32 %s2578_s25, 4  ;;  %s2932_s2 = int_to_ptr.hbm [resolvable:$true] %s2931_s2 }
 0x5f0   : > { %v4427_v32 = vsel %vm1152_vm8, %v2171_v54, %v2175_v59  ;;  %v4432_v14 = vsel %vm1152_vm8, %v2175_v59, %v4282_v11  ;;  %s2933_s27 = scalar_lea.hbm %s2932_s2, 32  ;;  %p2938_p1 = scmp.lt.s32.totalorder %s2932_s2, %s4857_s18 }
 0x5f1   : > { %4968 = vst [vmem:[#allocation37_spill] sm:$0xff] %v4427_v32  ;;  %p2934_p12 = scmp.ne.s32.totalorder %s2932_s2, %s2933_s27  ;;  %p2939_p2 = scmp.lt.s32.totalorder %s2937_s30, %s2933_s27 }
 0x5f3   : > { %p2935_p13 = pnand %p2934_p12, %p3125_p5  ;;  %p2940_p3 = por %p2939_p2, %p2938_p1 }
 0x5f4   : > { %2438 = vperm.xlu2 %2815, %v2434_v42   ;;  %2443 = vperm.xlu0 %2813, %v2435_v4  }
 0x5f5   : > { %p2936_p0 = pneg %p2935_p13 }
 0x5f6   : > { %v4440_v56 = vpop.permute.xlu0 %2014  ;;  %v4442_v27 = vpop.permute.xlu2 %2132 }
 0x5f7   : > { %v4444_v54 = vpop.permute.xlu1 %2046  ;;  %p2941_p4 = pnand %p2940_p3, %p2936_p0 }
 0x5fe   : > { %v2075_v10 = vpop.permute.xlu0 %2074  ;;  %v4446_v58 = vpop.permute.xlu2 %2100 }
 0x5ff   : > { %v2239_v11 = vpop.permute.xlu1 %2238  ;;  %v4450_v59 = vsel %vm1068_vm12, %v2075_v10, %v2079_v40  ;;  %v4455_v49 = vsel %vm1068_vm12, %v4303_v44, %v2075_v10  ;;  %v2214_v40 = vsel %vm1180_vm7, %v4258_v51, %v4286_v53 }
 0x600   : > { %4969 = vst [vmem:[#allocation38_spill] sm:$0xff] %v4450_v59  ;;  %v4459_v42 = vsel %vm1208_vm5, %v2235_v57, %v2239_v11  ;;  %v4464_v4 = vsel %vm1208_vm5, %v2239_v11, %v4318_v19  ;;  %v2218_v10 = vmul.f32 %v2214_v40, %v3593_v31 }
 0x601   : > { %4970 = vst [vmem:[#allocation39_spill] sm:$0xff] %v4455_v49 }
 0x606   : > { %v4470_v59 = vpop.permute.xlu2 %2004  ;;  %v2197_v43 = vpop.permute.xlu0 %2196 }
 0x607   : > { %v2165_v5 = vpop.permute.xlu1 %2164  ;;  %v2215_v44 = vsel %vm1180_vm7, %v2197_v43, %v4418_v36 }
 0x608   : > { %v2222_v57 = vmul.f32 %v2215_v44, %v3593_v31 }
 0x60a   : > { %v2286_v49 = vpack.c.bf16 %v2222_v57, %v2218_v10 }
 0x60c   : > { %2320 = vmatpush.bf16.msrb.mxu0 %v2286_v49  ;;  %v2154_v49 = vmul.f32 %v4307_v37, %v3698_v25  ;;  %v2759_v37 = vld [vmem:[%s4853_s14 + $0x4] sm:$0xf] }
 0x60e   : > { %v4477_v19 = vpop.permute.xlu2 %2008  ;;  %v2169_v11 = vpop.permute.xlu0 %2168 }
 0x60f   : > { %v2137_v33 = vpop.permute.xlu1 %2136  ;;  %v2183_v53 = vsel %vm1152_vm8, %v2165_v5, %v2169_v11 }
 0x610   : > { %v2151_v32 = vsel %vm1124_vm9, %v4442_v27, %v2137_v33  ;;  %v2190_v40 = vmul.f32 %v2183_v53, %v3596_v34  ;;  %v2250_v34 = vmul.f32 %v4324_v2, %v3570_v15 }
 0x611   : > { %v2158_v31 = vmul.f32 %v2151_v32, %v3698_v25  ;;  %v2274_v25 = vpack.c.bf16 %v4240_v22, %v4137_v0  ;;  %v2732_v32 = vld [vmem:[%s4853_s14 + $0x8] sm:$0xf0] }
 0x612   : > { %v2282_v44 = vpack.c.bf16 %v2190_v40, %v2186_v26  ;;  %v4508_v40 = vor.u32 %v2759_v37, %v2732_v32 }
 0x613   : > { %v2278_v63 = vpack.c.bf16 %v2158_v31, %v2154_v49 }
 0x614   : > { %2321 = vmatpush.bf16.msrb.mxu0 %v2282_v44 }
 0x616   : > { %v4490_v10 = vpop.permute.xlu2 %2172  ;;  %v4492_v57 = vpop.permute.xlu0 %2232 }
 0x617   : > { %v2229_v47 = vpop.permute.xlu1 %2228  ;;  %v2181_v37 = vsel %vm1152_vm8, %v2169_v11, %v4490_v10 }
 0x618   : > { %v2247_v52 = vsel %vm1208_vm5, %v2229_v47, %v4492_v57  ;;  %2322 = vmatpush.bf16.msrb.mxu0 %v2278_v63 }
 0x619   : > { %v2254_v26 = vmul.f32 %v2247_v52, %v3570_v15  ;;  %v2216_v15 = vsel %vm1180_vm7, %v4391_v38, %v4258_v51 }
 0x61a   : > { %v4522_v31 = vmul.f32 %v2216_v15, %v3660_v55  ;;  %v2191_v15 = vmul.f32 %v2181_v37, %v3657_v30 }
 0x61b   : > { %v2290_v53 = vpack.c.bf16 %v2254_v26, %v2250_v34 }
 0x61c   : > { %2323 = vmatpush.bf16.msrb.mxu0 %v2274_v25 }
 0x61d   : > { %2341 = vmatpush.bf16.msrb.mxu1 %v2290_v53 }
 0x61e   : > { %v4514_v63 = vpop.permute.xlu2 %2208  ;;  %v4516_v0 = vpop.permute.xlu0 %2036 }
 0x61f   : > { %v2217_v22 = vsel %vm1180_vm7, %v4514_v63, %v2197_v43  ;;  %v2069_v2 = vpop.permute.xlu1 %2068 }
 0x620   : > { %v4525_v44 = vmul.f32 %v2217_v22, %v3660_v55  ;;  %2736 = vmatmul.msk.bf16.vlgmr.msrb.gmra.mxu1 %vm1563_vm15, %v4508_v40  ;;  %v4542_v55 = vmul.f32 %v4432_v14, %v3640_v46  ;;  %v2219_v14 = vmul.f32 %v4329_v28, %v3676_v13 }
 0x626   : > { %v4531_v51 = vpop.permute.xlu2 %2176  ;;  %v4533_v49 = vpop.permute.xlu0 %2072 }
 0x627   : > { %v2185_v43 = vsel %vm1152_vm8, %v4531_v51, %v2165_v5  ;;  %v4538_v52 = vpop.permute.xlu1 %2104 }
 0x628   : > { %v4545_v34 = vmul.f32 %v2185_v43, %v3640_v46  ;;  %v2187_v43 = vmul.f32 %v4383_v21, %v3657_v30  ;;  %v2122_v21 = vmul.f32 %v4395_v18, %v3838_v62 }
 0x62a   : > { %v2283_v26 = vpack.c.bf16 %v2191_v15, %v2187_v43  ;;  %v2090_v15 = vmul.f32 %v4362_v16, %v3835_v50  ;;  %v4972_v43 = vld [vmem:[#allocation15_spill] sm:$0xff] }
 0x62e   : > { %v2205_v25 = vpop.permute.xlu0 %2204  ;;  %v4559_v53 = vpop.permute.xlu2 %2048 }
 0x62f   : > { %v4552_v32 = vpop.permute.xlu1 %2040  ;;  %v2213_v5 = vsel %vm1180_vm7, %v4418_v36, %v2205_v25  ;;  %v2155_v36 = vmul.f32 %v4346_v20, %v3700_v41 }
 0x630   : > { %v2223_v46 = vmul.f32 %v2213_v5, %v3676_v13 }
 0x632   : > { %v2287_v22 = vpack.c.bf16 %v2223_v46, %v2219_v14 }
 0x634   : > { %2348 = vmatpush.bf16.msrb.mxu2 %v2287_v22 }
 0x636   : > { %v4565_v11 = vpop.permute.xlu0 %2140  ;;  %v2241_v5 = vpop.permute.xlu2 %2240 }
 0x637   : > { %v4567_v38 = vpop.permute.xlu1 %2112  ;;  %v2149_v28 = vsel %vm1124_vm9, %v2137_v33, %v4565_v11  ;;  %v2119_v33 = vsel %vm1096_vm10, %v4446_v58, %v4538_v52  ;;  %v2249_v46 = vsel %vm1208_vm5, %v2241_v5, %v2229_v47  ;;  %v2252_v47 = vmul.f32 %v4459_v42, %v4972_v43 }
 0x638   : > { %v2121_v13 = vsel %vm1096_vm10, %v4567_v38, %v4446_v58  ;;  %v2159_v30 = vmul.f32 %v2149_v28, %v3700_v41  ;;  %2349 = vmatpush.bf16.msrb.mxu2 %v2283_v26  ;;  %v2123_v41 = vmul.f32 %v4358_v39, %v3841_v35  ;;  %v2127_v18 = vmul.f32 %v2119_v33, %v3841_v35  ;;  %v4971_v58 = vld [vmem:[#allocation14_spill] sm:$0xff] }
 0x639   : > { %v2126_v37 = vmul.f32 %v2121_v13, %v3838_v62  ;;  %v2275_v62 = vpack.c.bf16 %v4243_v1, %v4140_v61  ;;  %v2251_v22 = vmul.f32 %v4423_v8, %v4971_v58  ;;  %v2057_v35 = vsel %vm1040_vm13, %v4559_v53, %v4516_v0  ;;  %v4973_v61 = vld [vmem:[#allocation16_spill] sm:$0xff] }
 0x63a   : > { %v2279_v14 = vpack.c.bf16 %v2159_v30, %v2155_v36  ;;  %v2257_v1 = vmul.f32 %v2249_v46, %v4973_v61  ;;  %v2087_v42 = vsel %vm1068_vm12, %v2069_v2, %v4533_v49 }
 0x63b   : > { %v2270_v20 = vpack.c.bf16 %v2126_v37, %v2122_v21  ;;  %v2056_v21 = vsel %vm1040_vm13, %v4444_v54, %v4284_v7  ;;  %v2253_v37 = vmul.f32 %v4464_v4, %v4973_v61  ;;  %v2211_v4 = vsel %vm1180_vm7, %v2205_v25, %v4514_v63 }
 0x63c   : > { %2350 = vmatpush.bf16.msrb.mxu2 %v2279_v14  ;;  %v2220_v61 = vmul.f32 %v4408_v17, %v3684_v23 }
 0x63d   : > { %2324 = vmatpush.bf16.msrb.mxu0 %v2270_v20  ;;  %v2095_v20 = vmul.f32 %v2087_v42, %v3829_v9  ;;  %v2293_v46 = vpack.c.bf16 %v2257_v1, %v2253_v37  ;;  %v4982_v42 = vld [vmem:[#allocation17_spill] sm:$0xff]  ;;  %v4984_v37 = vld [vmem:[#allocation19_spill] sm:$0xff] }
 0x63e   : > { %v4591_v26 = vpop.permute.xlu0 %2080 }
 0x63f   : > { %v2237_v28 = vpop.permute.xlu1 %2236  ;;  %v2089_v39 = vsel %vm1068_vm12, %v4591_v26, %v2069_v2 }
 0x640   : > { %v2243_v16 = vsel %vm1208_vm5, %v2237_v28, %v2241_v5  ;;  %v2245_v8 = vsel %vm1208_vm5, %v4492_v57, %v2237_v28  ;;  %2351 = vmatpush.bf16.msrb.mxu2 %v2275_v62  ;;  %v2094_v30 = vmul.f32 %v2089_v39, %v3835_v50  ;;  %v2271_v57 = vpack.c.bf16 %v2127_v18, %v2123_v41  ;;  %v2760_v39 = vld [vmem:[%s4853_s14 + $0x4] sm:$0xf0] }
 0x641   : > { %v2255_v36 = vmul.f32 %v2245_v8, %v4971_v58  ;;  %v2256_v13 = vmul.f32 %v2243_v16, %v4972_v43  ;;  %v2062_v5 = vmul.f32 %v2057_v35, %v3847_v12  ;;  %v2058_v50 = vmul.f32 %v2056_v21, %v3847_v12  ;;  %v4981_v8 = vld [vmem:[#allocation11_spill] sm:$0xff] }
 0x642   : > { %v2266_v2 = vpack.c.bf16 %v2094_v30, %v2090_v15  ;;  %v2055_v62 = vsel %vm1040_vm13, %v4516_v0, %v4552_v32  ;;  %v2091_v41 = vmul.f32 %v4342_v60, %v3829_v9  ;;  %vm4974_vm5 = vcmp.lt.s32.totalorder %v3564_v3, 17  ;;  %v4976_v60 = vld [vmem:[#allocation12_spill] sm:$0xff] }
 0x643   : > { %v2291_v14 = vpack.c.bf16 %v2255_v36, %v2251_v22  ;;  %v2292_v33 = vpack.c.bf16 %v2256_v13, %v2252_v47  ;;  %v2024_v18 = vsel %vm4974_vm5, %v4440_v56, %v4337_v48  ;;  %v2054_v0 = vsel %vm1040_vm13, %v4284_v7, %v4370_v6  ;;  %vm4975_vm7 = vmmov %vm4974_vm5 }
 0x644   : > { %2352 = vmatpush.bf16.msrb.mxu2 %v2271_v57  ;;  %2325 = vmatpush.bf16.msrb.mxu0 %v2266_v2  ;;  %v2023_v63 = vsel %vm4975_vm7, %v4470_v59, %v4477_v19  ;;  %v2262_v9 = vpack.c.bf16 %v2062_v5, %v2058_v50  ;;  %v2063_v15 = vmul.f32 %v2055_v62, %v3856_v29  ;;  %vm4977_vm3 = vmmov %vm4974_vm5  ;;  %v4985_v2 = vld [vmem:[#allocation33_spill] sm:$0xff] }
 0x645   : > { %2369 = vmatpush.bf16.msrb.mxu3 %v2291_v14  ;;  %2397 = vmatpush.bf16.msra.mxu1 %v2292_v33  ;;  %v2224_v58 = vmul.f32 %v2211_v4, %v3684_v23  ;;  %v2267_v7 = vpack.c.bf16 %v2095_v20, %v2091_v41  ;;  %v2026_v43 = vmul.f32 %v2024_v18, %v3875_v24  ;;  %v4987_v4 = vld [vmem:[#allocation18_spill] sm:$0xff]  ;;  %vm5009_vm11 = vmmov %vm4977_vm3 }
 0x646   : > { %v2145_v12 = vpop.permute.xlu0 %2144  ;;  %v2179_v47 = vsel %vm1152_vm8, %v4490_v10, %v4531_v51  ;;  %v2059_v35 = vmul.f32 %v2054_v0, %v3856_v29  ;;  %v4978_v10 = vld [vmem:[#allocation13_spill] sm:$0xff]  ;;  %vm4979_vm8 = vmmov %vm4977_vm3  ;;  %v4980_v51 = vld [vmem:[#allocation28_spill] sm:$0xff]  ;;  %v2156_v20 = vmul.f32 %v4985_v2, %v4984_v37  ;;  %v2043_v0 = vpop.permute.xlu2 %2042 }
 0x647   : > { %v4650_v25 = vpop.permute.xlu1 %2016  ;;  %v2031_v1 = vmul.f32 %v2023_v63, %v4980_v51  ;;  %v2192_v36 = vmul.f32 %v2179_v47, %v4982_v42  ;;  %v2288_v13 = vpack.c.bf16 %v2224_v58, %v2220_v61  ;;  %v2147_v23 = vsel %vm1124_vm9, %v4565_v11, %v2145_v12  ;;  %v4990_v63 = vld [vmem:[#allocation20_spill] sm:$0xff]  ;;  %vm5010_vm4 = vmmov %vm4977_vm3 }
 0x648   : > { %v2025_v22 = vsel %vm4977_vm3, %v4650_v25, %v4470_v59  ;;  %2737 = vmatmul.msk.bf16.vlgmr.msrb.gmra.mxu3 %vm1563_vm15, %v4508_v40  ;;  %2738 = vmatmul.msk.bf16.vlgmr.msra.gmra.mxu1 %vm1563_vm15, %v4508_v40  ;;  %v2730_v59 = vld [vmem:[%s4853_s14] sm:$0xf]  ;;  %v2263_v29 = vpack.c.bf16 %v2063_v15, %v2059_v35  ;;  %v2160_v57 = vmul.f32 %v2147_v23, %v4984_v37  ;;  %v4998_v61 = vld [vmem:[#allocation32_spill] sm:$0xff] }
 0x649   : > { %2425 = vmatpush.bf16.msra.mxu3 %v2293_v46  ;;  %2467 = vmatpush.msrb.mxu1 %v4976_v60  ;;  %v2030_v28 = vmul.f32 %v2025_v22, %v3875_v24  ;;  %v2022_v24 = vsel %vm4979_vm8, %v4337_v48, %v4354_v45  ;;  %v4686_v30 = vor.u32 %v2760_v39, %v2730_v59  ;;  %v4983_v48 = vld [vmem:[#allocation37_spill] sm:$0xff]  ;;  %v4992_v60 = vld [vmem:[#allocation31_spill] sm:$0xff]  ;;  %v4996_v59 = vld [vmem:[#allocation24_spill] sm:$0xff] }
 0x64a   : > { %2326 = vmatpush.bf16.msrb.mxu0 %v2262_v9  ;;  %2353 = vmatpush.bf16.msrb.mxu2 %v2267_v7  ;;  %v2027_v17 = vmul.f32 %v2022_v24, %v4980_v51  ;;  %v2188_v21 = vmul.f32 %v4983_v48, %v4982_v42  ;;  %v2153_v11 = vsel %vm1124_vm9, %v2145_v12, %v4442_v27  ;;  %v4712_v27 = vld [vmem:[%s4855_s16] sm:$0xff]  ;;  %vm4993_vm9 = vcmask 64512   ;;  %v4994_v7 = vld [vmem:[#allocation36_spill] sm:$0xff]  ;;  %v4999_v24 = vld [vmem:[#allocation39_spill] sm:$0xff] }
 0x64b   : > { %v2258_v16 = vpack.c.bf16 %v2030_v28, %v2026_v43  ;;  %2536 = vmatpush.msra.mxu1 %v4981_v8  ;;  %v4986_v46 = vpack.c.bf16 %v4525_v44, %v4522_v31  ;;  %v2280_v62 = vpack.c.bf16 %v2160_v57, %v2156_v20  ;;  %v2161_v41 = vmul.f32 %v2153_v11, %v4987_v4  ;;  %v4988_v31 = vld [vmem:[#allocation34_spill] sm:$0xff]  ;;  %v5000_v8 = vld [vmem:[#allocation35_spill] sm:$0xff]  ;;  %vm5013_vm6 = vmmov %vm4993_vm9 }
 0x64c   : > { %v2259_v14 = vpack.c.bf16 %v2031_v1, %v2027_v17  ;;  %v2284_v33 = vpack.c.bf16 %v2192_v36, %v2188_v21  ;;  %v2157_v44 = vmul.f32 %v4988_v31, %v4987_v4  ;;  %v4989_v12 = vpack.c.bf16 %v4545_v34, %v4542_v55  ;;  %v4997_v35 = vld [vmem:[#allocation30_spill] sm:$0xff]  ;;  %v5002_v17 = vld [vmem:[#allocation25_spill] sm:$0xff]  ;;  %v5008_v11 = vld [vmem:[#allocation27_spill] sm:$0xff] }
 0x64d   : > { %2490 = vmatpush.msrb.mxu3 %v4978_v10  ;;  %v2124_v55 = vmul.f32 %v4994_v7, %v4990_v63  ;;  %v2277_v10 = vpack.c.bf16 %v4998_v61, %v4997_v35  ;;  %v2125_v42 = vmul.f32 %v5000_v8, %v4996_v59  ;;  %v5005_v57 = vld [vmem:[#allocation38_spill] sm:$0xff]  ;;  %vm5015_vm14 = vmmov %vm5013_vm6 }
 0x64e   : > { %2327 = vmatpush.bf16.msrb.mxu0 %v2258_v16  ;;  %2354 = vmatpush.bf16.msrb.mxu2 %v2263_v29  ;;  %v2109_v5 = vpop.permute.xlu0 %2108  ;;  %v2281_v22 = vpack.c.bf16 %v2161_v41, %v2157_v44  ;;  %v2433_v16 = vld [vmem:[%s4855_s16 + $0x8] sm:$0xff]  ;;  %v2013_v36 = vpop.permute.xlu2 %2012  ;;  %v5012_v41 = vld [vmem:[#allocation26_spill] sm:$0xff]  ;;  %vm5016_vm0 = vmmov %vm5013_vm6 }
 0x64f   : > { %v2077_v50 = vpop.permute.xlu1 %2076  ;;  %v2117_v18 = vsel %vm1096_vm10, %v4538_v52, %v2109_v5  ;;  %v4991_v52 = vld [vmem:[#allocation29_spill] sm:$0xff]  ;;  %v2115_v34 = vsel %vm1096_vm10, %v2109_v5, %v4567_v38  ;;  %vm5003_vm10 = vmmov %vm4977_vm3  ;;  %v2093_v5 = vmul.f32 %v5005_v57, %v5002_v17  ;;  %v5014_v31 = vld [vmem:[#allocation10_spill] sm:$0xff] }
 0x650   : > { %v2128_v9 = vmul.f32 %v2117_v18, %v4990_v63  ;;  %v2276_v15 = vpack.c.bf16 %v4992_v60, %v4991_v52  ;;  %v2085_v58 = vsel %vm1068_vm12, %v4533_v49, %v2077_v50  ;;  %v2129_v39 = vmul.f32 %v2115_v34, %v4996_v59  ;;  %vm5017_vm1 = vmmov %vm5016_vm0 }
 0x651   : > { %2328 = vmatmul.bf16.vlgmr.msrb.gmra.mxu0 %v4686_v30  ;;  %v2083_v38 = vsel %vm1068_vm12, %v2077_v50, %v4591_v26  ;;  %vm5004_vm12 = vmmov %vm4993_vm9 }
 0x652   : > { %2376 = vmatpush.bf16.msra.mxu0 %v2288_v13  ;;  %2355 = vmatpush.bf16.msrb.mxu2 %v2259_v14  ;;  %v2272_v28 = vpack.c.bf16 %v2128_v9, %v2124_v55  ;;  %v5001_v13 = vld [vmem:[#allocation23_spill] sm:$0xff]  ;;  %v2097_v26 = vmul.f32 %v2083_v38, %v5002_v17  ;;  %v2273_v21 = vpack.c.bf16 %v2129_v39, %v2125_v42  ;;  %vm5018_vm2 = vmmov %vm5016_vm0 }
 0x654   : > { %v2269_v50 = vpack.c.bf16 %v2097_v26, %v2093_v5 }
 0x655   : > { %2356 = vmatmul.bf16.vlgmr.msrb.gmra.mxu2 %v4686_v30 }
 0x656   : > { %2377 = vmatpush.bf16.msra.mxu0 %v2284_v33  ;;  %2404 = vmatpush.bf16.msra.mxu2 %v4986_v46  ;;  %v2045_v43 = vpop.permute.xlu0 %2044  ;;  %v5007_v33 = vld [vmem:[#allocation22_spill] sm:$0xff] }
 0x657   : > { %v2053_v49 = vsel %vm1040_vm13, %v4552_v32, %v2045_v43  ;;  %v2011_v1 = vpop.permute.xlu1 %2010  ;;  %v2052_v32 = vsel %vm1040_vm13, %v4370_v6, %v2043_v0  ;;  %v2051_v6 = vsel %vm1040_vm13, %v2045_v43, %v4559_v53 }
 0x658   : > { %2739 = vmatmul.msk.bf16.vlgmr.msra.gmra.mxu3 %vm1563_vm15, %v4508_v40  ;;  %2740 = vmatmul.msk.f32.vlgmr.msrb.gmra.mxu1 %vm4993_vm9, %v4712_v27  ;;  %v4995_v40 = vld [vmem:[#allocation21_spill] sm:$0xff]  ;;  %v2064_v29 = vmul.f32 %v2053_v49, %v5001_v13  ;;  %v2020_v48 = vsel %vm5003_vm10, %v4354_v45, %v2011_v1  ;;  %v2060_v37 = vmul.f32 %v2052_v32, %v5001_v13  ;;  %vm5006_vm15 = vmmov %vm4977_vm3 }
 0x659   : > { %v2096_v47 = vmul.f32 %v2085_v58, %v4995_v40  ;;  %v2092_v51 = vmul.f32 %v4999_v24, %v4995_v40  ;;  %v2021_v14 = vsel %vm5006_vm15, %v4477_v19, %v2013_v36  ;;  %v2050_v45 = vsel %vm1040_vm13, %v2043_v0, %v4444_v54  ;;  %vm5011_vm13 = vmmov %vm4993_vm9 }
 0x65a   : > { %2378 = vmatpush.bf16.msra.mxu0 %v2280_v62  ;;  %2405 = vmatpush.bf16.msra.mxu2 %v4989_v12  ;;  %v2028_v2 = vmul.f32 %v2020_v48, %v5007_v33  ;;  %v2264_v20 = vpack.c.bf16 %v2064_v29, %v2060_v37  ;;  %v2065_v46 = vmul.f32 %v2051_v6, %v5008_v11 }
 0x65b   : > { %v2268_v23 = vpack.c.bf16 %v2096_v47, %v2092_v51  ;;  %v2032_v53 = vmul.f32 %v2021_v14, %v5007_v33  ;;  %v2018_v62 = vsel %vm5009_vm11, %v2011_v1, %v4440_v56  ;;  %v2061_v19 = vmul.f32 %v2050_v45, %v5008_v11 }
 0x65c   : > { %v2019_v54 = vsel %vm5010_vm4, %v2013_v36, %v4650_v25  ;;  %v2029_v18 = vmul.f32 %v2018_v62, %v5012_v41 }
 0x65d   : > { %v2260_v4 = vpack.c.bf16 %v2032_v53, %v2028_v2  ;;  %v2265_v0 = vpack.c.bf16 %v2065_v46, %v2061_v19  ;;  %v2033_v56 = vmul.f32 %v2019_v54, %v5012_v41 }
 0x65e   : > { %2379 = vmatpush.bf16.msra.mxu0 %v2276_v15  ;;  %2406 = vmatpush.bf16.msra.mxu2 %v2281_v22 }
 0x65f   : > { %v2261_v3 = vpack.c.bf16 %v2033_v56, %v2029_v18  ;;  %v2306_v51 = vpop.permute.xlu1 %2305 }
 0x660   : > { %2741 = vmatmul.msk.f32.gmra.mxu1 %vm5004_vm12, %v2433_v16 }
 0x662   : > { %2380 = vmatpush.bf16.msra.mxu0 %v2272_v28  ;;  %2407 = vmatpush.bf16.msra.mxu2 %v2277_v10 }
 0x666   : > { %2381 = vmatpush.bf16.msra.mxu0 %v2268_v23  ;;  %2408 = vmatpush.bf16.msra.mxu2 %v2273_v21 }
 0x668   : > { %2742 = vmatmul.msk.f32.vlgmr.msrb.gmra.mxu3 %vm5011_vm13, %v4712_v27  ;;  %2746 = vmatmul.msk.f32.vlgmr.msra.gmra.mxu1 %vm5013_vm6, %v4712_v27 }
 0x66a   : > { %2382 = vmatpush.bf16.msra.mxu0 %v2264_v20  ;;  %2409 = vmatpush.bf16.msra.mxu2 %v2269_v50 }
 0x66e   : > { %2383 = vmatpush.bf16.msra.mxu0 %v2260_v4  ;;  %2410 = vmatpush.bf16.msra.mxu2 %v2265_v0 }
 0x670   : > { %2743 = vmatmul.msk.f32.gmra.mxu3 %vm5015_vm14, %v2433_v16  ;;  %2747 = vmatmul.msk.f32.gmra.mxu1 %vm5016_vm0, %v2433_v16 }
 0x671   : > { %2384 = vmatmul.bf16.vlgmr.msra.gmra.mxu0 %v4686_v30 }
 0x672   : > { %2513 = vmatpush.msrb.mxu0 %v5014_v31  ;;  %2411 = vmatpush.bf16.msra.mxu2 %v2261_v3 }
 0x675   : > { %2412 = vmatmul.bf16.vlgmr.msra.gmra.mxu2 %v4686_v30  ;;  %v2301_v30 = vpop.permute.xlu0 %2300 }
 0x67d   : > { %v2444_v8 = vpop.permute.xlu0 %2443 }
 0x681   : > { %2744 = vmatmul.msk.f32.vlgmr.msrb.gmra.mxu0 %vm5017_vm1, %v4712_v27  ;;  %v2439_v27 = vpop.permute.xlu2 %2438 }
 0x689   : > { %2745 = vmatmul.msk.f32.gmra.mxu0 %vm5018_vm2, %v2433_v16 }
 0x69d   : > { %v2343_v25 = vpop.f32.mrf.mxu1 }
 0x6a5   : > { %v2345_v44 = vpop.f32.mrf.mxu1 }
 0x6c5   : > { %v2399_v63 = vpop.f32.mrf.mxu1 }
 0x6cb   : > { %v2371_v12 = vpop.f32.mrf.mxu3 }
 0x6cd   : > { %v2401_v60 = vpop.f32.mrf.mxu1 }
 0x6ce   : > { %v2329_v52 = vpop.f32.mrf.mxu0 }
 0x6cf   : > { %v2330_v34 = vadd.f32 %v2329_v52, %v2301_v30 }
 0x6d1   : > { %v2344_v59 = vadd.f32 %v2343_v25, %v2330_v34 }
 0x6d3   : > { %v2373_v9 = vpop.f32.mrf.mxu3 }
 0x6d5   : > { %v2469_v22 = vpop.f32.mrf.mxu1 }
 0x6d6   : > { %v2331_v58 = vpop.f32.mrf.mxu0  ;;  %v2470_v40 = vadd.f32 %v2469_v22, %v2439_v27 }
 0x6d7   : > { %v2332_v38 = vadd.f32 %v2331_v58, %v2306_v51 }
 0x6d8   : > { %v2357_v7 = vpop.f32.mrf.mxu2  ;;  %v2544_v10 = vadd.f32 %v2470_v40, %v2344_v59 }
 0x6d9   : > { %v2358_v43 = vadd.f32 %v2357_v7, %v2301_v30  ;;  %v2346_v13 = vadd.f32 %v2345_v44, %v2332_v38 }
 0x6db   : > { %v2427_v15 = vpop.f32.mrf.mxu3  ;;  %v2372_v39 = vadd.f32 %v2371_v12, %v2358_v43 }
 0x6dd   : > { %v2472_v49 = vpop.f32.mrf.mxu1 }
 0x6de   : > { %v2473_v42 = vadd.f32 %v2472_v49, %v2444_v8 }
 0x6e0   : > { %v2359_v61 = vpop.f32.mrf.mxu2  ;;  %v2548_v26 = vadd.f32 %v2473_v42, %v2346_v13 }
 0x6e1   : > { %v2360_v1 = vadd.f32 %v2359_v61, %v2306_v51 }
 0x6e3   : > { %v2429_v55 = vpop.f32.mrf.mxu3  ;;  %v2374_v29 = vadd.f32 %v2373_v9, %v2360_v1 }
 0x6e5   : > { %v2538_v48 = vpop.f32.mrf.mxu1 }
 0x6e6   : > { %v2539_v45 = vadd.f32 %v2538_v48, %v2439_v27 }
 0x6eb   : > { %v2492_v28 = vpop.f32.mrf.mxu3 }
 0x6ec   : > { %v2493_v35 = vadd.f32 %v2492_v28, %v2439_v27 }
 0x6ed   : > { %v2541_v19 = vpop.f32.mrf.mxu1 }
 0x6ee   : > { %v2385_v47 = vpop.f32.mrf.mxu0  ;;  %v2545_v24 = vadd.f32 %v2493_v35, %v2372_v39  ;;  %v2542_v41 = vadd.f32 %v2541_v19, %v2444_v8 }
 0x6ef   : > { %v2386_v6 = vadd.f32 %v2385_v47, %v2301_v30 }
 0x6f0   : > { %v2552_v16 = vpack.c.bf16 %v2545_v24, %v2544_v10 }
 0x6f1   : > { %v2400_v33 = vadd.f32 %v2399_v63, %v2386_v6 }
 0x6f2   : > { %2556 = vst [vmem:[%s4799_s24] sm:$0xff] %v2552_v16 }
 0x6f3   : > { %v2495_v36 = vpop.f32.mrf.mxu3 }
 0x6f4   : > { %v2496_v23 = vadd.f32 %v2495_v36, %v2444_v8 }
 0x6f6   : > { %v2387_v32 = vpop.f32.mrf.mxu0  ;;  %v2549_v21 = vadd.f32 %v2496_v23, %v2374_v29 }
 0x6f7   : > { %v2388_v53 = vadd.f32 %v2387_v32, %v2306_v51 }
 0x6f8   : > { %v2413_v17 = vpop.f32.mrf.mxu2  ;;  %v2554_v57 = vpack.c.bf16 %v2549_v21, %v2548_v26 }
 0x6f9   : > { %v2414_v37 = vadd.f32 %v2413_v17, %v2301_v30  ;;  %v2402_v18 = vadd.f32 %v2401_v60, %v2388_v53 }
 0x6fa   : > { %2557 = vst [vmem:[%s4799_s24 + $0x8] sm:$0xff] %v2554_v57 }
 0x6fb   : > { %v2428_v5 = vadd.f32 %v2427_v15, %v2414_v37 }
 0x6fd   : > { %v2547_v20 = vadd.f32 %v2539_v45, %v2428_v5 }
 0x6fe   : > { %v2515_v14 = vpop.f32.mrf.mxu0 }
 0x6ff   : > { %v2516_v2 = vadd.f32 %v2515_v14, %v2439_v27 }
 0x700   : > { %v2415_v46 = vpop.f32.mrf.mxu2 }
 0x701   : > { %v2546_v11 = vadd.f32 %v2516_v2, %v2400_v33  ;;  %v2416_v50 = vadd.f32 %v2415_v46, %v2306_v51 }
 0x703   : > { %v2553_v62 = vpack.c.bf16 %v2547_v20, %v2546_v11  ;;  %v2430_v54 = vadd.f32 %v2429_v55, %v2416_v50 }
 0x705   : > { %2748 = vst [vmem:[%s4799_s24 + $0x10] sm:$0xff] %v2553_v62  ;;  %v2551_v56 = vadd.f32 %v2542_v41, %v2430_v54 }
 0x706   : > { %v2518_v4 = vpop.f32.mrf.mxu0 }
 0x707   : > { %v2519_v0 = vadd.f32 %v2518_v4, %v2444_v8 }
 0x709   : > { %v2550_v31 = vadd.f32 %v2519_v0, %v2402_v18 }
 0x70b   : > { %v2555_v3 = vpack.c.bf16 %v2551_v56, %v2550_v31 }
 0x70d   : > { %2749 = vst [vmem:[%s4799_s24 + $0x18] sm:$0xff] %v2555_v3 }
 0x70e   : > { %2944 = shalt.err (!%p2941_p4)
}
 0x70f   : > { %s2990_s19 = smov 128   ;;  %s2991_s24 = smov 8  }
 0x710   : > { %2763 = dma.vmem_to_hbm [thread:$0]  (%p3125_p5), %s2576_s7, 512, %s2578_s25, %s2562_s29, %s2990_s19, %s2990_s19, %s2991_s24  }
 0x711 PF: > { %s5019_s20 = sld [smem:[#allocation5_spill]]  ;;  %p2769_p7 = scmp.ge.s32.totalorder %s2979_s28, 2 }
 0x713   : > { %p2766_p8 = pnand %p2769_p7, %p3129_p6 }
 0x715   : > { %p2767_p9 = pneg %p2766_p8 }
 0x717   : > { %s2592_s1 = sand.u32 1, %s5019_s20  }
 0x718   : > { %s2593_s22 = scalar_lea.sflag [#allocation3], %s2592_s1 }
 0x719   : > { %2962 = dma.done.wait (%p2767_p9), %s2593_s22, 512  }
 0x71a   : > { %2964 = vsyncadd (%p2767_p9), %s2593_s22, 4294966784  ;;  %s5021_s28 = sld [smem:[#allocation7_spill]]  ;;  %s5024_s25 = smov %s2971_s26 }
 0x71b   : > { %s5022_s2 = sld [smem:[#allocation6_spill]] }
 0x71c   : > { %s5023_s27 = sld [smem:[#allocation8_spill]] }
 0x720   : > { %p28_p10 = scmp.ge.s32.totalorder %s5021_s28, 4  }
 0x721   : > { %s5025_s26 = smov %s5022_s2 }
 0x722   :  { %30 = sbr.rel (!%p28_p10) target bundleno = 7 (0x7), region = 139 }
 0x727   :  { %2599 = vsyncpa [#allocation3], 1 }
 0x728   :  { %2601 = vsyncpa [#allocation3 + $0x1], 1 }

</bundles_post_ra>
